<compile_context>
chip_gen: v7x
topology: tpu7x:2x2x1
jax: 0.10.0
libtpu: 0.0.40
codegen_flags: <defaults>
</compile_context>

<pallas_src>
import jax
import jax.numpy as jnp
from jax.experimental import pallas as pl

# ---- model hyperparameters (consistent with the module's __init__) ----
D_MODEL = 32
D_K = 8
D_V = 8
N_HEADS = 4
D_FF = 64
N_BLOCKS = 2
LN_EPS = 1e-5
NEG_BIG = -1e30          # large finite negative bias (exp underflows to exactly 0)
_VEC_W = max(D_MODEL, D_FF)


# --------------------------- fused Pallas kernel -------------------------------

def _decoder_stack_kernel(x_ref, ctx_ref, bias_ref, attn_a_ref, attn_v_ref,
                          ffn_w_ref, vecs_ref, out_ref):
    """Whole decoder stack, batch folded onto the sublane axis.

    x_ref     : (B*Sq, D)        folded decoder input
    ctx_ref   : (B*Sk, D)        folded encoder context
    bias_ref  : (2, B*Sq, W)     [0,:,:B*Sq] block-diag causal, [1,:,:B*Sk] block-diag cross
    attn_a_ref: (L*2, D, H*D)    per (layer, self|cross): [A_1|..|A_H], A_h = wq_h wk_h^T / sqrt(dk)
    attn_v_ref: (L*2, D, H*D)    per (layer, self|cross): [Wv_1|..|Wv_H], Wv_h = wv_h wo_h
    ffn_w_ref : (L, 2, D, D_FF)  [l,0] = W1, [l,1] = W2^T
    vecs_ref  : (L, 8, W)        rows: ln1_g, ln1_b, ln2_g, ln2_b, ln3_g, ln3_b, ff_b1, ff_b2
    out_ref   : (B*Sq, D)
    """
    x = x_ref[...]                       # (mq, D)
    ctx = ctx_ref[...]                   # (mk, D)
    mq, d_model = x.shape
    mk = ctx.shape[0]
    n_blocks = ffn_w_ref.shape[0]
    d_ff = ffn_w_ref.shape[-1]
    n_heads = attn_a_ref.shape[-1] // d_model

    self_bias = bias_ref[0, :, :mq]      # (mq, mq) additive, block-diag causal
    cross_bias = bias_ref[1, :, :mk]     # (mq, mk) additive, block-diag per batch

    def attention(xq, xk, a_all, wv_all, bias):
        # a_all / wv_all : (D, H*D) lane-dense slabs; bias additive on the scores.
        # scores_h = (xq @ A_h) @ xk^T ; out += softmax(scores_h) @ (xk @ Wv_h)
        xa = jnp.dot(xq, a_all, preferred_element_type=jnp.float32)    # (mq, H*D)
        xv = jnp.dot(xk, wv_all, preferred_element_type=jnp.float32)   # (mk, H*D)
        out = None
        for h in range(n_heads):                                       # static unroll
            lo = h * d_model
            # contract on the last dims -> no materialized xk^T
            s = jax.lax.dot_general(xa[:, lo:lo + d_model], xk,
                                    (((1,), (1,)), ((), ())),
                                    preferred_element_type=jnp.float32)  # (mq, mk)
            s = s + bias
            s = s - jnp.max(s, axis=-1, keepdims=True)
            e = jnp.exp(s)
            # softmax divide on the EUP (otherwise idle except for the exp)
            p = e * pl.reciprocal(jnp.sum(e, axis=-1, keepdims=True), approx=True)
            pv = jnp.dot(p, xv[:, lo:lo + d_model],
                         preferred_element_type=jnp.float32)            # (mq, D)
            out = pv if out is None else out + pv
        return out

    def add_ln(a, b, gamma, beta):
        # LayerNorm(a + b) over features (eps=1e-5, population variance)
        r = a + b
        mean = jnp.mean(r, axis=-1, keepdims=True)
        c = r - mean
        var = jnp.mean(c * c, axis=-1, keepdims=True)
        return c * jax.lax.rsqrt(var + LN_EPS) * gamma + beta

    h_act = x
    for l in range(n_blocks):                                           # static unroll
        vrow = vecs_ref[l]                                              # (8, W)
        ln1_g, ln1_b = vrow[0:1, :d_model], vrow[1:2, :d_model]
        ln2_g, ln2_b = vrow[2:3, :d_model], vrow[3:4, :d_model]
        ln3_g, ln3_b = vrow[4:5, :d_model], vrow[5:6, :d_model]
        ff_b1 = vrow[6:7, :d_ff]
        ff_b2 = vrow[7:8, :d_model]

        # causal self-attention + residual + LN
        sa = attention(h_act, h_act, attn_a_ref[2 * l], attn_v_ref[2 * l], self_bias)
        n1 = add_ln(h_act, sa, ln1_g, ln1_b)
        # cross-attention (no pad mask; block-diag bias only separates batches) + LN
        ca = attention(n1, ctx, attn_a_ref[2 * l + 1], attn_v_ref[2 * l + 1], cross_bias)
        n2 = add_ln(n1, ca, ln2_g, ln2_b)
        # FFN (Linear -> ReLU -> Linear) + residual + LN
        hid = jnp.dot(n2, ffn_w_ref[l, 0], preferred_element_type=jnp.float32) + ff_b1
        hid = jnp.maximum(hid, 0.0)
        ff = jax.lax.dot_general(hid, ffn_w_ref[l, 1], (((1,), (1,)), ((), ())),
                                 preferred_element_type=jnp.float32) + ff_b2
        h_act = add_ln(n2, ff, ln3_g, ln3_b)

    out_ref[...] = h_act


# --------------------------- one-time parameter packing -------------------------

def build_attention_bias(batch_size, seq_dec, seq_enc):
    """(2, B*Sq, W) additive bias: [0] block-diag causal, [1] block-diag cross."""
    q = jnp.arange(batch_size * seq_dec)
    k = jnp.arange(batch_size * seq_enc)
    self_ok = ((q[:, None] // seq_dec) == (q[None, :] // seq_dec)) & \
              ((q[None, :] % seq_dec) <= (q[:, None] % seq_dec))
    cross_ok = (q[:, None] // seq_dec) == (k[None, :] // seq_enc)
    width = max(batch_size * seq_dec, batch_size * seq_enc)

    def pad(ok):
        b = jnp.where(ok, 0.0, NEG_BIG).astype(jnp.float32)
        return jnp.pad(b, ((0, 0), (0, width - b.shape[1])), constant_values=NEG_BIG)

    return jnp.stack([pad(self_ok), pad(cross_ok)])


def pack_decoder_params(params_list, batch_size, seq_dec, seq_enc):
    """Fold + pack weights into a few lane-dense slabs (done once, not per call)."""
    scale = 1.0 / (D_K ** 0.5)
    a_slabs, v_slabs = [], []
    for p in params_list:
        for prefix in ("sa", "ca"):                   # index = 2*layer + (0 self, 1 cross)
            wq, wk = p[prefix + "_wq"], p[prefix + "_wk"]
            wv, wo = p[prefix + "_wv"], p[prefix + "_wo"]
            a_h, v_h = [], []
            for h in range(N_HEADS):
                qs = slice(h * D_K, (h + 1) * D_K)
                vs = slice(h * D_V, (h + 1) * D_V)
                a_h.append((wq[:, qs] * scale) @ wk[:, qs].T)   # (D, D)
                v_h.append(wv[:, vs] @ wo[vs, :])               # (D, D)
            a_slabs.append(jnp.concatenate(a_h, axis=1))        # (D, H*D) lane-dense
            v_slabs.append(jnp.concatenate(v_h, axis=1))
    attn_a = jnp.stack(a_slabs)                                 # (L*2, D, H*D)
    attn_v = jnp.stack(v_slabs)                                 # (L*2, D, H*D)

    # [l,0] = W1 (D, D_FF), [l,1] = W2^T (D, D_FF)
    ffn_w = jnp.stack([jnp.stack([p["ff_w1"], p["ff_w2"].T]) for p in params_list])

    def row(v):
        v = v.reshape(-1)
        return jnp.pad(v, (0, _VEC_W - v.shape[0]))

    vecs = jnp.stack([
        jnp.stack([row(p["ln1_g"]), row(p["ln1_b"]),
                   row(p["ln2_g"]), row(p["ln2_b"]),
                   row(p["ln3_g"]), row(p["ln3_b"]),
                   row(p["ff_b1"]), row(p["ff_b2"])])
        for p in params_list])                                  # (L, 8, W)

    bias = build_attention_bias(batch_size, seq_dec, seq_enc)
    return dict(attn_a=attn_a, attn_v=attn_v, ffn_w=ffn_w, vecs=vecs, bias=bias)


# --------------------------- wrapper --------------------------------------------

@jax.jit
def decoder_forward(inputs, context, packed):
    """inputs: (B, Sq, D), context: (B, Sk, D), packed: output of pack_decoder_params."""
    B, Sq, D = inputs.shape
    _, Sk, _ = context.shape
    x2 = inputs.reshape(B * Sq, D)       # fold batch onto the sublane axis
    c2 = context.reshape(B * Sk, D)
    # Gridless pallas_call: single invocation, every operand fully resident in VMEM.
    out2 = pl.pallas_call(
        _decoder_stack_kernel,
        out_shape=jax.ShapeDtypeStruct((B * Sq, D), jnp.float32),
    )(x2, c2, packed["bias"], packed["attn_a"], packed["attn_v"],
      packed["ffn_w"], packed["vecs"])
    return out2.reshape(B, Sq, D)


# --------------------------- parameter init -------------------------------------

def _uniform(key, shape, fan_in):
    bound = 1.0 / jnp.sqrt(jnp.float32(fan_in))
    return jax.random.uniform(key, shape, jnp.float32, -bound, bound)


def init_decoder_block_params(key):
    keys = jax.random.split(key, 12)
    hk, hv = N_HEADS * D_K, N_HEADS * D_V
    return dict(
        # causal self-attention (Linears are bias=False, matching the module)
        sa_wq=_uniform(keys[0], (D_MODEL, hk), D_MODEL),
        sa_wk=_uniform(keys[1], (D_MODEL, hk), D_MODEL),
        sa_wv=_uniform(keys[2], (D_MODEL, hv), D_MODEL),
        sa_wo=_uniform(keys[3], (hv, D_MODEL), hv),
        ln1_g=jnp.ones((1, D_MODEL), jnp.float32),
        ln1_b=jnp.zeros((1, D_MODEL), jnp.float32),
        # cross-attention
        ca_wq=_uniform(keys[4], (D_MODEL, hk), D_MODEL),
        ca_wk=_uniform(keys[5], (D_MODEL, hk), D_MODEL),
        ca_wv=_uniform(keys[6], (D_MODEL, hv), D_MODEL),
        ca_wo=_uniform(keys[7], (hv, D_MODEL), hv),
        ln2_g=jnp.ones((1, D_MODEL), jnp.float32),
        ln2_b=jnp.zeros((1, D_MODEL), jnp.float32),
        # feed-forward (with biases, as in nn.Linear defaults)
        ff_w1=_uniform(keys[8], (D_MODEL, D_FF), D_MODEL),
        ff_b1=_uniform(keys[9], (1, D_FF), D_MODEL),
        ff_w2=_uniform(keys[10], (D_FF, D_MODEL), D_FF),
        ff_b2=_uniform(keys[11], (1, D_MODEL), D_FF),
        ln3_g=jnp.ones((1, D_MODEL), jnp.float32),
        ln3_b=jnp.zeros((1, D_MODEL), jnp.float32),
    )


# --------------------------- main ------------------------------------------------

if __name__ == "__main__":
    B, S_DEC, S_ENC = 2, 8, 16

    root = jax.random.PRNGKey(0)
    k_in, k_ctx, k_params = jax.random.split(root, 3)

    inputs = jax.random.normal(k_in, (B, S_DEC, D_MODEL), jnp.float32)
    context = jax.random.normal(k_ctx, (B, S_ENC, D_MODEL), jnp.float32)

    block_keys = jax.random.split(k_params, N_BLOCKS)
    params_list = [init_decoder_block_params(k) for k in block_keys]

    packed = pack_decoder_params(params_list, B, S_DEC, S_ENC)   # one-time prep

    out = decoder_forward(inputs, context, packed)
    out = jax.block_until_ready(out)

    assert out.shape == (B, S_DEC, D_MODEL)
    assert bool(jnp.all(jnp.isfinite(out)))
    print("KERNEL_OK")
</pallas_src>

<mosaic_0001>
module attributes {stable_mosaic.version = 11 : i64} {
  func.func @_decoder_stack_kernel(%arg0: memref<16x32xf32, #tpu.memory_space<vmem>>, %arg1: memref<32x32xf32, #tpu.memory_space<vmem>>, %arg2: memref<2x16x32xf32, #tpu.memory_space<vmem>>, %arg3: memref<4x32x128xf32, #tpu.memory_space<vmem>>, %arg4: memref<4x32x128xf32, #tpu.memory_space<vmem>>, %arg5: memref<2x2x32x64xf32, #tpu.memory_space<vmem>>, %arg6: memref<2x8x64xf32, #tpu.memory_space<vmem>>, %arg7: memref<16x32xf32, #tpu.memory_space<vmem>>) attributes {dimension_semantics = [], scalar_prefetch = 0 : i64, scratch_operands = 0 : i64, tpu.core_type = #tpu.core_type<tc>} {
    %c0 = arith.constant 0 : index
    %c0_0 = arith.constant 0 : index
    %0 = vector.load %arg0[%c0, %c0_0] : memref<16x32xf32, #tpu.memory_space<vmem>>, vector<16x32xf32>
    %c0_1 = arith.constant 0 : index
    %c0_2 = arith.constant 0 : index
    %1 = vector.load %arg1[%c0_1, %c0_2] : memref<32x32xf32, #tpu.memory_space<vmem>>, vector<32x32xf32>
    %c0_3 = arith.constant 0 : index
    %c0_4 = arith.constant 0 : index
    %c0_5 = arith.constant 0 : index
    %2 = vector.load %arg2[%c0_3, %c0_4, %c0_5] : memref<2x16x32xf32, #tpu.memory_space<vmem>>, vector<1x16x16xf32>
    %3 = vector.shape_cast %2 : vector<1x16x16xf32> to vector<16x16xf32>
    %c1 = arith.constant 1 : index
    %c0_6 = arith.constant 0 : index
    %c0_7 = arith.constant 0 : index
    %4 = vector.load %arg2[%c1, %c0_6, %c0_7] : memref<2x16x32xf32, #tpu.memory_space<vmem>>, vector<1x16x32xf32>
    %5 = vector.shape_cast %4 : vector<1x16x32xf32> to vector<16x32xf32>
    %c0_8 = arith.constant 0 : index
    %c0_9 = arith.constant 0 : index
    %c0_10 = arith.constant 0 : index
    %6 = vector.load %arg6[%c0_8, %c0_9, %c0_10] : memref<2x8x64xf32, #tpu.memory_space<vmem>>, vector<1x8x64xf32>
    %7 = vector.shape_cast %6 : vector<1x8x64xf32> to vector<8x64xf32>
    %8 = vector.extract_strided_slice %7 {offsets = [0, 0], sizes = [1, 32], strides = [1, 1]} : vector<8x64xf32> to vector<1x32xf32>
    %9 = vector.extract_strided_slice %7 {offsets = [1, 0], sizes = [1, 32], strides = [1, 1]} : vector<8x64xf32> to vector<1x32xf32>
    %10 = vector.extract_strided_slice %7 {offsets = [2, 0], sizes = [1, 32], strides = [1, 1]} : vector<8x64xf32> to vector<1x32xf32>
    %11 = vector.extract_strided_slice %7 {offsets = [3, 0], sizes = [1, 32], strides = [1, 1]} : vector<8x64xf32> to vector<1x32xf32>
    %12 = vector.extract_strided_slice %7 {offsets = [4, 0], sizes = [1, 32], strides = [1, 1]} : vector<8x64xf32> to vector<1x32xf32>
    %13 = vector.extract_strided_slice %7 {offsets = [5, 0], sizes = [1, 32], strides = [1, 1]} : vector<8x64xf32> to vector<1x32xf32>
    %14 = vector.extract_strided_slice %7 {offsets = [6, 0], sizes = [1, 64], strides = [1, 1]} : vector<8x64xf32> to vector<1x64xf32>
    %15 = vector.extract_strided_slice %7 {offsets = [7, 0], sizes = [1, 32], strides = [1, 1]} : vector<8x64xf32> to vector<1x32xf32>
    %c0_11 = arith.constant 0 : index
    %c0_12 = arith.constant 0 : index
    %c0_13 = arith.constant 0 : index
    %16 = vector.load %arg3[%c0_11, %c0_12, %c0_13] : memref<4x32x128xf32, #tpu.memory_space<vmem>>, vector<1x32x128xf32>
    %17 = vector.shape_cast %16 : vector<1x32x128xf32> to vector<32x128xf32>
    %c0_14 = arith.constant 0 : index
    %c0_15 = arith.constant 0 : index
    %c0_16 = arith.constant 0 : index
    %18 = vector.load %arg4[%c0_14, %c0_15, %c0_16] : memref<4x32x128xf32, #tpu.memory_space<vmem>>, vector<1x32x128xf32>
    %19 = vector.shape_cast %18 : vector<1x32x128xf32> to vector<32x128xf32>
    %cst = arith.constant dense<0.000000e+00> : vector<16x128xf32>
    %20 = tpu.matmul %0, %17, %cst {dimension_numbers = #tpu.dot_dimension_numbers<[1], [0], [0], [1], [0, 0, 1, 1], [], []>} : vector<16x32xf32>, vector<32x128xf32>, vector<16x128xf32> -> vector<16x128xf32>
    %cst_17 = arith.constant dense<0.000000e+00> : vector<16x128xf32>
    %21 = tpu.matmul %0, %19, %cst_17 {dimension_numbers = #tpu.dot_dimension_numbers<[1], [0], [0], [1], [0, 0, 1, 1], [], []>} : vector<16x32xf32>, vector<32x128xf32>, vector<16x128xf32> -> vector<16x128xf32>
    %22 = vector.extract_strided_slice %20 {offsets = [0, 0], sizes = [16, 32], strides = [1, 1]} : vector<16x128xf32> to vector<16x32xf32>
    %cst_18 = arith.constant dense<0.000000e+00> : vector<16x16xf32>
    %23 = tpu.matmul %22, %0, %cst_18 {dimension_numbers = #tpu.dot_dimension_numbers<[1], [1], [0], [0], [0, 0, 1, 0], [], []>} : vector<16x32xf32>, vector<16x32xf32>, vector<16x16xf32> -> vector<16x16xf32>
    %24 = arith.addf %23, %3 : vector<16x16xf32>
    %cst_19 = arith.constant dense<0xFF800000> : vector<16xf32>
    %25 = vector.multi_reduction <maximumf>, %24, %cst_19 [1] : vector<16x16xf32> to vector<16xf32>
    %26 = vector.shape_cast %25 : vector<16xf32> to vector<16x1xf32>
    %27 = vector.broadcast %26 : vector<16x1xf32> to vector<16x16xf32>
    %28 = arith.subf %24, %27 : vector<16x16xf32>
    %29 = math.exp %28 : vector<16x16xf32>
    %cst_20 = arith.constant dense<0.000000e+00> : vector<16xf32>
    %30 = vector.multi_reduction <add>, %29, %cst_20 [1] : vector<16x16xf32> to vector<16xf32>
    %31 = vector.shape_cast %30 : vector<16xf32> to vector<16x1xf32>
    %32 = tpu.reciprocal %31 {approx = true} : vector<16x1xf32> -> vector<16x1xf32>
    %33 = vector.broadcast %32 : vector<16x1xf32> to vector<16x16xf32>
    %34 = arith.mulf %29, %33 : vector<16x16xf32>
    %35 = vector.extract_strided_slice %21 {offsets = [0, 0], sizes = [16, 32], strides = [1, 1]} : vector<16x128xf32> to vector<16x32xf32>
    %cst_21 = arith.constant dense<0.000000e+00> : vector<16x32xf32>
    %36 = tpu.matmul %34, %35, %cst_21 {dimension_numbers = #tpu.dot_dimension_numbers<[1], [0], [0], [1], [0, 0, 1, 1], [], []>} : vector<16x16xf32>, vector<16x32xf32>, vector<16x32xf32> -> vector<16x32xf32>
    %37 = vector.extract_strided_slice %20 {offsets = [0, 32], sizes = [16, 32], strides = [1, 1]} : vector<16x128xf32> to vector<16x32xf32>
    %cst_22 = arith.constant dense<0.000000e+00> : vector<16x16xf32>
    %38 = tpu.matmul %37, %0, %cst_22 {dimension_numbers = #tpu.dot_dimension_numbers<[1], [1], [0], [0], [0, 0, 1, 0], [], []>} : vector<16x32xf32>, vector<16x32xf32>, vector<16x16xf32> -> vector<16x16xf32>
    %39 = arith.addf %38, %3 : vector<16x16xf32>
    %cst_23 = arith.constant dense<0xFF800000> : vector<16xf32>
    %40 = vector.multi_reduction <maximumf>, %39, %cst_23 [1] : vector<16x16xf32> to vector<16xf32>
    %41 = vector.shape_cast %40 : vector<16xf32> to vector<16x1xf32>
    %42 = vector.broadcast %41 : vector<16x1xf32> to vector<16x16xf32>
    %43 = arith.subf %39, %42 : vector<16x16xf32>
    %44 = math.exp %43 : vector<16x16xf32>
    %cst_24 = arith.constant dense<0.000000e+00> : vector<16xf32>
    %45 = vector.multi_reduction <add>, %44, %cst_24 [1] : vector<16x16xf32> to vector<16xf32>
    %46 = vector.shape_cast %45 : vector<16xf32> to vector<16x1xf32>
    %47 = tpu.reciprocal %46 {approx = true} : vector<16x1xf32> -> vector<16x1xf32>
    %48 = vector.broadcast %47 : vector<16x1xf32> to vector<16x16xf32>
    %49 = arith.mulf %44, %48 : vector<16x16xf32>
    %50 = vector.extract_strided_slice %21 {offsets = [0, 32], sizes = [16, 32], strides = [1, 1]} : vector<16x128xf32> to vector<16x32xf32>
    %cst_25 = arith.constant dense<0.000000e+00> : vector<16x32xf32>
    %51 = tpu.matmul %49, %50, %cst_25 {dimension_numbers = #tpu.dot_dimension_numbers<[1], [0], [0], [1], [0, 0, 1, 1], [], []>} : vector<16x16xf32>, vector<16x32xf32>, vector<16x32xf32> -> vector<16x32xf32>
    %52 = arith.addf %36, %51 : vector<16x32xf32>
    %53 = vector.extract_strided_slice %20 {offsets = [0, 64], sizes = [16, 32], strides = [1, 1]} : vector<16x128xf32> to vector<16x32xf32>
    %cst_26 = arith.constant dense<0.000000e+00> : vector<16x16xf32>
    %54 = tpu.matmul %53, %0, %cst_26 {dimension_numbers = #tpu.dot_dimension_numbers<[1], [1], [0], [0], [0, 0, 1, 0], [], []>} : vector<16x32xf32>, vector<16x32xf32>, vector<16x16xf32> -> vector<16x16xf32>
    %55 = arith.addf %54, %3 : vector<16x16xf32>
    %cst_27 = arith.constant dense<0xFF800000> : vector<16xf32>
    %56 = vector.multi_reduction <maximumf>, %55, %cst_27 [1] : vector<16x16xf32> to vector<16xf32>
    %57 = vector.shape_cast %56 : vector<16xf32> to vector<16x1xf32>
    %58 = vector.broadcast %57 : vector<16x1xf32> to vector<16x16xf32>
    %59 = arith.subf %55, %58 : vector<16x16xf32>
    %60 = math.exp %59 : vector<16x16xf32>
    %cst_28 = arith.constant dense<0.000000e+00> : vector<16xf32>
    %61 = vector.multi_reduction <add>, %60, %cst_28 [1] : vector<16x16xf32> to vector<16xf32>
    %62 = vector.shape_cast %61 : vector<16xf32> to vector<16x1xf32>
    %63 = tpu.reciprocal %62 {approx = true} : vector<16x1xf32> -> vector<16x1xf32>
    %64 = vector.broadcast %63 : vector<16x1xf32> to vector<16x16xf32>
    %65 = arith.mulf %60, %64 : vector<16x16xf32>
    %66 = vector.extract_strided_slice %21 {offsets = [0, 64], sizes = [16, 32], strides = [1, 1]} : vector<16x128xf32> to vector<16x32xf32>
    %cst_29 = arith.constant dense<0.000000e+00> : vector<16x32xf32>
    %67 = tpu.matmul %65, %66, %cst_29 {dimension_numbers = #tpu.dot_dimension_numbers<[1], [0], [0], [1], [0, 0, 1, 1], [], []>} : vector<16x16xf32>, vector<16x32xf32>, vector<16x32xf32> -> vector<16x32xf32>
    %68 = arith.addf %52, %67 : vector<16x32xf32>
    %69 = vector.extract_strided_slice %20 {offsets = [0, 96], sizes = [16, 32], strides = [1, 1]} : vector<16x128xf32> to vector<16x32xf32>
    %cst_30 = arith.constant dense<0.000000e+00> : vector<16x16xf32>
    %70 = tpu.matmul %69, %0, %cst_30 {dimension_numbers = #tpu.dot_dimension_numbers<[1], [1], [0], [0], [0, 0, 1, 0], [], []>} : vector<16x32xf32>, vector<16x32xf32>, vector<16x16xf32> -> vector<16x16xf32>
    %71 = arith.addf %70, %3 : vector<16x16xf32>
    %cst_31 = arith.constant dense<0xFF800000> : vector<16xf32>
    %72 = vector.multi_reduction <maximumf>, %71, %cst_31 [1] : vector<16x16xf32> to vector<16xf32>
    %73 = vector.shape_cast %72 : vector<16xf32> to vector<16x1xf32>
    %74 = vector.broadcast %73 : vector<16x1xf32> to vector<16x16xf32>
    %75 = arith.subf %71, %74 : vector<16x16xf32>
    %76 = math.exp %75 : vector<16x16xf32>
    %cst_32 = arith.constant dense<0.000000e+00> : vector<16xf32>
    %77 = vector.multi_reduction <add>, %76, %cst_32 [1] : vector<16x16xf32> to vector<16xf32>
    %78 = vector.shape_cast %77 : vector<16xf32> to vector<16x1xf32>
    %79 = tpu.reciprocal %78 {approx = true} : vector<16x1xf32> -> vector<16x1xf32>
    %80 = vector.broadcast %79 : vector<16x1xf32> to vector<16x16xf32>
    %81 = arith.mulf %76, %80 : vector<16x16xf32>
    %82 = vector.extract_strided_slice %21 {offsets = [0, 96], sizes = [16, 32], strides = [1, 1]} : vector<16x128xf32> to vector<16x32xf32>
    %cst_33 = arith.constant dense<0.000000e+00> : vector<16x32xf32>
    %83 = tpu.matmul %81, %82, %cst_33 {dimension_numbers = #tpu.dot_dimension_numbers<[1], [0], [0], [1], [0, 0, 1, 1], [], []>} : vector<16x16xf32>, vector<16x32xf32>, vector<16x32xf32> -> vector<16x32xf32>
    %84 = arith.addf %68, %83 : vector<16x32xf32>
    %85 = arith.addf %0, %84 : vector<16x32xf32>
    %cst_34 = arith.constant dense<0.000000e+00> : vector<16xf32>
    %86 = vector.multi_reduction <add>, %85, %cst_34 [1] : vector<16x32xf32> to vector<16xf32>
    %87 = vector.shape_cast %86 : vector<16xf32> to vector<16x1xf32>
    %cst_35 = arith.constant 3.200000e+01 : f32
    %88 = vector.broadcast %cst_35 : f32 to vector<16x1xf32>
    %89 = arith.divf %87, %88 : vector<16x1xf32>
    %90 = vector.broadcast %89 : vector<16x1xf32> to vector<16x32xf32>
    %91 = arith.subf %85, %90 : vector<16x32xf32>
    %92 = arith.mulf %91, %91 : vector<16x32xf32>
    %cst_36 = arith.constant dense<0.000000e+00> : vector<16xf32>
    %93 = vector.multi_reduction <add>, %92, %cst_36 [1] : vector<16x32xf32> to vector<16xf32>
    %94 = vector.shape_cast %93 : vector<16xf32> to vector<16x1xf32>
    %cst_37 = arith.constant 3.200000e+01 : f32
    %95 = vector.broadcast %cst_37 : f32 to vector<16x1xf32>
    %96 = arith.divf %94, %95 : vector<16x1xf32>
    %cst_38 = arith.constant 9.99999974E-6 : f32
    %97 = vector.broadcast %cst_38 : f32 to vector<16x1xf32>
    %98 = arith.addf %96, %97 : vector<16x1xf32>
    %99 = math.rsqrt %98 : vector<16x1xf32>
    %100 = vector.broadcast %99 : vector<16x1xf32> to vector<16x32xf32>
    %101 = arith.mulf %91, %100 : vector<16x32xf32>
    %102 = vector.broadcast %8 : vector<1x32xf32> to vector<16x32xf32>
    %103 = arith.mulf %101, %102 : vector<16x32xf32>
    %104 = vector.broadcast %9 : vector<1x32xf32> to vector<16x32xf32>
    %105 = arith.addf %103, %104 : vector<16x32xf32>
    %c1_39 = arith.constant 1 : index
    %c0_40 = arith.constant 0 : index
    %c0_41 = arith.constant 0 : index
    %106 = vector.load %arg3[%c1_39, %c0_40, %c0_41] : memref<4x32x128xf32, #tpu.memory_space<vmem>>, vector<1x32x128xf32>
    %107 = vector.shape_cast %106 : vector<1x32x128xf32> to vector<32x128xf32>
    %c1_42 = arith.constant 1 : index
    %c0_43 = arith.constant 0 : index
    %c0_44 = arith.constant 0 : index
    %108 = vector.load %arg4[%c1_42, %c0_43, %c0_44] : memref<4x32x128xf32, #tpu.memory_space<vmem>>, vector<1x32x128xf32>
    %109 = vector.shape_cast %108 : vector<1x32x128xf32> to vector<32x128xf32>
    %cst_45 = arith.constant dense<0.000000e+00> : vector<16x128xf32>
    %110 = tpu.matmul %105, %107, %cst_45 {dimension_numbers = #tpu.dot_dimension_numbers<[1], [0], [0], [1], [0, 0, 1, 1], [], []>} : vector<16x32xf32>, vector<32x128xf32>, vector<16x128xf32> -> vector<16x128xf32>
    %cst_46 = arith.constant dense<0.000000e+00> : vector<32x128xf32>
    %111 = tpu.matmul %1, %109, %cst_46 {dimension_numbers = #tpu.dot_dimension_numbers<[1], [0], [0], [1], [0, 0, 1, 1], [], []>} : vector<32x32xf32>, vector<32x128xf32>, vector<32x128xf32> -> vector<32x128xf32>
    %112 = vector.extract_strided_slice %110 {offsets = [0, 0], sizes = [16, 32], strides = [1, 1]} : vector<16x128xf32> to vector<16x32xf32>
    %cst_47 = arith.constant dense<0.000000e+00> : vector<16x32xf32>
    %113 = tpu.matmul %112, %1, %cst_47 {dimension_numbers = #tpu.dot_dimension_numbers<[1], [1], [0], [0], [0, 0, 1, 0], [], []>} : vector<16x32xf32>, vector<32x32xf32>, vector<16x32xf32> -> vector<16x32xf32>
    %114 = arith.addf %113, %5 : vector<16x32xf32>
    %cst_48 = arith.constant dense<0xFF800000> : vector<16xf32>
    %115 = vector.multi_reduction <maximumf>, %114, %cst_48 [1] : vector<16x32xf32> to vector<16xf32>
    %116 = vector.shape_cast %115 : vector<16xf32> to vector<16x1xf32>
    %117 = vector.broadcast %116 : vector<16x1xf32> to vector<16x32xf32>
    %118 = arith.subf %114, %117 : vector<16x32xf32>
    %119 = math.exp %118 : vector<16x32xf32>
    %cst_49 = arith.constant dense<0.000000e+00> : vector<16xf32>
    %120 = vector.multi_reduction <add>, %119, %cst_49 [1] : vector<16x32xf32> to vector<16xf32>
    %121 = vector.shape_cast %120 : vector<16xf32> to vector<16x1xf32>
    %122 = tpu.reciprocal %121 {approx = true} : vector<16x1xf32> -> vector<16x1xf32>
    %123 = vector.broadcast %122 : vector<16x1xf32> to vector<16x32xf32>
    %124 = arith.mulf %119, %123 : vector<16x32xf32>
    %125 = vector.extract_strided_slice %111 {offsets = [0, 0], sizes = [32, 32], strides = [1, 1]} : vector<32x128xf32> to vector<32x32xf32>
    %cst_50 = arith.constant dense<0.000000e+00> : vector<16x32xf32>
    %126 = tpu.matmul %124, %125, %cst_50 {dimension_numbers = #tpu.dot_dimension_numbers<[1], [0], [0], [1], [0, 0, 1, 1], [], []>} : vector<16x32xf32>, vector<32x32xf32>, vector<16x32xf32> -> vector<16x32xf32>
    %127 = vector.extract_strided_slice %110 {offsets = [0, 32], sizes = [16, 32], strides = [1, 1]} : vector<16x128xf32> to vector<16x32xf32>
    %cst_51 = arith.constant dense<0.000000e+00> : vector<16x32xf32>
    %128 = tpu.matmul %127, %1, %cst_51 {dimension_numbers = #tpu.dot_dimension_numbers<[1], [1], [0], [0], [0, 0, 1, 0], [], []>} : vector<16x32xf32>, vector<32x32xf32>, vector<16x32xf32> -> vector<16x32xf32>
    %129 = arith.addf %128, %5 : vector<16x32xf32>
    %cst_52 = arith.constant dense<0xFF800000> : vector<16xf32>
    %130 = vector.multi_reduction <maximumf>, %129, %cst_52 [1] : vector<16x32xf32> to vector<16xf32>
    %131 = vector.shape_cast %130 : vector<16xf32> to vector<16x1xf32>
    %132 = vector.broadcast %131 : vector<16x1xf32> to vector<16x32xf32>
    %133 = arith.subf %129, %132 : vector<16x32xf32>
    %134 = math.exp %133 : vector<16x32xf32>
    %cst_53 = arith.constant dense<0.000000e+00> : vector<16xf32>
    %135 = vector.multi_reduction <add>, %134, %cst_53 [1] : vector<16x32xf32> to vector<16xf32>
    %136 = vector.shape_cast %135 : vector<16xf32> to vector<16x1xf32>
    %137 = tpu.reciprocal %136 {approx = true} : vector<16x1xf32> -> vector<16x1xf32>
    %138 = vector.broadcast %137 : vector<16x1xf32> to vector<16x32xf32>
    %139 = arith.mulf %134, %138 : vector<16x32xf32>
    %140 = vector.extract_strided_slice %111 {offsets = [0, 32], sizes = [32, 32], strides = [1, 1]} : vector<32x128xf32> to vector<32x32xf32>
    %cst_54 = arith.constant dense<0.000000e+00> : vector<16x32xf32>
    %141 = tpu.matmul %139, %140, %cst_54 {dimension_numbers = #tpu.dot_dimension_numbers<[1], [0], [0], [1], [0, 0, 1, 1], [], []>} : vector<16x32xf32>, vector<32x32xf32>, vector<16x32xf32> -> vector<16x32xf32>
    %142 = arith.addf %126, %141 : vector<16x32xf32>
    %143 = vector.extract_strided_slice %110 {offsets = [0, 64], sizes = [16, 32], strides = [1, 1]} : vector<16x128xf32> to vector<16x32xf32>
    %cst_55 = arith.constant dense<0.000000e+00> : vector<16x32xf32>
    %144 = tpu.matmul %143, %1, %cst_55 {dimension_numbers = #tpu.dot_dimension_numbers<[1], [1], [0], [0], [0, 0, 1, 0], [], []>} : vector<16x32xf32>, vector<32x32xf32>, vector<16x32xf32> -> vector<16x32xf32>
    %145 = arith.addf %144, %5 : vector<16x32xf32>
    %cst_56 = arith.constant dense<0xFF800000> : vector<16xf32>
    %146 = vector.multi_reduction <maximumf>, %145, %cst_56 [1] : vector<16x32xf32> to vector<16xf32>
    %147 = vector.shape_cast %146 : vector<16xf32> to vector<16x1xf32>
    %148 = vector.broadcast %147 : vector<16x1xf32> to vector<16x32xf32>
    %149 = arith.subf %145, %148 : vector<16x32xf32>
    %150 = math.exp %149 : vector<16x32xf32>
    %cst_57 = arith.constant dense<0.000000e+00> : vector<16xf32>
    %151 = vector.multi_reduction <add>, %150, %cst_57 [1] : vector<16x32xf32> to vector<16xf32>
    %152 = vector.shape_cast %151 : vector<16xf32> to vector<16x1xf32>
    %153 = tpu.reciprocal %152 {approx = true} : vector<16x1xf32> -> vector<16x1xf32>
    %154 = vector.broadcast %153 : vector<16x1xf32> to vector<16x32xf32>
    %155 = arith.mulf %150, %154 : vector<16x32xf32>
    %156 = vector.extract_strided_slice %111 {offsets = [0, 64], sizes = [32, 32], strides = [1, 1]} : vector<32x128xf32> to vector<32x32xf32>
    %cst_58 = arith.constant dense<0.000000e+00> : vector<16x32xf32>
    %157 = tpu.matmul %155, %156, %cst_58 {dimension_numbers = #tpu.dot_dimension_numbers<[1], [0], [0], [1], [0, 0, 1, 1], [], []>} : vector<16x32xf32>, vector<32x32xf32>, vector<16x32xf32> -> vector<16x32xf32>
    %158 = arith.addf %142, %157 : vector<16x32xf32>
    %159 = vector.extract_strided_slice %110 {offsets = [0, 96], sizes = [16, 32], strides = [1, 1]} : vector<16x128xf32> to vector<16x32xf32>
    %cst_59 = arith.constant dense<0.000000e+00> : vector<16x32xf32>
    %160 = tpu.matmul %159, %1, %cst_59 {dimension_numbers = #tpu.dot_dimension_numbers<[1], [1], [0], [0], [0, 0, 1, 0], [], []>} : vector<16x32xf32>, vector<32x32xf32>, vector<16x32xf32> -> vector<16x32xf32>
    %161 = arith.addf %160, %5 : vector<16x32xf32>
    %cst_60 = arith.constant dense<0xFF800000> : vector<16xf32>
    %162 = vector.multi_reduction <maximumf>, %161, %cst_60 [1] : vector<16x32xf32> to vector<16xf32>
    %163 = vector.shape_cast %162 : vector<16xf32> to vector<16x1xf32>
    %164 = vector.broadcast %163 : vector<16x1xf32> to vector<16x32xf32>
    %165 = arith.subf %161, %164 : vector<16x32xf32>
    %166 = math.exp %165 : vector<16x32xf32>
    %cst_61 = arith.constant dense<0.000000e+00> : vector<16xf32>
    %167 = vector.multi_reduction <add>, %166, %cst_61 [1] : vector<16x32xf32> to vector<16xf32>
    %168 = vector.shape_cast %167 : vector<16xf32> to vector<16x1xf32>
    %169 = tpu.reciprocal %168 {approx = true} : vector<16x1xf32> -> vector<16x1xf32>
    %170 = vector.broadcast %169 : vector<16x1xf32> to vector<16x32xf32>
    %171 = arith.mulf %166, %170 : vector<16x32xf32>
    %172 = vector.extract_strided_slice %111 {offsets = [0, 96], sizes = [32, 32], strides = [1, 1]} : vector<32x128xf32> to vector<32x32xf32>
    %cst_62 = arith.constant dense<0.000000e+00> : vector<16x32xf32>
    %173 = tpu.matmul %171, %172, %cst_62 {dimension_numbers = #tpu.dot_dimension_numbers<[1], [0], [0], [1], [0, 0, 1, 1], [], []>} : vector<16x32xf32>, vector<32x32xf32>, vector<16x32xf32> -> vector<16x32xf32>
    %174 = arith.addf %158, %173 : vector<16x32xf32>
    %175 = arith.addf %105, %174 : vector<16x32xf32>
    %cst_63 = arith.constant dense<0.000000e+00> : vector<16xf32>
    %176 = vector.multi_reduction <add>, %175, %cst_63 [1] : vector<16x32xf32> to vector<16xf32>
    %177 = vector.shape_cast %176 : vector<16xf32> to vector<16x1xf32>
    %cst_64 = arith.constant 3.200000e+01 : f32
    %178 = vector.broadcast %cst_64 : f32 to vector<16x1xf32>
    %179 = arith.divf %177, %178 : vector<16x1xf32>
    %180 = vector.broadcast %179 : vector<16x1xf32> to vector<16x32xf32>
    %181 = arith.subf %175, %180 : vector<16x32xf32>
    %182 = arith.mulf %181, %181 : vector<16x32xf32>
    %cst_65 = arith.constant dense<0.000000e+00> : vector<16xf32>
    %183 = vector.multi_reduction <add>, %182, %cst_65 [1] : vector<16x32xf32> to vector<16xf32>
    %184 = vector.shape_cast %183 : vector<16xf32> to vector<16x1xf32>
    %cst_66 = arith.constant 3.200000e+01 : f32
    %185 = vector.broadcast %cst_66 : f32 to vector<16x1xf32>
    %186 = arith.divf %184, %185 : vector<16x1xf32>
    %cst_67 = arith.constant 9.99999974E-6 : f32
    %187 = vector.broadcast %cst_67 : f32 to vector<16x1xf32>
    %188 = arith.addf %186, %187 : vector<16x1xf32>
    %189 = math.rsqrt %188 : vector<16x1xf32>
    %190 = vector.broadcast %189 : vector<16x1xf32> to vector<16x32xf32>
    %191 = arith.mulf %181, %190 : vector<16x32xf32>
    %192 = vector.broadcast %10 : vector<1x32xf32> to vector<16x32xf32>
    %193 = arith.mulf %191, %192 : vector<16x32xf32>
    %194 = vector.broadcast %11 : vector<1x32xf32> to vector<16x32xf32>
    %195 = arith.addf %193, %194 : vector<16x32xf32>
    %c0_68 = arith.constant 0 : index
    %c0_69 = arith.constant 0 : index
    %c0_70 = arith.constant 0 : index
    %c0_71 = arith.constant 0 : index
    %196 = vector.load %arg5[%c0_68, %c0_69, %c0_70, %c0_71] : memref<2x2x32x64xf32, #tpu.memory_space<vmem>>, vector<1x1x32x64xf32>
    %197 = vector.shape_cast %196 : vector<1x1x32x64xf32> to vector<32x64xf32>
    %cst_72 = arith.constant dense<0.000000e+00> : vector<16x64xf32>
    %198 = tpu.matmul %195, %197, %cst_72 {dimension_numbers = #tpu.dot_dimension_numbers<[1], [0], [0], [1], [0, 0, 1, 1], [], []>} : vector<16x32xf32>, vector<32x64xf32>, vector<16x64xf32> -> vector<16x64xf32>
    %199 = vector.broadcast %14 : vector<1x64xf32> to vector<16x64xf32>
    %200 = arith.addf %198, %199 : vector<16x64xf32>
    %cst_73 = arith.constant 0.000000e+00 : f32
    %201 = vector.broadcast %cst_73 : f32 to vector<16x64xf32>
    %202 = arith.maximumf %200, %201 : vector<16x64xf32>
    %c0_74 = arith.constant 0 : index
    %c1_75 = arith.constant 1 : index
    %c0_76 = arith.constant 0 : index
    %c0_77 = arith.constant 0 : index
    %203 = vector.load %arg5[%c0_74, %c1_75, %c0_76, %c0_77] : memref<2x2x32x64xf32, #tpu.memory_space<vmem>>, vector<1x1x32x64xf32>
    %204 = vector.shape_cast %203 : vector<1x1x32x64xf32> to vector<32x64xf32>
    %cst_78 = arith.constant dense<0.000000e+00> : vector<16x32xf32>
    %205 = tpu.matmul %202, %204, %cst_78 {dimension_numbers = #tpu.dot_dimension_numbers<[1], [1], [0], [0], [0, 0, 1, 0], [], []>} : vector<16x64xf32>, vector<32x64xf32>, vector<16x32xf32> -> vector<16x32xf32>
    %206 = vector.broadcast %15 : vector<1x32xf32> to vector<16x32xf32>
    %207 = arith.addf %205, %206 : vector<16x32xf32>
    %208 = arith.addf %195, %207 : vector<16x32xf32>
    %cst_79 = arith.constant dense<0.000000e+00> : vector<16xf32>
    %209 = vector.multi_reduction <add>, %208, %cst_79 [1] : vector<16x32xf32> to vector<16xf32>
    %210 = vector.shape_cast %209 : vector<16xf32> to vector<16x1xf32>
    %cst_80 = arith.constant 3.200000e+01 : f32
    %211 = vector.broadcast %cst_80 : f32 to vector<16x1xf32>
    %212 = arith.divf %210, %211 : vector<16x1xf32>
    %213 = vector.broadcast %212 : vector<16x1xf32> to vector<16x32xf32>
    %214 = arith.subf %208, %213 : vector<16x32xf32>
    %215 = arith.mulf %214, %214 : vector<16x32xf32>
    %cst_81 = arith.constant dense<0.000000e+00> : vector<16xf32>
    %216 = vector.multi_reduction <add>, %215, %cst_81 [1] : vector<16x32xf32> to vector<16xf32>
    %217 = vector.shape_cast %216 : vector<16xf32> to vector<16x1xf32>
    %cst_82 = arith.constant 3.200000e+01 : f32
    %218 = vector.broadcast %cst_82 : f32 to vector<16x1xf32>
    %219 = arith.divf %217, %218 : vector<16x1xf32>
    %cst_83 = arith.constant 9.99999974E-6 : f32
    %220 = vector.broadcast %cst_83 : f32 to vector<16x1xf32>
    %221 = arith.addf %219, %220 : vector<16x1xf32>
    %222 = math.rsqrt %221 : vector<16x1xf32>
    %223 = vector.broadcast %222 : vector<16x1xf32> to vector<16x32xf32>
    %224 = arith.mulf %214, %223 : vector<16x32xf32>
    %225 = vector.broadcast %12 : vector<1x32xf32> to vector<16x32xf32>
    %226 = arith.mulf %224, %225 : vector<16x32xf32>
    %227 = vector.broadcast %13 : vector<1x32xf32> to vector<16x32xf32>
    %228 = arith.addf %226, %227 : vector<16x32xf32>
    %c1_84 = arith.constant 1 : index
    %c0_85 = arith.constant 0 : index
    %c0_86 = arith.constant 0 : index
    %229 = vector.load %arg6[%c1_84, %c0_85, %c0_86] : memref<2x8x64xf32, #tpu.memory_space<vmem>>, vector<1x8x64xf32>
    %230 = vector.shape_cast %229 : vector<1x8x64xf32> to vector<8x64xf32>
    %231 = vector.extract_strided_slice %230 {offsets = [0, 0], sizes = [1, 32], strides = [1, 1]} : vector<8x64xf32> to vector<1x32xf32>
    %232 = vector.extract_strided_slice %230 {offsets = [1, 0], sizes = [1, 32], strides = [1, 1]} : vector<8x64xf32> to vector<1x32xf32>
    %233 = vector.extract_strided_slice %230 {offsets = [2, 0], sizes = [1, 32], strides = [1, 1]} : vector<8x64xf32> to vector<1x32xf32>
    %234 = vector.extract_strided_slice %230 {offsets = [3, 0], sizes = [1, 32], strides = [1, 1]} : vector<8x64xf32> to vector<1x32xf32>
    %235 = vector.extract_strided_slice %230 {offsets = [4, 0], sizes = [1, 32], strides = [1, 1]} : vector<8x64xf32> to vector<1x32xf32>
    %236 = vector.extract_strided_slice %230 {offsets = [5, 0], sizes = [1, 32], strides = [1, 1]} : vector<8x64xf32> to vector<1x32xf32>
    %237 = vector.extract_strided_slice %230 {offsets = [6, 0], sizes = [1, 64], strides = [1, 1]} : vector<8x64xf32> to vector<1x64xf32>
    %238 = vector.extract_strided_slice %230 {offsets = [7, 0], sizes = [1, 32], strides = [1, 1]} : vector<8x64xf32> to vector<1x32xf32>
    %c2 = arith.constant 2 : index
    %c0_87 = arith.constant 0 : index
    %c0_88 = arith.constant 0 : index
    %239 = vector.load %arg3[%c2, %c0_87, %c0_88] : memref<4x32x128xf32, #tpu.memory_space<vmem>>, vector<1x32x128xf32>
    %240 = vector.shape_cast %239 : vector<1x32x128xf32> to vector<32x128xf32>
    %c2_89 = arith.constant 2 : index
    %c0_90 = arith.constant 0 : index
    %c0_91 = arith.constant 0 : index
    %241 = vector.load %arg4[%c2_89, %c0_90, %c0_91] : memref<4x32x128xf32, #tpu.memory_space<vmem>>, vector<1x32x128xf32>
    %242 = vector.shape_cast %241 : vector<1x32x128xf32> to vector<32x128xf32>
    %cst_92 = arith.constant dense<0.000000e+00> : vector<16x128xf32>
    %243 = tpu.matmul %228, %240, %cst_92 {dimension_numbers = #tpu.dot_dimension_numbers<[1], [0], [0], [1], [0, 0, 1, 1], [], []>} : vector<16x32xf32>, vector<32x128xf32>, vector<16x128xf32> -> vector<16x128xf32>
    %cst_93 = arith.constant dense<0.000000e+00> : vector<16x128xf32>
    %244 = tpu.matmul %228, %242, %cst_93 {dimension_numbers = #tpu.dot_dimension_numbers<[1], [0], [0], [1], [0, 0, 1, 1], [], []>} : vector<16x32xf32>, vector<32x128xf32>, vector<16x128xf32> -> vector<16x128xf32>
    %245 = vector.extract_strided_slice %243 {offsets = [0, 0], sizes = [16, 32], strides = [1, 1]} : vector<16x128xf32> to vector<16x32xf32>
    %cst_94 = arith.constant dense<0.000000e+00> : vector<16x16xf32>
    %246 = tpu.matmul %245, %228, %cst_94 {dimension_numbers = #tpu.dot_dimension_numbers<[1], [1], [0], [0], [0, 0, 1, 0], [], []>} : vector<16x32xf32>, vector<16x32xf32>, vector<16x16xf32> -> vector<16x16xf32>
    %247 = arith.addf %246, %3 : vector<16x16xf32>
    %cst_95 = arith.constant dense<0xFF800000> : vector<16xf32>
    %248 = vector.multi_reduction <maximumf>, %247, %cst_95 [1] : vector<16x16xf32> to vector<16xf32>
    %249 = vector.shape_cast %248 : vector<16xf32> to vector<16x1xf32>
    %250 = vector.broadcast %249 : vector<16x1xf32> to vector<16x16xf32>
    %251 = arith.subf %247, %250 : vector<16x16xf32>
    %252 = math.exp %251 : vector<16x16xf32>
    %cst_96 = arith.constant dense<0.000000e+00> : vector<16xf32>
    %253 = vector.multi_reduction <add>, %252, %cst_96 [1] : vector<16x16xf32> to vector<16xf32>
    %254 = vector.shape_cast %253 : vector<16xf32> to vector<16x1xf32>
    %255 = tpu.reciprocal %254 {approx = true} : vector<16x1xf32> -> vector<16x1xf32>
    %256 = vector.broadcast %255 : vector<16x1xf32> to vector<16x16xf32>
    %257 = arith.mulf %252, %256 : vector<16x16xf32>
    %258 = vector.extract_strided_slice %244 {offsets = [0, 0], sizes = [16, 32], strides = [1, 1]} : vector<16x128xf32> to vector<16x32xf32>
    %cst_97 = arith.constant dense<0.000000e+00> : vector<16x32xf32>
    %259 = tpu.matmul %257, %258, %cst_97 {dimension_numbers = #tpu.dot_dimension_numbers<[1], [0], [0], [1], [0, 0, 1, 1], [], []>} : vector<16x16xf32>, vector<16x32xf32>, vector<16x32xf32> -> vector<16x32xf32>
    %260 = vector.extract_strided_slice %243 {offsets = [0, 32], sizes = [16, 32], strides = [1, 1]} : vector<16x128xf32> to vector<16x32xf32>
    %cst_98 = arith.constant dense<0.000000e+00> : vector<16x16xf32>
    %261 = tpu.matmul %260, %228, %cst_98 {dimension_numbers = #tpu.dot_dimension_numbers<[1], [1], [0], [0], [0, 0, 1, 0], [], []>} : vector<16x32xf32>, vector<16x32xf32>, vector<16x16xf32> -> vector<16x16xf32>
    %262 = arith.addf %261, %3 : vector<16x16xf32>
    %cst_99 = arith.constant dense<0xFF800000> : vector<16xf32>
    %263 = vector.multi_reduction <maximumf>, %262, %cst_99 [1] : vector<16x16xf32> to vector<16xf32>
    %264 = vector.shape_cast %263 : vector<16xf32> to vector<16x1xf32>
    %265 = vector.broadcast %264 : vector<16x1xf32> to vector<16x16xf32>
    %266 = arith.subf %262, %265 : vector<16x16xf32>
    %267 = math.exp %266 : vector<16x16xf32>
    %cst_100 = arith.constant dense<0.000000e+00> : vector<16xf32>
    %268 = vector.multi_reduction <add>, %267, %cst_100 [1] : vector<16x16xf32> to vector<16xf32>
    %269 = vector.shape_cast %268 : vector<16xf32> to vector<16x1xf32>
    %270 = tpu.reciprocal %269 {approx = true} : vector<16x1xf32> -> vector<16x1xf32>
    %271 = vector.broadcast %270 : vector<16x1xf32> to vector<16x16xf32>
    %272 = arith.mulf %267, %271 : vector<16x16xf32>
    %273 = vector.extract_strided_slice %244 {offsets = [0, 32], sizes = [16, 32], strides = [1, 1]} : vector<16x128xf32> to vector<16x32xf32>
    %cst_101 = arith.constant dense<0.000000e+00> : vector<16x32xf32>
    %274 = tpu.matmul %272, %273, %cst_101 {dimension_numbers = #tpu.dot_dimension_numbers<[1], [0], [0], [1], [0, 0, 1, 1], [], []>} : vector<16x16xf32>, vector<16x32xf32>, vector<16x32xf32> -> vector<16x32xf32>
    %275 = arith.addf %259, %274 : vector<16x32xf32>
    %276 = vector.extract_strided_slice %243 {offsets = [0, 64], sizes = [16, 32], strides = [1, 1]} : vector<16x128xf32> to vector<16x32xf32>
    %cst_102 = arith.constant dense<0.000000e+00> : vector<16x16xf32>
    %277 = tpu.matmul %276, %228, %cst_102 {dimension_numbers = #tpu.dot_dimension_numbers<[1], [1], [0], [0], [0, 0, 1, 0], [], []>} : vector<16x32xf32>, vector<16x32xf32>, vector<16x16xf32> -> vector<16x16xf32>
    %278 = arith.addf %277, %3 : vector<16x16xf32>
    %cst_103 = arith.constant dense<0xFF800000> : vector<16xf32>
    %279 = vector.multi_reduction <maximumf>, %278, %cst_103 [1] : vector<16x16xf32> to vector<16xf32>
    %280 = vector.shape_cast %279 : vector<16xf32> to vector<16x1xf32>
    %281 = vector.broadcast %280 : vector<16x1xf32> to vector<16x16xf32>
    %282 = arith.subf %278, %281 : vector<16x16xf32>
    %283 = math.exp %282 : vector<16x16xf32>
    %cst_104 = arith.constant dense<0.000000e+00> : vector<16xf32>
    %284 = vector.multi_reduction <add>, %283, %cst_104 [1] : vector<16x16xf32> to vector<16xf32>
    %285 = vector.shape_cast %284 : vector<16xf32> to vector<16x1xf32>
    %286 = tpu.reciprocal %285 {approx = true} : vector<16x1xf32> -> vector<16x1xf32>
    %287 = vector.broadcast %286 : vector<16x1xf32> to vector<16x16xf32>
    %288 = arith.mulf %283, %287 : vector<16x16xf32>
    %289 = vector.extract_strided_slice %244 {offsets = [0, 64], sizes = [16, 32], strides = [1, 1]} : vector<16x128xf32> to vector<16x32xf32>
    %cst_105 = arith.constant dense<0.000000e+00> : vector<16x32xf32>
    %290 = tpu.matmul %288, %289, %cst_105 {dimension_numbers = #tpu.dot_dimension_numbers<[1], [0], [0], [1], [0, 0, 1, 1], [], []>} : vector<16x16xf32>, vector<16x32xf32>, vector<16x32xf32> -> vector<16x32xf32>
    %291 = arith.addf %275, %290 : vector<16x32xf32>
    %292 = vector.extract_strided_slice %243 {offsets = [0, 96], sizes = [16, 32], strides = [1, 1]} : vector<16x128xf32> to vector<16x32xf32>
    %cst_106 = arith.constant dense<0.000000e+00> : vector<16x16xf32>
    %293 = tpu.matmul %292, %228, %cst_106 {dimension_numbers = #tpu.dot_dimension_numbers<[1], [1], [0], [0], [0, 0, 1, 0], [], []>} : vector<16x32xf32>, vector<16x32xf32>, vector<16x16xf32> -> vector<16x16xf32>
    %294 = arith.addf %293, %3 : vector<16x16xf32>
    %cst_107 = arith.constant dense<0xFF800000> : vector<16xf32>
    %295 = vector.multi_reduction <maximumf>, %294, %cst_107 [1] : vector<16x16xf32> to vector<16xf32>
    %296 = vector.shape_cast %295 : vector<16xf32> to vector<16x1xf32>
    %297 = vector.broadcast %296 : vector<16x1xf32> to vector<16x16xf32>
    %298 = arith.subf %294, %297 : vector<16x16xf32>
    %299 = math.exp %298 : vector<16x16xf32>
    %cst_108 = arith.constant dense<0.000000e+00> : vector<16xf32>
    %300 = vector.multi_reduction <add>, %299, %cst_108 [1] : vector<16x16xf32> to vector<16xf32>
    %301 = vector.shape_cast %300 : vector<16xf32> to vector<16x1xf32>
    %302 = tpu.reciprocal %301 {approx = true} : vector<16x1xf32> -> vector<16x1xf32>
    %303 = vector.broadcast %302 : vector<16x1xf32> to vector<16x16xf32>
    %304 = arith.mulf %299, %303 : vector<16x16xf32>
    %305 = vector.extract_strided_slice %244 {offsets = [0, 96], sizes = [16, 32], strides = [1, 1]} : vector<16x128xf32> to vector<16x32xf32>
    %cst_109 = arith.constant dense<0.000000e+00> : vector<16x32xf32>
    %306 = tpu.matmul %304, %305, %cst_109 {dimension_numbers = #tpu.dot_dimension_numbers<[1], [0], [0], [1], [0, 0, 1, 1], [], []>} : vector<16x16xf32>, vector<16x32xf32>, vector<16x32xf32> -> vector<16x32xf32>
    %307 = arith.addf %291, %306 : vector<16x32xf32>
    %308 = arith.addf %228, %307 : vector<16x32xf32>
    %cst_110 = arith.constant dense<0.000000e+00> : vector<16xf32>
    %309 = vector.multi_reduction <add>, %308, %cst_110 [1] : vector<16x32xf32> to vector<16xf32>
    %310 = vector.shape_cast %309 : vector<16xf32> to vector<16x1xf32>
    %cst_111 = arith.constant 3.200000e+01 : f32
    %311 = vector.broadcast %cst_111 : f32 to vector<16x1xf32>
    %312 = arith.divf %310, %311 : vector<16x1xf32>
    %313 = vector.broadcast %312 : vector<16x1xf32> to vector<16x32xf32>
    %314 = arith.subf %308, %313 : vector<16x32xf32>
    %315 = arith.mulf %314, %314 : vector<16x32xf32>
    %cst_112 = arith.constant dense<0.000000e+00> : vector<16xf32>
    %316 = vector.multi_reduction <add>, %315, %cst_112 [1] : vector<16x32xf32> to vector<16xf32>
    %317 = vector.shape_cast %316 : vector<16xf32> to vector<16x1xf32>
    %cst_113 = arith.constant 3.200000e+01 : f32
    %318 = vector.broadcast %cst_113 : f32 to vector<16x1xf32>
    %319 = arith.divf %317, %318 : vector<16x1xf32>
    %cst_114 = arith.constant 9.99999974E-6 : f32
    %320 = vector.broadcast %cst_114 : f32 to vector<16x1xf32>
    %321 = arith.addf %319, %320 : vector<16x1xf32>
    %322 = math.rsqrt %321 : vector<16x1xf32>
    %323 = vector.broadcast %322 : vector<16x1xf32> to vector<16x32xf32>
    %324 = arith.mulf %314, %323 : vector<16x32xf32>
    %325 = vector.broadcast %231 : vector<1x32xf32> to vector<16x32xf32>
    %326 = arith.mulf %324, %325 : vector<16x32xf32>
    %327 = vector.broadcast %232 : vector<1x32xf32> to vector<16x32xf32>
    %328 = arith.addf %326, %327 : vector<16x32xf32>
    %c3 = arith.constant 3 : index
    %c0_115 = arith.constant 0 : index
    %c0_116 = arith.constant 0 : index
    %329 = vector.load %arg3[%c3, %c0_115, %c0_116] : memref<4x32x128xf32, #tpu.memory_space<vmem>>, vector<1x32x128xf32>
    %330 = vector.shape_cast %329 : vector<1x32x128xf32> to vector<32x128xf32>
    %c3_117 = arith.constant 3 : index
    %c0_118 = arith.constant 0 : index
    %c0_119 = arith.constant 0 : index
    %331 = vector.load %arg4[%c3_117, %c0_118, %c0_119] : memref<4x32x128xf32, #tpu.memory_space<vmem>>, vector<1x32x128xf32>
    %332 = vector.shape_cast %331 : vector<1x32x128xf32> to vector<32x128xf32>
    %cst_120 = arith.constant dense<0.000000e+00> : vector<16x128xf32>
    %333 = tpu.matmul %328, %330, %cst_120 {dimension_numbers = #tpu.dot_dimension_numbers<[1], [0], [0], [1], [0, 0, 1, 1], [], []>} : vector<16x32xf32>, vector<32x128xf32>, vector<16x128xf32> -> vector<16x128xf32>
    %cst_121 = arith.constant dense<0.000000e+00> : vector<32x128xf32>
    %334 = tpu.matmul %1, %332, %cst_121 {dimension_numbers = #tpu.dot_dimension_numbers<[1], [0], [0], [1], [0, 0, 1, 1], [], []>} : vector<32x32xf32>, vector<32x128xf32>, vector<32x128xf32> -> vector<32x128xf32>
    %335 = vector.extract_strided_slice %333 {offsets = [0, 0], sizes = [16, 32], strides = [1, 1]} : vector<16x128xf32> to vector<16x32xf32>
    %cst_122 = arith.constant dense<0.000000e+00> : vector<16x32xf32>
    %336 = tpu.matmul %335, %1, %cst_122 {dimension_numbers = #tpu.dot_dimension_numbers<[1], [1], [0], [0], [0, 0, 1, 0], [], []>} : vector<16x32xf32>, vector<32x32xf32>, vector<16x32xf32> -> vector<16x32xf32>
    %337 = arith.addf %336, %5 : vector<16x32xf32>
    %cst_123 = arith.constant dense<0xFF800000> : vector<16xf32>
    %338 = vector.multi_reduction <maximumf>, %337, %cst_123 [1] : vector<16x32xf32> to vector<16xf32>
    %339 = vector.shape_cast %338 : vector<16xf32> to vector<16x1xf32>
    %340 = vector.broadcast %339 : vector<16x1xf32> to vector<16x32xf32>
    %341 = arith.subf %337, %340 : vector<16x32xf32>
    %342 = math.exp %341 : vector<16x32xf32>
    %cst_124 = arith.constant dense<0.000000e+00> : vector<16xf32>
    %343 = vector.multi_reduction <add>, %342, %cst_124 [1] : vector<16x32xf32> to vector<16xf32>
    %344 = vector.shape_cast %343 : vector<16xf32> to vector<16x1xf32>
    %345 = tpu.reciprocal %344 {approx = true} : vector<16x1xf32> -> vector<16x1xf32>
    %346 = vector.broadcast %345 : vector<16x1xf32> to vector<16x32xf32>
    %347 = arith.mulf %342, %346 : vector<16x32xf32>
    %348 = vector.extract_strided_slice %334 {offsets = [0, 0], sizes = [32, 32], strides = [1, 1]} : vector<32x128xf32> to vector<32x32xf32>
    %cst_125 = arith.constant dense<0.000000e+00> : vector<16x32xf32>
    %349 = tpu.matmul %347, %348, %cst_125 {dimension_numbers = #tpu.dot_dimension_numbers<[1], [0], [0], [1], [0, 0, 1, 1], [], []>} : vector<16x32xf32>, vector<32x32xf32>, vector<16x32xf32> -> vector<16x32xf32>
    %350 = vector.extract_strided_slice %333 {offsets = [0, 32], sizes = [16, 32], strides = [1, 1]} : vector<16x128xf32> to vector<16x32xf32>
    %cst_126 = arith.constant dense<0.000000e+00> : vector<16x32xf32>
    %351 = tpu.matmul %350, %1, %cst_126 {dimension_numbers = #tpu.dot_dimension_numbers<[1], [1], [0], [0], [0, 0, 1, 0], [], []>} : vector<16x32xf32>, vector<32x32xf32>, vector<16x32xf32> -> vector<16x32xf32>
    %352 = arith.addf %351, %5 : vector<16x32xf32>
    %cst_127 = arith.constant dense<0xFF800000> : vector<16xf32>
    %353 = vector.multi_reduction <maximumf>, %352, %cst_127 [1] : vector<16x32xf32> to vector<16xf32>
    %354 = vector.shape_cast %353 : vector<16xf32> to vector<16x1xf32>
    %355 = vector.broadcast %354 : vector<16x1xf32> to vector<16x32xf32>
    %356 = arith.subf %352, %355 : vector<16x32xf32>
    %357 = math.exp %356 : vector<16x32xf32>
    %cst_128 = arith.constant dense<0.000000e+00> : vector<16xf32>
    %358 = vector.multi_reduction <add>, %357, %cst_128 [1] : vector<16x32xf32> to vector<16xf32>
    %359 = vector.shape_cast %358 : vector<16xf32> to vector<16x1xf32>
    %360 = tpu.reciprocal %359 {approx = true} : vector<16x1xf32> -> vector<16x1xf32>
    %361 = vector.broadcast %360 : vector<16x1xf32> to vector<16x32xf32>
    %362 = arith.mulf %357, %361 : vector<16x32xf32>
    %363 = vector.extract_strided_slice %334 {offsets = [0, 32], sizes = [32, 32], strides = [1, 1]} : vector<32x128xf32> to vector<32x32xf32>
    %cst_129 = arith.constant dense<0.000000e+00> : vector<16x32xf32>
    %364 = tpu.matmul %362, %363, %cst_129 {dimension_numbers = #tpu.dot_dimension_numbers<[1], [0], [0], [1], [0, 0, 1, 1], [], []>} : vector<16x32xf32>, vector<32x32xf32>, vector<16x32xf32> -> vector<16x32xf32>
    %365 = arith.addf %349, %364 : vector<16x32xf32>
    %366 = vector.extract_strided_slice %333 {offsets = [0, 64], sizes = [16, 32], strides = [1, 1]} : vector<16x128xf32> to vector<16x32xf32>
    %cst_130 = arith.constant dense<0.000000e+00> : vector<16x32xf32>
    %367 = tpu.matmul %366, %1, %cst_130 {dimension_numbers = #tpu.dot_dimension_numbers<[1], [1], [0], [0], [0, 0, 1, 0], [], []>} : vector<16x32xf32>, vector<32x32xf32>, vector<16x32xf32> -> vector<16x32xf32>
    %368 = arith.addf %367, %5 : vector<16x32xf32>
    %cst_131 = arith.constant dense<0xFF800000> : vector<16xf32>
    %369 = vector.multi_reduction <maximumf>, %368, %cst_131 [1] : vector<16x32xf32> to vector<16xf32>
    %370 = vector.shape_cast %369 : vector<16xf32> to vector<16x1xf32>
    %371 = vector.broadcast %370 : vector<16x1xf32> to vector<16x32xf32>
    %372 = arith.subf %368, %371 : vector<16x32xf32>
    %373 = math.exp %372 : vector<16x32xf32>
    %cst_132 = arith.constant dense<0.000000e+00> : vector<16xf32>
    %374 = vector.multi_reduction <add>, %373, %cst_132 [1] : vector<16x32xf32> to vector<16xf32>
    %375 = vector.shape_cast %374 : vector<16xf32> to vector<16x1xf32>
    %376 = tpu.reciprocal %375 {approx = true} : vector<16x1xf32> -> vector<16x1xf32>
    %377 = vector.broadcast %376 : vector<16x1xf32> to vector<16x32xf32>
    %378 = arith.mulf %373, %377 : vector<16x32xf32>
    %379 = vector.extract_strided_slice %334 {offsets = [0, 64], sizes = [32, 32], strides = [1, 1]} : vector<32x128xf32> to vector<32x32xf32>
    %cst_133 = arith.constant dense<0.000000e+00> : vector<16x32xf32>
    %380 = tpu.matmul %378, %379, %cst_133 {dimension_numbers = #tpu.dot_dimension_numbers<[1], [0], [0], [1], [0, 0, 1, 1], [], []>} : vector<16x32xf32>, vector<32x32xf32>, vector<16x32xf32> -> vector<16x32xf32>
    %381 = arith.addf %365, %380 : vector<16x32xf32>
    %382 = vector.extract_strided_slice %333 {offsets = [0, 96], sizes = [16, 32], strides = [1, 1]} : vector<16x128xf32> to vector<16x32xf32>
    %cst_134 = arith.constant dense<0.000000e+00> : vector<16x32xf32>
    %383 = tpu.matmul %382, %1, %cst_134 {dimension_numbers = #tpu.dot_dimension_numbers<[1], [1], [0], [0], [0, 0, 1, 0], [], []>} : vector<16x32xf32>, vector<32x32xf32>, vector<16x32xf32> -> vector<16x32xf32>
    %384 = arith.addf %383, %5 : vector<16x32xf32>
    %cst_135 = arith.constant dense<0xFF800000> : vector<16xf32>
    %385 = vector.multi_reduction <maximumf>, %384, %cst_135 [1] : vector<16x32xf32> to vector<16xf32>
    %386 = vector.shape_cast %385 : vector<16xf32> to vector<16x1xf32>
    %387 = vector.broadcast %386 : vector<16x1xf32> to vector<16x32xf32>
    %388 = arith.subf %384, %387 : vector<16x32xf32>
    %389 = math.exp %388 : vector<16x32xf32>
    %cst_136 = arith.constant dense<0.000000e+00> : vector<16xf32>
    %390 = vector.multi_reduction <add>, %389, %cst_136 [1] : vector<16x32xf32> to vector<16xf32>
    %391 = vector.shape_cast %390 : vector<16xf32> to vector<16x1xf32>
    %392 = tpu.reciprocal %391 {approx = true} : vector<16x1xf32> -> vector<16x1xf32>
    %393 = vector.broadcast %392 : vector<16x1xf32> to vector<16x32xf32>
    %394 = arith.mulf %389, %393 : vector<16x32xf32>
    %395 = vector.extract_strided_slice %334 {offsets = [0, 96], sizes = [32, 32], strides = [1, 1]} : vector<32x128xf32> to vector<32x32xf32>
    %cst_137 = arith.constant dense<0.000000e+00> : vector<16x32xf32>
    %396 = tpu.matmul %394, %395, %cst_137 {dimension_numbers = #tpu.dot_dimension_numbers<[1], [0], [0], [1], [0, 0, 1, 1], [], []>} : vector<16x32xf32>, vector<32x32xf32>, vector<16x32xf32> -> vector<16x32xf32>
    %397 = arith.addf %381, %396 : vector<16x32xf32>
    %398 = arith.addf %328, %397 : vector<16x32xf32>
    %cst_138 = arith.constant dense<0.000000e+00> : vector<16xf32>
    %399 = vector.multi_reduction <add>, %398, %cst_138 [1] : vector<16x32xf32> to vector<16xf32>
    %400 = vector.shape_cast %399 : vector<16xf32> to vector<16x1xf32>
    %cst_139 = arith.constant 3.200000e+01 : f32
    %401 = vector.broadcast %cst_139 : f32 to vector<16x1xf32>
    %402 = arith.divf %400, %401 : vector<16x1xf32>
    %403 = vector.broadcast %402 : vector<16x1xf32> to vector<16x32xf32>
    %404 = arith.subf %398, %403 : vector<16x32xf32>
    %405 = arith.mulf %404, %404 : vector<16x32xf32>
    %cst_140 = arith.constant dense<0.000000e+00> : vector<16xf32>
    %406 = vector.multi_reduction <add>, %405, %cst_140 [1] : vector<16x32xf32> to vector<16xf32>
    %407 = vector.shape_cast %406 : vector<16xf32> to vector<16x1xf32>
    %cst_141 = arith.constant 3.200000e+01 : f32
    %408 = vector.broadcast %cst_141 : f32 to vector<16x1xf32>
    %409 = arith.divf %407, %408 : vector<16x1xf32>
    %cst_142 = arith.constant 9.99999974E-6 : f32
    %410 = vector.broadcast %cst_142 : f32 to vector<16x1xf32>
    %411 = arith.addf %409, %410 : vector<16x1xf32>
    %412 = math.rsqrt %411 : vector<16x1xf32>
    %413 = vector.broadcast %412 : vector<16x1xf32> to vector<16x32xf32>
    %414 = arith.mulf %404, %413 : vector<16x32xf32>
    %415 = vector.broadcast %233 : vector<1x32xf32> to vector<16x32xf32>
    %416 = arith.mulf %414, %415 : vector<16x32xf32>
    %417 = vector.broadcast %234 : vector<1x32xf32> to vector<16x32xf32>
    %418 = arith.addf %416, %417 : vector<16x32xf32>
    %c1_143 = arith.constant 1 : index
    %c0_144 = arith.constant 0 : index
    %c0_145 = arith.constant 0 : index
    %c0_146 = arith.constant 0 : index
    %419 = vector.load %arg5[%c1_143, %c0_144, %c0_145, %c0_146] : memref<2x2x32x64xf32, #tpu.memory_space<vmem>>, vector<1x1x32x64xf32>
    %420 = vector.shape_cast %419 : vector<1x1x32x64xf32> to vector<32x64xf32>
    %cst_147 = arith.constant dense<0.000000e+00> : vector<16x64xf32>
    %421 = tpu.matmul %418, %420, %cst_147 {dimension_numbers = #tpu.dot_dimension_numbers<[1], [0], [0], [1], [0, 0, 1, 1], [], []>} : vector<16x32xf32>, vector<32x64xf32>, vector<16x64xf32> -> vector<16x64xf32>
    %422 = vector.broadcast %237 : vector<1x64xf32> to vector<16x64xf32>
    %423 = arith.addf %421, %422 : vector<16x64xf32>
    %cst_148 = arith.constant 0.000000e+00 : f32
    %424 = vector.broadcast %cst_148 : f32 to vector<16x64xf32>
    %425 = arith.maximumf %423, %424 : vector<16x64xf32>
    %c1_149 = arith.constant 1 : index
    %c1_150 = arith.constant 1 : index
    %c0_151 = arith.constant 0 : index
    %c0_152 = arith.constant 0 : index
    %426 = vector.load %arg5[%c1_149, %c1_150, %c0_151, %c0_152] : memref<2x2x32x64xf32, #tpu.memory_space<vmem>>, vector<1x1x32x64xf32>
    %427 = vector.shape_cast %426 : vector<1x1x32x64xf32> to vector<32x64xf32>
    %cst_153 = arith.constant dense<0.000000e+00> : vector<16x32xf32>
    %428 = tpu.matmul %425, %427, %cst_153 {dimension_numbers = #tpu.dot_dimension_numbers<[1], [1], [0], [0], [0, 0, 1, 0], [], []>} : vector<16x64xf32>, vector<32x64xf32>, vector<16x32xf32> -> vector<16x32xf32>
    %429 = vector.broadcast %238 : vector<1x32xf32> to vector<16x32xf32>
    %430 = arith.addf %428, %429 : vector<16x32xf32>
    %431 = arith.addf %418, %430 : vector<16x32xf32>
    %cst_154 = arith.constant dense<0.000000e+00> : vector<16xf32>
    %432 = vector.multi_reduction <add>, %431, %cst_154 [1] : vector<16x32xf32> to vector<16xf32>
    %433 = vector.shape_cast %432 : vector<16xf32> to vector<16x1xf32>
    %cst_155 = arith.constant 3.200000e+01 : f32
    %434 = vector.broadcast %cst_155 : f32 to vector<16x1xf32>
    %435 = arith.divf %433, %434 : vector<16x1xf32>
    %436 = vector.broadcast %435 : vector<16x1xf32> to vector<16x32xf32>
    %437 = arith.subf %431, %436 : vector<16x32xf32>
    %438 = arith.mulf %437, %437 : vector<16x32xf32>
    %cst_156 = arith.constant dense<0.000000e+00> : vector<16xf32>
    %439 = vector.multi_reduction <add>, %438, %cst_156 [1] : vector<16x32xf32> to vector<16xf32>
    %440 = vector.shape_cast %439 : vector<16xf32> to vector<16x1xf32>
    %cst_157 = arith.constant 3.200000e+01 : f32
    %441 = vector.broadcast %cst_157 : f32 to vector<16x1xf32>
    %442 = arith.divf %440, %441 : vector<16x1xf32>
    %cst_158 = arith.constant 9.99999974E-6 : f32
    %443 = vector.broadcast %cst_158 : f32 to vector<16x1xf32>
    %444 = arith.addf %442, %443 : vector<16x1xf32>
    %445 = math.rsqrt %444 : vector<16x1xf32>
    %446 = vector.broadcast %445 : vector<16x1xf32> to vector<16x32xf32>
    %447 = arith.mulf %437, %446 : vector<16x32xf32>
    %448 = vector.broadcast %235 : vector<1x32xf32> to vector<16x32xf32>
    %449 = arith.mulf %447, %448 : vector<16x32xf32>
    %450 = vector.broadcast %236 : vector<1x32xf32> to vector<16x32xf32>
    %451 = arith.addf %449, %450 : vector<16x32xf32>
    %c0_159 = arith.constant 0 : index
    %c0_160 = arith.constant 0 : index
    %452 = vector.load %arg7[%c0_159, %c0_160] : memref<16x32xf32, #tpu.memory_space<vmem>>, vector<16x32xf32>
    tpu.vector_store %arg7[%c0_159, %c0_160], %451 {strides = array<i32>} : memref<16x32xf32, #tpu.memory_space<vmem>>, vector<16x32xf32>,
    return
  }
}

</mosaic_0001>

<bundles_post_ra>
// kernel: decoder_forward.1
= control target key start
LH: loop header
LB: loop body
LE: loop exit
PB: predicated region body
PF: predicated region fallthrough
CT: control target
= control target key end

     0   :  { %12 = vsyncpa [#allocation3], 0  ;;  %s7021_s0 = inlined_call_operand.hbm [shape: f32[16,32], index: 0, kind: input, shape index: {}]   ;;  %s7022_s1 = inlined_call_operand.hbm [shape: f32[32,32], index: 1, kind: input, shape index: {}]   ;;  %s7023_s2 = inlined_call_operand.hbm [shape: f32[2,16,32], index: 2, kind: input, shape index: {}]   ;;  %s7024_s3 = inlined_call_operand.hbm [shape: f32[4,32,128], index: 3, kind: input, shape index: {}]   ;;  %s7025_s4 = inlined_call_operand.hbm [shape: f32[4,32,128], index: 4, kind: input, shape index: {}]   ;;  %s7026_s5 = inlined_call_operand.hbm [shape: f32[2,2,32,64], index: 5, kind: input, shape index: {}]   ;;  %s7027_s6 = inlined_call_operand.vmem [shape: f32[2,8,64], index: 6, kind: input, shape index: {}]   ;;  %s7028_s7 = inlined_call_operand.hbm [shape: f32[16,32], index: 7, kind: output, shape index: {}]  }
   0x1   :  { %13 = vsyncpa [#allocation6], 0 }
   0x2   :  { %14 = vsyncpa [#allocation9], 0 }
   0x3   :  { %15 = vsyncpa [#allocation12], 0 }
   0x4   :  { %16 = vsyncpa [#allocation4], 0  ;;  %s6179_s24 = smov [#allocation5]   ;;  %s6180_s26 = smov [#allocation8]  }
   0x5   :  { %s34_s25 = sshll.u32 %s6179_s24, 4  ;;  %s58_s27 = sshll.u32 %s6180_s26, 4  ;;  %s35_s25 = int_to_ptr.vmem [resolvable:$true] %s34_s25  ;;  %s6231_s27 = int_to_ptr.vmem [resolvable:$true] %s58_s27 }
   0x6   :  { %s6015_s30 = scalar_lea.hbm %s7022_s1, 512 }
   0x7   :  { %p6016_p0 = scmp.ne.s32.totalorder %s7022_s1, %s6015_s30  ;;  %p6019_p1 = scmp.lt.u32.totalorder %s6015_s30, %s7022_s1 }
   0x9   :  { %p6021_p2 = pnand %p6019_p1, %p6016_p0 }
   0xb   :  { %6024 = shalt.err (!%p6021_p2)
}
   0xc   :  { %s6025_s12 = scalar_lea.vmem %s35_s25, 512  ;;  %p6030_p4 = scmp.lt.s32.totalorder %s35_s25, %s35_s25 }
   0xd   :  { %p6026_p3 = scmp.ne.s32.totalorder %s35_s25, %s6025_s12  ;;  %p6031_p5 = scmp.lt.s32.totalorder %s6025_s12, %s6025_s12 }
   0xf   :  { %p6032_p6 = por %p6031_p5, %p6030_p4 }
  0x11   :  { %p6033_p7 = pnand %p6032_p6, %p6026_p3 }
  0x13   :  { %6036 = shalt.err (!%p6033_p7)
}
  0x14   :  { %s6181_s13 = smov 128   ;;  %s6182_s14 = smov 8  }
  0x15   :  { %40 = dma.hbm_to_vmem [thread:$0]  %s7022_s1, 512, %s35_s25, [#allocation6], %s6181_s13, %s6181_s13, %s6182_s14  }
  0x16   :  { %s6037_s19 = scalar_lea.hbm %s7024_s3, 2048 }
  0x17   :  { %p6038_p8 = scmp.ne.s32.totalorder %s7024_s3, %s6037_s19  ;;  %p6041_p9 = scmp.lt.u32.totalorder %s6037_s19, %s7024_s3 }
  0x19   :  { %p6043_p10 = pnand %p6041_p9, %p6038_p8 }
  0x1b   :  { %6046 = shalt.err (!%p6043_p10)
}
  0x1c   :  { %s6047_s24 = scalar_lea.vmem %s6231_s27, 2048  ;;  %p6052_p12 = scmp.lt.s32.totalorder %s6231_s27, %s6231_s27 }
  0x1d   :  { %p6048_p11 = scmp.ne.s32.totalorder %s6231_s27, %s6047_s24  ;;  %p6053_p13 = scmp.lt.s32.totalorder %s6047_s24, %s6047_s24 }
  0x1f   :  { %p6054_p0 = por %p6053_p13, %p6052_p12 }
  0x21   :  { %p6055_p1 = pnand %p6054_p0, %p6048_p11 }
  0x23   :  { %6058 = shalt.err (!%p6055_p1)
}
  0x24   :  { %64 = dma.hbm_to_vmem [thread:$0]  %s7024_s3, 2048, %s6231_s27, [#allocation9], %s6181_s13, %s6181_s13, %s6182_s14  }
  0x25   :  { %s6183_s26 = smov [#allocation2]   ;;  %s6184_s29 = smov [#allocation7]  }
  0x26   :  { %s22_s28 = sshll.u32 %s6183_s26, 4  ;;  %s46_s30 = sshll.u32 %s6184_s29, 4  ;;  %s23_s28 = int_to_ptr.vmem [resolvable:$true] %s22_s28  ;;  %s6268_s30 = int_to_ptr.vmem [resolvable:$true] %s46_s30 }
  0x27   :  { %s6059_s10 = scalar_lea.hbm %s7021_s0, 256 }
  0x28   :  { %p6060_p2 = scmp.ne.s32.totalorder %s7021_s0, %s6059_s10  ;;  %p6063_p3 = scmp.lt.u32.totalorder %s6059_s10, %s7021_s0 }
  0x2a   :  { %p6065_p4 = pnand %p6063_p3, %p6060_p2 }
  0x2c   :  { %6068 = shalt.err (!%p6065_p4)
}
  0x2d   :  { %s6069_s3 = scalar_lea.vmem %s23_s28, 256  ;;  %p6074_p6 = scmp.lt.s32.totalorder %s23_s28, %s23_s28 }
  0x2e   :  { %p6070_p5 = scmp.ne.s32.totalorder %s23_s28, %s6069_s3  ;;  %p6075_p7 = scmp.lt.s32.totalorder %s6069_s3, %s6069_s3 }
  0x30   :  { %p6076_p8 = por %p6075_p7, %p6074_p6 }
  0x32   :  { %p6077_p9 = pnand %p6076_p8, %p6070_p5 }
  0x34   :  { %6080 = shalt.err (!%p6077_p9)
}
  0x35   :  { %28 = dma.hbm_to_vmem [thread:$0]  %s7021_s0, 256, %s23_s28, [#allocation3], %s6181_s13, %s6181_s13, %s6182_s14  }
  0x36   :  { %s6081_s20 = scalar_lea.hbm %s7023_s2, 512 }
  0x37   :  { %p6082_p10 = scmp.ne.s32.totalorder %s7023_s2, %s6081_s20  ;;  %p6085_p11 = scmp.lt.u32.totalorder %s6081_s20, %s7023_s2 }
  0x39   :  { %p6087_p12 = pnand %p6085_p11, %p6082_p10 }
  0x3b   :  { %6090 = shalt.err (!%p6087_p12)
}
  0x3c   :  { %s6091_s1 = scalar_lea.vmem %s6268_s30, 512  ;;  %p6096_p0 = scmp.lt.s32.totalorder %s6268_s30, %s6268_s30 }
  0x3d   :  { %p6092_p13 = scmp.ne.s32.totalorder %s6268_s30, %s6091_s1  ;;  %p6097_p1 = scmp.lt.s32.totalorder %s6091_s1, %s6091_s1 }
  0x3f   :  { %p6098_p2 = por %p6097_p1, %p6096_p0 }
  0x41   :  { %p6099_p3 = pnand %p6098_p2, %p6092_p13 }
  0x43   :  { %6102 = shalt.err (!%p6099_p3)
}
  0x44   :  { %52 = dma.hbm_to_vmem [thread:$0]  %s7023_s2, 512, %s6268_s30, [#allocation6], %s6181_s13, %s6181_s13, %s6182_s14  }
  0x45   :  { %s6185_s26 = smov [#allocation10]   ;;  %s6186_s29 = smov [#allocation11]  }
  0x46   :  { %s70_s28 = sshll.u32 %s6185_s26, 4  ;;  %s82_s8 = sshll.u32 %s6186_s29, 4  ;;  %s71_s28 = int_to_ptr.vmem [resolvable:$true] %s70_s28  ;;  %s6305_s8 = int_to_ptr.vmem [resolvable:$true] %s82_s8 }
  0x47   :  { %s6103_s11 = scalar_lea.hbm %s7025_s4, 2048 }
  0x48   :  { %p6104_p4 = scmp.ne.s32.totalorder %s7025_s4, %s6103_s11  ;;  %p6107_p5 = scmp.lt.u32.totalorder %s6103_s11, %s7025_s4 }
  0x4a   :  { %p6109_p6 = pnand %p6107_p5, %p6104_p4 }
  0x4c   :  { %6112 = shalt.err (!%p6109_p6)
}
  0x4d   :  { %s6113_s2 = scalar_lea.vmem %s71_s28, 2048  ;;  %p6118_p8 = scmp.lt.s32.totalorder %s71_s28, %s71_s28 }
  0x4e   :  { %p6114_p7 = scmp.ne.s32.totalorder %s71_s28, %s6113_s2  ;;  %p6119_p9 = scmp.lt.s32.totalorder %s6113_s2, %s6113_s2 }
  0x50   :  { %p6120_p10 = por %p6119_p9, %p6118_p8 }
  0x52   :  { %p6121_p11 = pnand %p6120_p10, %p6114_p7 }
  0x54   :  { %6124 = shalt.err (!%p6121_p11)
}
  0x55   :  { %76 = dma.hbm_to_vmem [thread:$0]  %s7025_s4, 2048, %s71_s28, [#allocation9], %s6181_s13, %s6181_s13, %s6182_s14  }
  0x56   :  { %s6125_s19 = scalar_lea.hbm %s7026_s5, 2048 }
  0x57   :  { %p6126_p12 = scmp.ne.s32.totalorder %s7026_s5, %s6125_s19  ;;  %p6129_p13 = scmp.lt.u32.totalorder %s6125_s19, %s7026_s5 }
  0x59   :  { %p6131_p0 = pnand %p6129_p13, %p6126_p12 }
  0x5b   :  { %6134 = shalt.err (!%p6131_p0)
}
  0x5c   :  { %s6135_s24 = scalar_lea.vmem %s6305_s8, 2048  ;;  %p6140_p2 = scmp.lt.s32.totalorder %s6305_s8, %s6305_s8 }
  0x5d   :  { %p6136_p1 = scmp.ne.s32.totalorder %s6305_s8, %s6135_s24  ;;  %p6141_p3 = scmp.lt.s32.totalorder %s6135_s24, %s6135_s24 }
  0x5f   :  { %p6142_p4 = por %p6141_p3, %p6140_p2 }
  0x61   :  { %p6143_p5 = pnand %p6142_p4, %p6136_p1 }
  0x63   :  { %6146 = shalt.err (!%p6143_p5)
}
  0x64   :  { %88 = dma.hbm_to_vmem [thread:$0]  %s7026_s5, 2048, %s6305_s8, [#allocation12], %s6181_s13, %s6181_s13, %s6182_s14  }
  0x65   :  { %6169 = dma.done.wait [#allocation3], 256  }
  0x66   :  { %6170 = vsyncadd [#allocation3], 4294967040 }
  0x67   :  { %6171 = dma.done.wait [#allocation6], 1024  }
  0x68   :  { %6172 = vsyncadd [#allocation6], 4294966272 }
  0x69   :  { %6173 = dma.done.wait [#allocation9], 4096  }
  0x6a   :  { %6174 = vsyncadd [#allocation9], 4294963200 }
  0x6b   :  { %6175 = dma.done.wait [#allocation12], 2048  }
  0x6c   :  { %6176 = vsyncadd [#allocation12], 4294965248  ;;  %vm129_vm0 = vcmask 261120   ;;  %v121_v1 = vld [vmem:[#allocation8] sm:$0xff]  ;;  %v122_v2 = vld [vmem:[#allocation8 + $0x8] sm:$0xff]  ;;  %s6187_s5 = smov 64  }
  0x6d   :  { %vm6344_vm1 = vmpackc.low %vm129_vm0, %vm129_vm0  ;;  %v123_v3 = vld [vmem:[#allocation8 + $0x10] sm:$0xff]  ;;  %v5385_v4 = vpack.c.bf16 %v122_v2, %v121_v1  ;;  %v124_v5 = vld [vmem:[#allocation8 + $0x18] sm:$0xff]  ;;  %s6188_s0 = smov 96   ;;  %s6189_s25 = smov 32   ;;  %vm367_vm2 = vcmask 130048   ;;  %vm2208_vm3 = vcmask 523264  }
  0x6e   :  { %v6348_v6 = vld [vmem:[#allocation2] sm:$0xff]  ;;  %v6350_v7 = vld [vmem:[#allocation2 + $0x8] sm:$0xff]  ;;  %v5389_v8 = vpack.c.bf16 %v124_v5, %v123_v3  ;;  %v125_v10 = vld [vmem:[#allocation10] sm:$0xff] }
  0x6f   :  { %4967 = vmatprep.mubr.msk.f32.mxu1 %vm129_vm0, %v6348_v6  ;;  %v5401_v9 = vpack.c.bf16 %v6350_v7, %v6348_v6  ;;  %5386 = vmatprep.subr.bf16.mxu1 %v5385_v4  ;;  %v126_v11 = vld [vmem:[#allocation10 + $0x8] sm:$0xff]  ;;  %v127_v12 = vld [vmem:[#allocation10 + $0x10] sm:$0xff]  ;;  %v128_v14 = vld [vmem:[#allocation10 + $0x18] sm:$0xff] }
  0x70   :  { %5388 = vmatpush3.bf16.msra.mxu1 %v5385_v4  ;;  %v5393_v13 = vpack.c.bf16 %v126_v11, %v125_v10  ;;  %v5397_v15 = vpack.c.bf16 %v128_v14, %v127_v12  ;;  %v116_v30 = vld [vmem:[#allocation7 + $0x8] sm:$0xff]  ;;  %v115_v32 = vld [vmem:[#allocation7] sm:$0xff]  ;;  %vm6639_vm4 = vmpackc.low %vm2208_vm3, %vm2208_vm3 }
  0x71   :  { %5403 = vmatprep.subr.msk.bf16.mxu0 %vm6344_vm1, %v5401_v9  ;;  %5390 = vmatprep.subr.bf16.mxu1 %v5389_v8 }
  0x72   :  { %5406 = vmatpush3.bf16.xpose.msk.msra.mxu0 %vm6344_vm1, %v5401_v9 }
  0x74   :  { %5392 = vmatpush3.bf16.msra.mxu1 %v5389_v8 }
  0x75   :  { %5394 = vmatprep.subr.bf16.mxu1 %v5393_v13 }
  0x77   :  { %4968 = vmatmul.mubr.msk.f32.vlgmr.msra.gmra.mrb[0].mxu1 %vm129_vm0, %v6350_v7 }
  0x78   :  { %4978 = vmatprep.mubr.msk.f32.mxu1 %vm129_vm0, %v6348_v6  ;;  %5396 = vmatpush3.bf16.msra.mxu1 %v5393_v13 }
  0x79   :  { %5398 = vmatprep.subr.bf16.mxu1 %v5397_v15 }
  0x7c   :  { %5400 = vmatpush3.bf16.msra.mxu1 %v5397_v15 }
  0x7d   :  { %5409 = vmatprep.subr.msk.bf16.mxu1 %vm6344_vm1, %v5401_v9 }
  0x7f   :  { %4979 = vmatmul.mubr.msk.f32.vlgmr.msra.gmra.mrb[2].mxu1 %vm129_vm0, %v6350_v7 }
  0x85   :  { %5412 = vmatpush3.bf16.xpose.msk.msra.mxu1 %vm6344_vm1, %v5401_v9 }
  0x86   :  { %5423 = vmatprep.subr.msk.bf16.mxu1 %vm6344_vm1, %v5401_v9 }
 0x14a   :  { %v4969_v16 = vpop.f32.mrb[0].mxu1 }
 0x14b   :  { %v202_v17 = vpop.f32.mrb[1].mxu1 }
 0x14c   :  { %665 = vrot.lane.b32.xlu1 %v202_v17, %s6187_s5  ;;  %390 = vrot.lane.b32.xlu0 %v202_v17, %s6188_s0 }
 0x14d   :  { %4985 = vmatprep.mubr.msk.f32.mxu0 %vm129_vm0, %v202_v17 }
 0x14e   :  { %4986 = vmatmul.mubr.msk.f32.vlgmr.msra.gmra.mrb[0].mxu0 %vm129_vm0, %v4969_v16 }
 0x150   :  { %667 = vrot.lane.b32.xlu1 %v4969_v16, %s6187_s5  ;;  %392 = vrot.lane.b32.xlu0 %v4969_v16, %s6188_s0 }
 0x152   :  { %v4980_v18 = vpop.f32.mrb[2].mxu1 }
 0x153   :  { %v277_v19 = vpop.f32.mrb[3].mxu1 }
 0x154   :  { %861 = vrot.lane.b32.xlu1 %v4969_v16, %s6189_s25  ;;  %859 = vrot.lane.b32.xlu0 %v202_v17, %s6189_s25  ;;  %v6392_v26 = vpack.i.bf16 %v4980_v18, %v277_v19  ;;  %v6394_v27 = vpack.c.bf16 %v4980_v18, %v277_v19 }
 0x1be   :  { %v391_v20 = vpop.permute.xlu0 %390  ;;  %v666_v22 = vpop.permute.xlu1 %665 }
 0x1bf   :  { %4992 = vmatprep.mubr.msk.f32.mxu1 %vm129_vm0, %v391_v20 }
 0x1c2   :  { %v393_v21 = vpop.permute.xlu0 %392  ;;  %v668_v23 = vpop.permute.xlu1 %667 }
 0x1c3   :  { %4993 = vmatmul.mubr.msk.f32.vlgmr.msra.gmra.mrb[4].mxu1 %vm129_vm0, %v393_v21 }
 0x1c4   :  { %5426 = vmatpush3.bf16.xpose.msk.msra.mxu1 %vm6344_vm1, %v5401_v9  ;;  %5013 = vmatprep.mubr.msk.f32.mxu1 %vm129_vm0, %v666_v22 }
 0x1c5   :  { %5433 = vmatprep.subr.msk.bf16.mxu1 %vm6344_vm1, %v5401_v9 }
 0x1c6   :  { %v860_v24 = vpop.permute.xlu0 %859  ;;  %v862_v25 = vpop.permute.xlu1 %861 }
 0x1cb   :  { %5014 = vmatmul.mubr.msk.f32.vlgmr.msra.gmra.mrb[6].mxu1 %vm129_vm0, %v668_v23 }
 0x1cc   :  { %5436 = vmatpush3.bf16.xpose.msk.msra.mxu1 %vm6344_vm1, %v5401_v9  ;;  %5027 = vmatprep.mubr.msk.f32.mxu1 %vm129_vm0, %v860_v24 }
 0x1d3   :  { %5028 = vmatmul.mubr.msk.f32.vlgmr.msra.gmra.mrb[8].mxu1 %vm129_vm0, %v862_v25 }
 0x221   :  { %v4987_v28 = vpop.f32.mrb[0].mxu0 }
 0x222   :  { %v358_v29 = vpop.f32.mrb[1].mxu0  ;;  %v364_v39 = vadd.f32 %v4987_v28, %v116_v30 }
 0x223   :  { %v359_v37 = vadd.f32 %v358_v29, %v115_v32 }
 0x224   :  { %v371_v46 = vsel %vm367_vm2, %v364_v39, -inf }
 0x225   :  { %v368_v41 = vsel %vm367_vm2, %v359_v37, -inf }
 0x296   :  { %v4994_v31 = vpop.f32.mrb[4].mxu1 }
 0x297   :  { %v470_v33 = vadd.f32 %v4994_v31, %v116_v30  ;;  %v464_v34 = vpop.f32.mrb[5].mxu1 }
 0x298   :  { %v465_v35 = vadd.f32 %v464_v34, %v115_v32 }
 0x299   :  { %v476_v36 = vsel %vm367_vm2, %v470_v33, -inf }
 0x29a   :  { %477 = vmax.xlane.f32.xlu1 %v476_v36  ;;  %v473_v38 = vsel %vm367_vm2, %v465_v35, -inf }
 0x29b   :  { %474 = vmax.xlane.f32.xlu0 %v473_v38 }
 0x29e   :  { %v5015_v40 = vpop.f32.mrb[6].mxu1 }
 0x29f   :  { %v739_v42 = vpop.f32.mrb[7].mxu1  ;;  %369 = vmax.xlane.f32.xlu0 %v368_v41  ;;  %v745_v44 = vadd.f32 %v5015_v40, %v116_v30 }
 0x2a0   :  { %v6399_v43 = vadd.f32 %v739_v42, %v115_v32 }
 0x2a1   :  { %v751_v48 = vsel %vm367_vm2, %v745_v44, -inf }
 0x2a2   :  { %v748_v45 = vsel %vm367_vm2, %v6399_v43, -inf }
 0x2a3   :  { %749 = vmax.xlane.f32.xlu1 %v748_v45  ;;  %372 = vmax.xlane.f32.xlu0 %v371_v46 }
 0x2a6   :  { %v5029_v47 = vpop.f32.mrb[8].mxu1 }
 0x2a7   :  { %v939_v49 = vadd.f32 %v5029_v47, %v116_v30  ;;  %v933_v50 = vpop.f32.mrb[9].mxu1  ;;  %752 = vmax.xlane.f32.xlu0 %v751_v48 }
 0x2a8   :  { %v934_v51 = vadd.f32 %v933_v50, %v115_v32 }
 0x2a9   :  { %v945_v53 = vsel %vm367_vm2, %v939_v49, -inf }
 0x2aa   :  { %v942_v52 = vsel %vm367_vm2, %v934_v51, -inf }
 0x2ab   :  { %943 = vmax.xlane.f32.xlu1 %v942_v52  ;;  %946 = vmax.xlane.f32.xlu0 %v945_v53 }
 0x327   :  { %v478_v57 = vpop.xlane.xlu1 %477 }
 0x328   :  { %v475_v54 = vpop.xlane.xlu0 %474  ;;  %v480_v61 = vsub.f32 %v470_v33, %v478_v57 }
 0x329   :  { %v479_v55 = vsub.f32 %v465_v35, %v475_v54 }
 0x32a   :  { %v483_v2 = vmul.f32 1.442695, %v480_v61 }
 0x32b   :  { %v481_v59 = vmul.f32 1.442695, %v479_v55 }
 0x32c   :  { %v370_v56 = vpop.xlane.xlu0 %369 }
 0x32d   :  { %v374_v58 = vsub.f32 %v359_v37, %v370_v56 }
 0x32f   :  { %v376_v60 = vmul.f32 1.442695, %v374_v58 }
 0x330   :  { %v373_v62 = vpop.xlane.xlu0 %372  ;;  %v750_v4 = vpop.xlane.xlu1 %749 }
 0x331   :  { %5855 = vpow2.f32 %v376_v60  ;;  %v375_v63 = vsub.f32 %v364_v39, %v373_v62  ;;  %v754_v31 = vsub.f32 %v6399_v43, %v750_v4 }
 0x332   :  { %5857 = vpow2.f32 %v481_v59 }
 0x333   :  { %v378_v1 = vmul.f32 1.442695, %v375_v63  ;;  %v756_v32 = vmul.f32 1.442695, %v754_v31  ;;  %v112_v31 = vld [vmem:[#allocation5 + $0x8] sm:$0xff] }
 0x334   :  { %v753_v3 = vpop.xlane.xlu0 %752 }
 0x335   :  { %v755_v5 = vsub.f32 %v745_v44, %v753_v3  ;;  %5859 = vpow2.f32 %v378_v1 }
 0x336   :  { %5861 = vpow2.f32 %v483_v2 }
 0x337   :  { %v758_v8 = vmul.f32 1.442695, %v755_v5 }
 0x338   :  { %v947_v9 = vpop.xlane.xlu0 %946  ;;  %v944_v10 = vpop.xlane.xlu1 %943 }
 0x339   :  { %v949_v11 = vsub.f32 %v939_v49, %v947_v9  ;;  %5863 = vpow2.f32 %v758_v8  ;;  %v948_v13 = vsub.f32 %v934_v51, %v944_v10 }
 0x33b   :  { %v5856_v12 = vpop.eup %5855  ;;  %v952_v14 = vmul.f32 1.442695, %v949_v11  ;;  %v950_v18 = vmul.f32 1.442695, %v948_v13 }
 0x33c   :  { %v380_v15 = vsel %vm367_vm2, %v5856_v12, 0.0  ;;  %v5858_v16 = vpop.eup %5857 }
 0x33d   :  { %381 = vadd.xlane.f32.xlu1 %v380_v15  ;;  %5865 = vpow2.f32 %v952_v14  ;;  %v485_v19 = vsel %vm367_vm2, %v5858_v16, 0.0 }
 0x33e   :  { %5867 = vpow2.f32 %v950_v18 }
 0x33f   :  { %v5860_v17 = vpop.eup %5859  ;;  %5869 = vpow2.f32 %v756_v32 }
 0x340   :  { %v383_v20 = vsel %vm367_vm2, %v5860_v17, 0.0  ;;  %v5862_v21 = vpop.eup %5861 }
 0x341   :  { %486 = vadd.xlane.f32.xlu1 %v485_v19  ;;  %384 = vadd.xlane.f32.xlu0 %v383_v20  ;;  %v488_v22 = vsel %vm367_vm2, %v5862_v21, 0.0 }
 0x343   :  { %v6411_v23 = vpop.eup %5863 }
 0x344   :  { %v763_v24 = vsel %vm367_vm2, %v6411_v23, 0.0 }
 0x345   :  { %489 = vadd.xlane.f32.xlu0 %v488_v22 }
 0x347   :  { %v6415_v25 = vpop.eup %5865 }
 0x348   :  { %v957_v28 = vsel %vm367_vm2, %v6415_v25, 0.0  ;;  %v6419_v29 = vpop.eup %5867 }
 0x349   :  { %764 = vadd.xlane.f32.xlu0 %v763_v24  ;;  %v954_v30 = vsel %vm367_vm2, %v6419_v29, 0.0  ;;  %v5870_v33 = vpop.eup %5869 }
 0x34a   :  { %v760_v34 = vsel %vm367_vm2, %v5870_v33, 0.0 }
 0x34d   :  { %958 = vadd.xlane.f32.xlu0 %v957_v28  ;;  %v1098_v28 = vld [vmem:[#allocation8 + $0x38] sm:$0xff] }
 0x351   :  { %955 = vadd.xlane.f32.xlu0 %v954_v30  ;;  %v111_v30 = vld [vmem:[#allocation5] sm:$0xff] }
 0x352   :  { %5766 = vrot.lane.b32.xlu1 %v6392_v26, %s6188_s0  ;;  %v6450_v32 = vpack.c.bf16 %v112_v31, %v111_v30  ;;  %5056 = vmatprep.mubr.msk.f32.mxu1 %vm129_vm0, %v111_v30 }
 0x367   :  { %5771 = vrot.lane.b32.xlu0 %v6392_v26, %s6187_s5 }
 0x376   :  { %761 = vadd.xlane.f32.xlu1 %v760_v34 }
 0x387   :  { %5776 = vrot.lane.b32.xlu1 %v6392_v26, %s6189_s25 }
 0x3ca   :  { %v382_v35 = vpop.xlane.xlu1 %381 }
 0x3ce   :  { %v487_v36 = vpop.xlane.xlu1 %486  ;;  %v385_v37 = vpop.xlane.xlu0 %384 }
 0x3cf   :  { %5871 = vrcp.f32 %v487_v36 }
 0x3d0   :  { %5873 = vrcp.f32 %v382_v35  ;;  %v1082_v35 = vlaneseq }
 0x3d2   :  { %v5767_v38 = vpop.permute.xlu1 %5766  ;;  %v490_v41 = vpop.xlane.xlu0 %489 }
 0x3d3   :  { %v5769_v39 = vunpack.i.h.bf16 %v5767_v38  ;;  %v5768_v40 = vunpack.i.l.bf16 %v5767_v38  ;;  %5875 = vrcp.f32 %v490_v41 }
 0x3d4   :  { %5877 = vrcp.f32 %v385_v37 }
 0x3d5   :  { %v5413_v42 = vpack.c.bf16 %v5769_v39, %v5768_v40  ;;  %v6456_v39 = vshrl.u32 %v1082_v35, 7 }
 0x3d6   :  { %v765_v43 = vpop.xlane.xlu0 %764 }
 0x3d7   :  { %5414 = vmatprep.subr.bf16.mxu0 %v5413_v42  ;;  %5879 = vrcp.f32 %v765_v43  ;;  %v1084_v41 = vsub.s32 0, %v6456_v39  ;;  %v1090_v43 = vsub.s32 1, %v6456_v39 }
 0x3d8   :  { %5416 = vmatpush3.bf16.msra.mxu0 %v5413_v42  ;;  %v6462_v42 = vld [vmem:[%s7027_s6] sm:$0xff] }
 0x3d9   :  { %v5872_v44 = vpop.eup %5871  ;;  %5418 = vmatprep.subr.bf16.mxu0 %v6394_v27 }
 0x3da   :  { %v493_v45 = vmul.f32 %v5872_v44, %v5858_v16  ;;  %v959_v26 = vpop.xlane.xlu0 %958  ;;  %v5874_v46 = vpop.eup %5873  ;;  %v1085_v44 = vrot.slane %v6462_v42, %v1084_v41 }
 0x3db   :  { %v388_v50 = vmul.f32 %v5874_v46, %v5856_v12  ;;  %v1091_v46 = vrot.slane %v6462_v42, %v1090_v43 }
 0x3dc   :  { %4999 = vmatprep.mubr.msk.f32.mxu0 %vm367_vm2, %v493_v45 }
 0x3dd   :  { %v5876_v47 = vpop.eup %5875 }
 0x3de   :  { %v956_v48 = vpop.xlane.xlu0 %955  ;;  %v494_v49 = vmul.f32 %v5876_v47, %v5862_v21  ;;  %v5878_v52 = vpop.eup %5877 }
 0x3df   :  { %v389_v56 = vmul.f32 %v5878_v52, %v5860_v17  ;;  %5881 = vrcp.f32 %v956_v48  ;;  %v114_v52 = vld [vmem:[#allocation5 + $0x18] sm:$0xff] }
 0x3e0   :  { %5000 = vmatmul.mubr.msk.f32.vlgmr.msra.gmra.mrb[2].mxu0 %vm367_vm2, %v494_v49 }
 0x3e1   :  { %5420 = vmatpush3.bf16.msra.mxu0 %v6394_v27  ;;  %5006 = vmatprep.mubr.msk.f32.mxu0 %vm367_vm2, %v388_v50  ;;  %v5880_v61 = vpop.eup %5879 }
 0x3e2   :  { %v5772_v51 = vpop.permute.xlu0 %5771  ;;  %v769_v2 = vmul.f32 %v5880_v61, %v6411_v23  ;;  %v1096_v23 = vld [vmem:[#allocation8 + $0x28] sm:$0xff] }
 0x3e3   :  { %v5774_v53 = vunpack.i.h.bf16 %v5772_v51  ;;  %v5773_v54 = vunpack.i.l.bf16 %v5772_v51  ;;  %v113_v51 = vld [vmem:[#allocation5 + $0x10] sm:$0xff] }
 0x3e5   :  { %v5427_v55 = vpack.c.bf16 %v5774_v53, %v5773_v54 }
 0x3e7   :  { %5428 = vmatprep.subr.bf16.mxu0 %v5427_v55 }
 0x3e8   :  { %5007 = vmatmul.mubr.msk.f32.vlgmr.msra.gmra.mrb[2].mxu0 %vm367_vm2, %v389_v56  ;;  %v1100_v56 = vld [vmem:[#allocation10 + $0x20] sm:$0xff] }
 0x3e9   :  { %5430 = vmatpush3.bf16.msra.mxu0 %v5427_v55  ;;  %v5882_v62 = vpop.eup %5881  ;;  %v6477_v55 = vpack.c.bf16 %v114_v52, %v113_v51 }
 0x3ea   :  { %v962_v3 = vmul.f32 %v5882_v62, %v6419_v29 }
 0x403   :  { %v762_v57 = vpop.xlane.xlu1 %761 }
 0x404   :  { %5883 = vrcp.f32 %v762_v57  ;;  %v1101_v57 = vld [vmem:[#allocation10 + $0x28] sm:$0xff] }
 0x405   :  { %5885 = vrcp.f32 %v959_v26 }
 0x407   :  { %v5777_v58 = vpop.permute.xlu1 %5776 }
 0x408   :  { %v5779_v59 = vunpack.i.h.bf16 %v5777_v58  ;;  %v5778_v60 = vunpack.i.l.bf16 %v5777_v58  ;;  %v1102_v58 = vld [vmem:[#allocation10 + $0x30] sm:$0xff] }
 0x40a   :  { %v5437_v27 = vpack.c.bf16 %v5779_v59, %v5778_v60  ;;  %v5449_v59 = vpack.c.bf16 %v1101_v57, %v1100_v56  ;;  %v1103_v60 = vld [vmem:[#allocation10 + $0x38] sm:$0xff] }
 0x40c   :  { %5438 = vmatprep.subr.bf16.mxu0 %v5437_v27  ;;  %5450 = vmatprep.subr.bf16.mxu1 %v5449_v59 }
 0x40d   :  { %5452 = vmatpush3.bf16.msra.mxu1 %v5449_v59 }
 0x40e   :  { %v5884_v63 = vpop.eup %5883 }
 0x40f   :  { %v768_v1 = vmul.f32 %v5884_v63, %v5870_v33  ;;  %v5886_v4 = vpop.eup %5885 }
 0x410   :  { %v963_v5 = vmul.f32 %v5886_v4, %v6415_v25  ;;  %v1097_v25 = vld [vmem:[#allocation8 + $0x30] sm:$0xff] }
 0x411   :  { %5020 = vmatprep.mubr.msk.f32.mxu0 %vm367_vm2, %v768_v1  ;;  %v5445_v29 = vpack.c.bf16 %v1098_v28, %v1097_v25 }
 0x412   :  { %5021 = vmatmul.mubr.msk.f32.vlgmr.msra.gmra.mrb[2].mxu0 %vm367_vm2, %v769_v2 }
 0x413   :  { %5440 = vmatpush3.bf16.msra.mxu0 %v5437_v27  ;;  %5034 = vmatprep.mubr.msk.f32.mxu0 %vm367_vm2, %v962_v3  ;;  %v5453_v27 = vpack.c.bf16 %v1103_v60, %v1102_v58 }
 0x415   :  { %5454 = vmatprep.subr.bf16.mxu1 %v5453_v27 }
 0x416   :  { %5456 = vmatpush3.bf16.msra.mxu1 %v5453_v27 }
 0x417   :  { %5471 = vmatprep.subr.msk.bf16.mxu1 %vm6344_vm1, %v6450_v32 }
 0x419   :  { %5057 = vmatmul.mubr.msk.f32.vlgmr.msra.gmra.mrb[10].mxu1 %vm129_vm0, %v112_v31 }
 0x41a   :  { %5035 = vmatmul.mubr.msk.f32.vlgmr.msra.gmra.mrb[2].mxu0 %vm367_vm2, %v963_v5  ;;  %5059 = vmatprep.mubr.msk.f32.mxu1 %vm129_vm0, %v113_v51 }
 0x41d   :  { %5060 = vmatmul.mubr.msk.f32.gmra.mrb[12].mxu1 %vm129_vm0, %v114_v52 }
 0x41f   :  { %5474 = vmatpush3.bf16.xpose.msk.msra.mxu1 %vm6344_vm1, %v6450_v32 }
 0x420   :  { %5477 = vmatprep.subr.msk.bf16.mxu1 %vm6344_vm1, %v6477_v55 }
 0x427   :  { %5480 = vmatpush3.bf16.xpose.msk.msra.mxu1 %vm6344_vm1, %v6477_v55 }
 0x428   :  { %5499 = vmatprep.subr.msk.bf16.mxu1 %vm6344_vm1, %v6450_v32 }
 0x4ec   :  { %v5058_v63 = vpop.f32.mrb[10].mxu1 }
 0x4ed   :  { %v5036_v8 = vpop.f32.mrb[2].mxu0  ;;  %v1263_v1 = vpop.f32.mrb[11].mxu1 }
 0x4ee   :  { %v1054_v9 = vadd.f32 %v5036_v8, %v6350_v7  ;;  %v1042_v10 = vpop.f32.mrb[3].mxu0 }
 0x4ef   :  { %v1053_v11 = vadd.f32 %v1042_v10, %v6348_v6  ;;  %v1095_v6 = vld [vmem:[#allocation8 + $0x20] sm:$0xff] }
 0x4f0   :  { %v1058_v12 = vsel %vm129_vm0, %v1054_v9, 0.0  ;;  %v5441_v24 = vpack.c.bf16 %v1096_v23, %v1095_v6  ;;  %v5061_v2 = vpop.f32.mrb[12].mxu1 }
 0x4f1   :  { %1059 = vadd.xlane.f32.xlu0 %v1058_v12  ;;  %v1055_v13 = vsel %vm129_vm0, %v1053_v11, 0.0  ;;  %v1273_v3 = vpop.f32.mrb[13].mxu1  ;;  %v6543_v12 = vpack.i.bf16 %v5058_v63, %v1263_v1 }
 0x4f2   :  { %1056 = vadd.xlane.f32.xlu1 %v1055_v13  ;;  %5442 = vmatprep.subr.bf16.mxu0 %v5441_v24  ;;  %v6545_v13 = vpack.c.bf16 %v5058_v63, %v1263_v1 }
 0x4f3   :  { %5444 = vmatpush3.bf16.msra.mxu0 %v5441_v24 }
 0x4f4   :  { %5446 = vmatprep.subr.bf16.mxu0 %v5445_v29 }
 0x4f7   :  { %5448 = vmatpush3.bf16.msra.mxu0 %v5445_v29 }
 0x4f8   :  { %5459 = vmatprep.subr.msk.bf16.mxu0 %vm6344_vm1, %v6450_v32 }
 0x57e   :  { %v1060_v14 = vpop.xlane.xlu0 %1059 }
 0x57f   :  { %v1063_v15 = vmul.f32 0.03125, %v1060_v14  ;;  %v1057_v16 = vpop.xlane.xlu1 %1056  ;;  %v6547_v14 = vpack.i.bf16 %v5061_v2, %v1273_v3 }
 0x580   :  { %v1062_v17 = vmul.f32 0.03125, %v1057_v16  ;;  %v119_v16 = vld [vmem:[#allocation7 + $0x18] sm:$0xff] }
 0x581   :  { %v1065_v18 = vsub.f32 %v1054_v9, %v1063_v15  ;;  %v6549_v15 = vpack.c.bf16 %v5061_v2, %v1273_v3 }
 0x582   :  { %v1064_v19 = vsub.f32 %v1053_v11, %v1062_v17  ;;  %v118_v17 = vld [vmem:[#allocation7 + $0x10] sm:$0xff] }
 0x583   :  { %v1067_v22 = vmul.f32 %v1065_v18, %v1065_v18 }
 0x584   :  { %v1066_v20 = vmul.f32 %v1064_v19, %v1064_v19 }
 0x585   :  { %v1071_v7 = vsel %vm129_vm0, %v1067_v22, 0.0 }
 0x586   :  { %v1068_v21 = vsel %vm129_vm0, %v1066_v20, 0.0 }
 0x587   :  { %1069 = vadd.xlane.f32.xlu1 %v1068_v21 }
 0x58b   :  { %1072 = vadd.xlane.f32.xlu1 %v1071_v7 }
 0x614   :  { %v1070_v33 = vpop.xlane.xlu1 %1069 }
 0x615   :  { %v1074_v34 = vmul.f32 0.03125, %v1070_v33 }
 0x617   :  { %v1076_v36 = vadd.f32 1e-05, %v1074_v34 }
 0x618   :  { %v1073_v37 = vpop.xlane.xlu1 %1072 }
 0x619   :  { %5887 = vrsqrt.f32 %v1076_v36  ;;  %v1075_v38 = vmul.f32 0.03125, %v1073_v37 }
 0x61b   :  { %v1077_v40 = vadd.f32 1e-05, %v1075_v38 }
 0x61d   :  { %5889 = vrsqrt.f32 %v1077_v40 }
 0x623   :  { %v5888_v45 = vpop.eup %5887 }
 0x624   :  { %v1080_v26 = vmul.f32 %v5888_v45, %v1064_v19 }
 0x626   :  { %v1086_v47 = vmul.f32 %v1085_v44, %v1080_v26 }
 0x627   :  { %v5890_v48 = vpop.eup %5889 }
 0x628   :  { %v1081_v49 = vmul.f32 %v5890_v48, %v1065_v18  ;;  %v6471_v50 = vadd.f32 %v1091_v46, %v1086_v47 }
 0x62a   :  { %v1087_v53 = vmul.f32 %v1085_v44, %v1081_v49  ;;  %5045 = vmatprep.mubr.msk.f32.mxu0 %vm129_vm0, %v6471_v50 }
 0x62c   :  { %v6475_v54 = vadd.f32 %v1091_v46, %v1087_v53 }
 0x62e   :  { %5046 = vmatmul.mubr.msk.f32.vlgmr.msra.gmra.mrb[4].mxu0 %vm129_vm0, %v6475_v54 }
 0x62f   :  { %5462 = vmatpush3.bf16.xpose.msk.msra.mxu0 %vm6344_vm1, %v6450_v32 }
 0x630   :  { %5465 = vmatprep.subr.msk.bf16.mxu0 %vm6344_vm1, %v6477_v55 }
 0x637   :  { %5468 = vmatpush3.bf16.xpose.msk.msra.mxu0 %vm6344_vm1, %v6477_v55 }
 0x701   :  { %v5047_v61 = vpop.f32.mrb[4].mxu0 }
 0x702   :  { %1387 = vrot.lane.b32.xlu1 %v5047_v61, %s6188_s0  ;;  %v1176_v62 = vpop.f32.mrb[5].mxu0 }
 0x703   :  { %1385 = vrot.lane.b32.xlu0 %v1176_v62, %s6188_s0  ;;  %5070 = vmatprep.mubr.msk.f32.mxu0 %vm129_vm0, %v1176_v62 }
 0x704   :  { %5071 = vmatmul.mubr.msk.f32.vlgmr.msra.gmra.mrb[6].mxu0 %vm129_vm0, %v5047_v61 }
 0x706   :  { %1668 = vrot.lane.b32.xlu1 %v1176_v62, %s6187_s5 }
 0x707   :  { %1670 = vrot.lane.b32.xlu0 %v5047_v61, %s6187_s5 }
 0x70a   :  { %1868 = vrot.lane.b32.xlu1 %v1176_v62, %s6189_s25 }
 0x70b   :  { %1870 = vrot.lane.b32.xlu0 %v5047_v61, %s6189_s25 }
 0x774   :  { %v1388_v4 = vpop.permute.xlu1 %1387 }
 0x775   :  { %v1386_v5 = vpop.permute.xlu0 %1385 }
 0x776   :  { %5081 = vmatprep.mubr.msk.f32.mxu1 %vm129_vm0, %v1386_v5 }
 0x777   :  { %5082 = vmatmul.mubr.msk.f32.vlgmr.msra.gmra.mrb[14].mxu1 %vm129_vm0, %v1388_v4 }
 0x778   :  { %5502 = vmatpush3.bf16.xpose.msk.msra.mxu1 %vm6344_vm1, %v6450_v32  ;;  %v1669_v8 = vpop.permute.xlu1 %1668 }
 0x779   :  { %5114 = vmatprep.mubr.msk.f32.mxu1 %vm129_vm0, %v1669_v8  ;;  %5505 = vmatprep.subr.msk.bf16.mxu1 %vm6344_vm1, %v6477_v55  ;;  %v1671_v9 = vpop.permute.xlu0 %1670 }
 0x77c   :  { %v1869_v10 = vpop.permute.xlu1 %1868 }
 0x77d   :  { %v1871_v11 = vpop.permute.xlu0 %1870 }
 0x780   :  { %5508 = vmatpush3.bf16.xpose.msk.msra.mxu1 %vm6344_vm1, %v6477_v55 }
 0x781   :  { %5519 = vmatprep.subr.msk.bf16.mxu1 %vm6344_vm1, %v6450_v32 }
 0x787   :  { %5115 = vmatmul.mubr.msk.f32.vlgmr.msra.gmra.mrb[16].mxu1 %vm129_vm0, %v1671_v9 }
 0x788   :  { %5522 = vmatpush3.bf16.xpose.msk.msra.mxu1 %vm6344_vm1, %v6450_v32  ;;  %5136 = vmatprep.mubr.msk.f32.mxu1 %vm129_vm0, %v1869_v10 }
 0x789   :  { %5525 = vmatprep.subr.msk.bf16.mxu1 %vm6344_vm1, %v6477_v55 }
 0x790   :  { %5528 = vmatpush3.bf16.xpose.msk.msra.mxu1 %vm6344_vm1, %v6477_v55 }
 0x797   :  { %5137 = vmatmul.mubr.msk.f32.vlgmr.msra.gmra.mrb[18].mxu1 %vm129_vm0, %v1871_v11 }
 0x7d7   :  { %v5072_v18 = vpop.f32.mrb[6].mxu0 }
 0x7d8   :  { %v1360_v19 = vadd.f32 %v5072_v18, %v119_v16  ;;  %v1354_v20 = vpop.f32.mrb[7].mxu0 }
 0x7d9   :  { %v1355_v21 = vadd.f32 %v1354_v20, %v118_v17 }
 0x7da   :  { %v1366_v22 = vsel %vm129_vm0, %v1360_v19, -inf }
 0x7db   :  { %1367 = vmax.xlane.f32.xlu1 %v1366_v22  ;;  %v1363_v7 = vsel %vm129_vm0, %v1355_v21, -inf }
 0x7dc   :  { %1364 = vmax.xlane.f32.xlu0 %v1363_v7 }
 0x84a   :  { %v5083_v6 = vpop.f32.mrb[14].mxu1 }
 0x84b   :  { %v1465_v23 = vadd.f32 %v5083_v6, %v119_v16  ;;  %v1459_v24 = vpop.f32.mrb[15].mxu1 }
 0x84c   :  { %v1460_v25 = vadd.f32 %v1459_v24, %v118_v17 }
 0x84d   :  { %v1471_v28 = vsel %vm129_vm0, %v1465_v23, -inf }
 0x84e   :  { %1472 = vmax.xlane.f32.xlu0 %v1471_v28  ;;  %v1468_v29 = vsel %vm129_vm0, %v1460_v25, -inf }
 0x84f   :  { %1469 = vmax.xlane.f32.xlu1 %v1468_v29 }
 0x85a   :  { %v5116_v30 = vpop.f32.mrb[16].mxu1 }
 0x85b   :  { %v6555_v31 = vadd.f32 %v5116_v30, %v119_v16  ;;  %v1742_v33 = vpop.f32.mrb[17].mxu1 }
 0x85c   :  { %v6557_v34 = vadd.f32 %v1742_v33, %v118_v17 }
 0x85d   :  { %v1754_v35 = vsel %vm129_vm0, %v6555_v31, -inf }
 0x85e   :  { %1755 = vmax.xlane.f32.xlu1 %v1754_v35  ;;  %v1751_v36 = vsel %vm129_vm0, %v6557_v34, -inf }
 0x85f   :  { %1752 = vmax.xlane.f32.xlu0 %v1751_v36 }
 0x868   :  { %v1368_v46 = vpop.xlane.xlu1 %1367 }
 0x869   :  { %v1365_v47 = vpop.xlane.xlu0 %1364  ;;  %v1370_v48 = vsub.f32 %v1360_v19, %v1368_v46 }
 0x86a   :  { %v5138_v37 = vpop.f32.mrb[18].mxu1  ;;  %v1369_v49 = vsub.f32 %v1355_v21, %v1365_v47 }
 0x86b   :  { %v6563_v38 = vadd.f32 %v5138_v37, %v119_v16  ;;  %v1942_v40 = vpop.f32.mrb[19].mxu1  ;;  %v1373_v51 = vmul.f32 1.442695, %v1370_v48 }
 0x86c   :  { %v1943_v44 = vadd.f32 %v1942_v40, %v118_v17  ;;  %v1371_v52 = vmul.f32 1.442695, %v1369_v49 }
 0x86d   :  { %v1954_v45 = vsel %vm129_vm0, %v6563_v38, -inf  ;;  %5891 = vpow2.f32 %v1373_v51 }
 0x86e   :  { %1955 = vmax.xlane.f32.xlu1 %v1954_v45  ;;  %v1951_v26 = vsel %vm129_vm0, %v1943_v44, -inf  ;;  %5893 = vpow2.f32 %v1371_v52 }
 0x86f   :  { %1952 = vmax.xlane.f32.xlu0 %v1951_v26 }
 0x877   :  { %v6572_v53 = vpop.eup %5891 }
 0x878   :  { %v6574_v56 = vpop.eup %5893  ;;  %v1378_v57 = vsel %vm129_vm0, %v6572_v53, 0.0 }
 0x879   :  { %v1375_v58 = vsel %vm129_vm0, %v6574_v56, 0.0 }
 0x87f   :  { %5786 = vrot.lane.b32.xlu1 %v6547_v14, %s6188_s0 }
 0x885   :  { %5781 = vrot.lane.b32.xlu0 %v6543_v12, %s6188_s0 }
 0x8a3   :  { %1379 = vadd.xlane.f32.xlu1 %v1378_v57 }
 0x8a4   :  { %1376 = vadd.xlane.f32.xlu0 %v1375_v58 }
 0x8db   :  { %v1473_v59 = vpop.xlane.xlu0 %1472 }
 0x8dc   :  { %v1475_v60 = vsub.f32 %v1465_v23, %v1473_v59  ;;  %v1470_v27 = vpop.xlane.xlu1 %1469 }
 0x8dd   :  { %v1474_v61 = vsub.f32 %v1460_v25, %v1470_v27 }
 0x8de   :  { %v1478_v62 = vmul.f32 1.442695, %v1475_v60 }
 0x8df   :  { %v1476_v63 = vmul.f32 1.442695, %v1474_v61 }
 0x8e0   :  { %5895 = vpow2.f32 %v1478_v62 }
 0x8e1   :  { %5897 = vpow2.f32 %v1476_v63 }
 0x8ea   :  { %v6580_v1 = vpop.eup %5895 }
 0x8eb   :  { %v5898_v2 = vpop.eup %5897  ;;  %v1483_v3 = vsel %vm129_vm0, %v6580_v1, 0.0  ;;  %v1756_v5 = vpop.xlane.xlu1 %1755 }
 0x8ec   :  { %1484 = vadd.xlane.f32.xlu1 %v1483_v3  ;;  %v1480_v4 = vsel %vm129_vm0, %v5898_v2, 0.0  ;;  %v1753_v8 = vpop.xlane.xlu0 %1752  ;;  %v1758_v7 = vsub.f32 %v6555_v31, %v1756_v5 }
 0x8ed   :  { %1481 = vadd.xlane.f32.xlu0 %v1480_v4  ;;  %v1757_v6 = vsub.f32 %v6557_v34, %v1753_v8 }
 0x8ee   :  { %v1761_v23 = vmul.f32 1.442695, %v1758_v7 }
 0x8ef   :  { %v1759_v25 = vmul.f32 1.442695, %v1757_v6 }
 0x8f0   :  { %5899 = vpow2.f32 %v1761_v23 }
 0x8f1   :  { %5901 = vpow2.f32 %v1759_v25 }
 0x8fa   :  { %v6593_v33 = vpop.eup %5899 }
 0x8fb   :  { %v1956_v9 = vpop.xlane.xlu1 %1955  ;;  %v6595_v35 = vpop.eup %5901  ;;  %v1766_v31 = vsel %vm129_vm0, %v6593_v33, 0.0 }
 0x8fc   :  { %v1953_v10 = vpop.xlane.xlu0 %1952  ;;  %v1958_v28 = vsub.f32 %v6563_v38, %v1956_v9  ;;  %v1763_v34 = vsel %vm129_vm0, %v6595_v35, 0.0 }
 0x8fd   :  { %5796 = vrot.lane.b32.xlu1 %v6547_v14, %s6187_s5  ;;  %v1957_v24 = vsub.f32 %v1943_v44, %v1953_v10 }
 0x8fe   :  { %v1961_v30 = vmul.f32 1.442695, %v1958_v28 }
 0x8ff   :  { %v5787_v11 = vpop.permute.xlu1 %5786  ;;  %v1959_v29 = vmul.f32 1.442695, %v1957_v24 }
 0x900   :  { %v5782_v16 = vpop.permute.xlu0 %5781  ;;  %v5789_v17 = vunpack.i.h.bf16 %v5787_v11  ;;  %v5788_v18 = vunpack.i.l.bf16 %v5787_v11 }
 0x901   :  { %v5784_v19 = vunpack.i.h.bf16 %v5782_v16  ;;  %v5783_v20 = vunpack.i.l.bf16 %v5782_v16  ;;  %5903 = vpow2.f32 %v1959_v29 }
 0x902   :  { %v5485_v22 = vpack.c.bf16 %v5789_v17, %v5788_v18  ;;  %5905 = vpow2.f32 %v1961_v30 }
 0x903   :  { %v5481_v21 = vpack.c.bf16 %v5784_v19, %v5783_v20  ;;  %5791 = vrot.lane.b32.xlu0 %v6543_v12, %s6187_s5 }
 0x905   :  { %5482 = vmatprep.subr.bf16.mxu0 %v5481_v21 }
 0x906   :  { %5484 = vmatpush3.bf16.msra.mxu0 %v5481_v21 }
 0x907   :  { %5486 = vmatprep.subr.bf16.mxu0 %v5485_v22 }
 0x90a   :  { %5488 = vmatpush3.bf16.msra.mxu0 %v5485_v22 }
 0x90b   :  { %5490 = vmatprep.subr.bf16.mxu0 %v6545_v13  ;;  %v6599_v36 = vpop.eup %5903 }
 0x90c   :  { %v6603_v37 = vpop.eup %5905  ;;  %v1963_v38 = vsel %vm129_vm0, %v6599_v36, 0.0 }
 0x90d   :  { %v1966_v40 = vsel %vm129_vm0, %v6603_v37, 0.0 }
 0x921   :  { %1767 = vadd.xlane.f32.xlu1 %v1766_v31 }
 0x922   :  { %1764 = vadd.xlane.f32.xlu0 %v1763_v34 }
 0x925   :  { %1964 = vadd.xlane.f32.xlu1 %v1963_v38 }
 0x926   :  { %1967 = vadd.xlane.f32.xlu0 %v1966_v40 }
 0x930   :  { %v1380_v44 = vpop.xlane.xlu1 %1379 }
 0x931   :  { %v1377_v45 = vpop.xlane.xlu0 %1376 }
 0x932   :  { %5907 = vrcp.f32 %v1377_v45 }
 0x936   :  { %5801 = vrot.lane.b32.xlu1 %v6543_v12, %s6189_s25 }
 0x93c   :  { %5806 = vrot.lane.b32.xlu0 %v6547_v14, %s6189_s25  ;;  %v5908_v47 = vpop.eup %5907 }
 0x93d   :  { %v1383_v12 = vmul.f32 %v5908_v47, %v6574_v56 }
 0x979   :  { %v1485_v26 = vpop.xlane.xlu1 %1484 }
 0x97a   :  { %5909 = vrcp.f32 %v1485_v26  ;;  %v1482_v46 = vpop.xlane.xlu0 %1481  ;;  %v2110_v26 = vld [vmem:[#allocation11 + $0x10] sm:$0xff] }
 0x97b   :  { %5911 = vrcp.f32 %v1482_v46  ;;  %v2111_v46 = vld [vmem:[#allocation11 + $0x18] sm:$0xff] }
 0x97c   :  { %5913 = vrcp.f32 %v1380_v44  ;;  %v2109_v44 = vld [vmem:[#allocation11 + $0x8] sm:$0xff]  ;;  %v5541_v47 = vpack.c.bf16 %v2111_v46, %v2110_v26 }
 0x97d   :  { %v5797_v59 = vpop.permute.xlu1 %5796  ;;  %v2346_v26 = vld [vmem:[#allocation8 + $0x48] sm:$0xff] }
 0x97e   :  { %v5792_v51 = vpop.permute.xlu0 %5791  ;;  %v5799_v27 = vunpack.i.h.bf16 %v5797_v59  ;;  %v5798_v61 = vunpack.i.l.bf16 %v5797_v59 }
 0x97f   :  { %v5794_v14 = vunpack.i.h.bf16 %v5792_v51  ;;  %v5793_v58 = vunpack.i.l.bf16 %v5792_v51  ;;  %v2202_v51 = vld [vmem:[#allocation11 + $0x30] sm:$0xff] }
 0x980   :  { %v5513_v56 = vpack.c.bf16 %v5799_v27, %v5798_v61 }
 0x981   :  { %v5509_v62 = vpack.c.bf16 %v5794_v14, %v5793_v58 }
 0x984   :  { %v5910_v48 = vpop.eup %5909 }
 0x985   :  { %v5912_v49 = vpop.eup %5911  ;;  %v1489_v57 = vmul.f32 %v5910_v48, %v6580_v1  ;;  %v2200_v48 = vld [vmem:[#allocation11 + $0x20] sm:$0xff] }
 0x986   :  { %v1488_v52 = vmul.f32 %v5912_v49, %v5898_v2  ;;  %v5914_v60 = vpop.eup %5913  ;;  %v2201_v49 = vld [vmem:[#allocation11 + $0x28] sm:$0xff] }
 0x987   :  { %v1384_v63 = vmul.f32 %v5914_v60, %v6572_v53 }
 0x988   :  { %5092 = vmatprep.mubr.msk.f32.mxu0 %vm129_vm0, %v1488_v52  ;;  %v5545_v52 = vpack.c.bf16 %v2201_v49, %v2200_v48  ;;  %v2348_v48 = vld [vmem:[#allocation8 + $0x58] sm:$0xff] }
 0x989   :  { %5093 = vmatmul.mubr.msk.f32.vlgmr.msra.gmra.mrb[8].mxu0 %vm129_vm0, %v1489_v57 }
 0x98a   :  { %5492 = vmatpush3.bf16.msra.mxu0 %v6545_v13  ;;  %5103 = vmatprep.mubr.msk.f32.mxu0 %vm129_vm0, %v1383_v12  ;;  %v2203_v12 = vld [vmem:[#allocation11 + $0x38] sm:$0xff] }
 0x98b   :  { %5494 = vmatprep.subr.bf16.mxu0 %v6549_v15  ;;  %v5551_v14 = vpack.c.bf16 %v2203_v12, %v2202_v51  ;;  %5547 = vmatprep.subr.msk.bf16.mxu1 %vm6639_vm4, %v5545_v52  ;;  %v2350_v51 = vld [vmem:[#allocation10 + $0x40] sm:$0xff] }
 0x98c   :  { %5550 = vmatpush3.bf16.xpose.msk.msra.mxu1 %vm6639_vm4, %v5545_v52  ;;  %v2351_v52 = vld [vmem:[#allocation10 + $0x48] sm:$0xff] }
 0x98d   :  { %5553 = vmatprep.subr.msk.bf16.mxu1 %vm6639_vm4, %v5551_v14  ;;  %v5565_v12 = vpack.c.bf16 %v2351_v52, %v2350_v51 }
 0x98e   :  { %5496 = vmatpush3.bf16.msra.mxu0 %v6549_v15 }
 0x98f   :  { %5510 = vmatprep.subr.bf16.mxu0 %v5509_v62 }
 0x991   :  { %5104 = vmatmul.mubr.msk.f32.vlgmr.msra.gmra.mrb[8].mxu0 %vm129_vm0, %v1384_v63  ;;  %v2098_v63 = vsub.s32 2, %v6456_v39 }
 0x992   :  { %5512 = vmatpush3.bf16.msra.mxu0 %v5509_v62 }
 0x993   :  { %5514 = vmatprep.subr.bf16.mxu0 %v5513_v56 }
 0x994   :  { %5556 = vmatpush3.bf16.xpose.msk.msra.mxu1 %vm6639_vm4, %v5551_v14 }
 0x996   :  { %5516 = vmatpush3.bf16.msra.mxu0 %v5513_v56  ;;  %v2104_v56 = vsub.s32 3, %v6456_v39 }
 0x9ae   :  { %v1768_v13 = vpop.xlane.xlu1 %1767 }
 0x9af   :  { %5915 = vrcp.f32 %v1768_v13  ;;  %v1765_v1 = vpop.xlane.xlu0 %1764  ;;  %v2099_v13 = vrot.slane %v6462_v42, %v2098_v63 }
 0x9b0   :  { %5917 = vrcp.f32 %v1765_v1 }
 0x9b2   :  { %v1965_v2 = vpop.xlane.xlu1 %1964 }
 0x9b3   :  { %5919 = vrcp.f32 %v1965_v2  ;;  %v1968_v3 = vpop.xlane.xlu0 %1967 }
 0x9b4   :  { %5921 = vrcp.f32 %v1968_v3 }
 0x9b6   :  { %v5802_v4 = vpop.permute.xlu1 %5801 }
 0x9b7   :  { %v5804_v5 = vunpack.i.h.bf16 %v5802_v4  ;;  %v5803_v15 = vunpack.i.l.bf16 %v5802_v4  ;;  %v5807_v8 = vpop.permute.xlu0 %5806 }
 0x9b8   :  { %v5809_v11 = vunpack.i.h.bf16 %v5807_v8  ;;  %v5808_v16 = vunpack.i.l.bf16 %v5807_v8 }
 0x9b9   :  { %v5916_v53 = vpop.eup %5915  ;;  %v5529_v9 = vpack.c.bf16 %v5804_v5, %v5803_v15  ;;  %v2105_v5 = vrot.slane %v6462_v42, %v2104_v56 }
 0x9ba   :  { %v5918_v10 = vpop.eup %5917  ;;  %v1772_v18 = vmul.f32 %v5916_v53, %v6593_v33  ;;  %v5533_v20 = vpack.c.bf16 %v5809_v11, %v5808_v16 }
 0x9bb   :  { %5530 = vmatprep.subr.bf16.mxu0 %v5529_v9  ;;  %v1771_v17 = vmul.f32 %v5918_v10, %v6595_v35  ;;  %v2114_v10 = vsub.s32 6, %v6456_v39 }
 0x9bd   :  { %v5920_v19 = vpop.eup %5919  ;;  %5125 = vmatprep.mubr.msk.f32.mxu0 %vm129_vm0, %v1771_v17  ;;  %v2115_v11 = vrot.slane %v6462_v42, %v2114_v10 }
 0x9be   :  { %5126 = vmatmul.mubr.msk.f32.vlgmr.msra.gmra.mrb[8].mxu0 %vm129_vm0, %v1772_v18  ;;  %v1971_v21 = vmul.f32 %v5920_v19, %v6599_v36  ;;  %v5922_v22 = vpop.eup %5921 }
 0x9bf   :  { %5532 = vmatpush3.bf16.msra.mxu0 %v5529_v9  ;;  %v1972_v7 = vmul.f32 %v5922_v22, %v6603_v37  ;;  %v2206_v22 = vsub.s32 7, %v6456_v39 }
 0x9c0   :  { %5534 = vmatprep.subr.bf16.mxu0 %v5533_v20  ;;  %5147 = vmatprep.mubr.msk.f32.mxu0 %vm129_vm0, %v1971_v21 }
 0x9c3   :  { %5536 = vmatpush3.bf16.msra.mxu0 %v5533_v20 }
 0x9c6   :  { %5148 = vmatmul.mubr.msk.f32.vlgmr.msra.gmra.mrb[8].mxu0 %vm129_vm0, %v1972_v7  ;;  %v2207_v7 = vrot.slane %v6462_v42, %v2206_v22 }
 0xa99   :  { %v5149_v6 = vpop.f32.mrb[8].mxu0 }
 0xa9a   :  { %v2069_v23 = vadd.f32 %v5149_v6, %v6475_v54  ;;  %v2057_v24 = vpop.f32.mrb[9].mxu0 }
 0xa9b   :  { %v2068_v25 = vadd.f32 %v2057_v24, %v6471_v50  ;;  %v2108_v50 = vld [vmem:[#allocation11] sm:$0xff] }
 0xa9c   :  { %v2073_v28 = vsel %vm129_vm0, %v2069_v23, 0.0  ;;  %v5537_v45 = vpack.c.bf16 %v2109_v44, %v2108_v50 }
 0xa9d   :  { %2074 = vadd.xlane.f32.xlu0 %v2073_v28  ;;  %v2070_v29 = vsel %vm129_vm0, %v2068_v25, 0.0 }
 0xa9e   :  { %2071 = vadd.xlane.f32.xlu1 %v2070_v29  ;;  %5538 = vmatprep.subr.bf16.mxu0 %v5537_v45 }
 0xa9f   :  { %5540 = vmatpush3.bf16.msra.mxu0 %v5537_v45  ;;  %v2345_v45 = vld [vmem:[#allocation8 + $0x40] sm:$0xff] }
 0xaa0   :  { %5542 = vmatprep.subr.bf16.mxu0 %v5541_v47  ;;  %v5557_v46 = vpack.c.bf16 %v2346_v26, %v2345_v45 }
 0xaa3   :  { %5544 = vmatpush3.bf16.msra.mxu0 %v5541_v47  ;;  %v2347_v47 = vld [vmem:[#allocation8 + $0x50] sm:$0xff] }
 0xaa4   :  { %5558 = vmatprep.subr.bf16.mxu0 %v5557_v46  ;;  %v5561_v49 = vpack.c.bf16 %v2348_v48, %v2347_v47 }
 0xb2a   :  { %v2075_v30 = vpop.xlane.xlu0 %2074 }
 0xb2b   :  { %v2077_v33 = vmul.f32 0.03125, %v2075_v30  ;;  %v2072_v35 = vpop.xlane.xlu1 %2071 }
 0xb2c   :  { %v2076_v31 = vmul.f32 0.03125, %v2072_v35 }
 0xb2d   :  { %v2079_v36 = vsub.f32 %v2069_v23, %v2077_v33 }
 0xb2e   :  { %v2078_v34 = vsub.f32 %v2068_v25, %v2076_v31 }
 0xb2f   :  { %v2081_v37 = vmul.f32 %v2079_v36, %v2079_v36 }
 0xb30   :  { %v2080_v38 = vmul.f32 %v2078_v34, %v2078_v34 }
 0xb31   :  { %v2085_v40 = vsel %vm129_vm0, %v2081_v37, 0.0 }
 0xb32   :  { %2086 = vadd.xlane.f32.xlu1 %v2085_v40  ;;  %v2082_v54 = vsel %vm129_vm0, %v2080_v38, 0.0 }
 0xb33   :  { %2083 = vadd.xlane.f32.xlu0 %v2082_v54 }
 0xbbf   :  { %v2087_v58 = vpop.xlane.xlu1 %2086 }
 0xbc0   :  { %v2089_v59 = vmul.f32 0.03125, %v2087_v58  ;;  %v2084_v60 = vpop.xlane.xlu0 %2083 }
 0xbc1   :  { %v2088_v27 = vmul.f32 0.03125, %v2084_v60 }
 0xbc2   :  { %v2091_v61 = vadd.f32 1e-05, %v2089_v59 }
 0xbc3   :  { %v2090_v62 = vadd.f32 1e-05, %v2088_v27 }
 0xbc4   :  { %5923 = vrsqrt.f32 %v2091_v61 }
 0xbc5   :  { %5925 = vrsqrt.f32 %v2090_v62  ;;  %v2332_v62 = vsub.s32 4, %v6456_v39 }
 0xbce   :  { %v5924_v1 = vpop.eup %5923 }
 0xbcf   :  { %v5926_v2 = vpop.eup %5925  ;;  %v2095_v3 = vmul.f32 %v5924_v1, %v2079_v36  ;;  %v2333_v1 = vrot.slane %v6462_v42, %v2332_v62 }
 0xbd0   :  { %v2094_v4 = vmul.f32 %v5926_v2, %v2078_v34 }
 0xbd1   :  { %v2101_v15 = vmul.f32 %v2099_v13, %v2095_v3 }
 0xbd2   :  { %v2100_v8 = vmul.f32 %v2099_v13, %v2094_v4  ;;  %v2338_v13 = vsub.s32 5, %v6456_v39 }
 0xbd3   :  { %v2107_v9 = vadd.f32 %v2105_v5, %v2101_v15 }
 0xbd4   :  { %v2106_v53 = vadd.f32 %v2105_v5, %v2100_v8  ;;  %v2339_v5 = vrot.slane %v6462_v42, %v2338_v13 }
 0xbd6   :  { %5158 = vmatprep.mubr.msk.f32.mxu0 %vm129_vm0, %v2106_v53 }
 0xbd7   :  { %5159 = vmatmul.mubr.msk.f32.vlgmr.msra.gmra.mrb[10].mxu0 %vm129_vm0, %v2107_v9 }
 0xbd8   :  { %5560 = vmatpush3.bf16.msra.mxu0 %v5557_v46 }
 0xbd9   :  { %5562 = vmatprep.subr.bf16.mxu0 %v5561_v49 }
 0xbdc   :  { %5564 = vmatpush3.bf16.msra.mxu0 %v5561_v49 }
 0xbdd   :  { %5566 = vmatprep.subr.bf16.mxu0 %v5565_v12 }
 0xcaa   :  { %v5160_v16 = vpop.f32.mrb[10].mxu0 }
 0xcab   :  { %v2194_v17 = vadd.f32 %v5160_v16, %v2115_v11  ;;  %v2188_v18 = vpop.f32.mrb[11].mxu0 }
 0xcac   :  { %v2189_v19 = vadd.f32 %v2188_v18, %v2115_v11  ;;  %v2353_v11 = vld [vmem:[#allocation10 + $0x58] sm:$0xff] }
 0xcad   :  { %v2198_v21 = vmax.f32 %v2194_v17, 0.0 }
 0xcae   :  { %v2197_v20 = vmax.f32 %v2189_v19, 0.0 }
 0xcb0   :  { %5169 = vmatprep.mubr.msk.f32.mxu1 %vm2208_vm3, %v2197_v20 }
 0xcb1   :  { %5170 = vmatmul.mubr.msk.f32.vlgmr.msra.gmra.mrb[20].mxu1 %vm2208_vm3, %v2198_v21 }
 0xd84   :  { %v5171_v6 = vpop.f32.mrb[20].mxu1 }
 0xd85   :  { %v2299_v23 = vadd.f32 %v5171_v6, %v2207_v7  ;;  %v2293_v24 = vpop.f32.mrb[21].mxu1 }
 0xd86   :  { %v2294_v25 = vadd.f32 %v2293_v24, %v2207_v7 }
 0xd87   :  { %v2303_v28 = vadd.f32 %v2299_v23, %v2107_v9  ;;  %v2352_v9 = vld [vmem:[#allocation10 + $0x50] sm:$0xff] }
 0xd88   :  { %v2302_v29 = vadd.f32 %v2294_v25, %v2106_v53  ;;  %v5569_v18 = vpack.c.bf16 %v2353_v11, %v2352_v9 }
 0xd89   :  { %v2307_v30 = vsel %vm129_vm0, %v2303_v28, 0.0 }
 0xd8a   :  { %2308 = vadd.xlane.f32.xlu1 %v2307_v30  ;;  %v2304_v33 = vsel %vm129_vm0, %v2302_v29, 0.0 }
 0xd8b   :  { %2305 = vadd.xlane.f32.xlu0 %v2304_v33 }
 0xe17   :  { %v2309_v35 = vpop.xlane.xlu1 %2308 }
 0xe18   :  { %v2311_v31 = vmul.f32 0.03125, %v2309_v35  ;;  %v2306_v36 = vpop.xlane.xlu0 %2305 }
 0xe19   :  { %v2310_v34 = vmul.f32 0.03125, %v2306_v36 }
 0xe1a   :  { %v2313_v37 = vsub.f32 %v2303_v28, %v2311_v31  ;;  %v6741_v31 = vld [vmem:[#allocation7 + $0x8] sm:$0xff] }
 0xe1b   :  { %v2312_v38 = vsub.f32 %v2302_v29, %v2310_v34 }
 0xe1c   :  { %v2315_v40 = vmul.f32 %v2313_v37, %v2313_v37 }
 0xe1d   :  { %v2314_v54 = vmul.f32 %v2312_v38, %v2312_v38 }
 0xe1e   :  { %v2319_v50 = vsel %vm129_vm0, %v2315_v40, 0.0 }
 0xe1f   :  { %2320 = vadd.xlane.f32.xlu1 %v2319_v50  ;;  %v2316_v44 = vsel %vm129_vm0, %v2314_v54, 0.0 }
 0xe20   :  { %2317 = vadd.xlane.f32.xlu0 %v2316_v44 }
 0xeac   :  { %v2321_v14 = vpop.xlane.xlu1 %2320 }
 0xead   :  { %v2323_v58 = vmul.f32 0.03125, %v2321_v14  ;;  %v2318_v59 = vpop.xlane.xlu0 %2317 }
 0xeae   :  { %v2322_v60 = vmul.f32 0.03125, %v2318_v59 }
 0xeaf   :  { %v2325_v27 = vadd.f32 1e-05, %v2323_v58 }
 0xeb0   :  { %v2324_v61 = vadd.f32 1e-05, %v2322_v60 }
 0xeb1   :  { %5927 = vrsqrt.f32 %v2325_v27 }
 0xeb2   :  { %5929 = vrsqrt.f32 %v2324_v61 }
 0xebb   :  { %v5928_v2 = vpop.eup %5927 }
 0xebc   :  { %v5930_v3 = vpop.eup %5929  ;;  %v2329_v4 = vmul.f32 %v5928_v2, %v2313_v37  ;;  %v6744_v37 = vld [vmem:[#allocation7] sm:$0xff] }
 0xebd   :  { %v2328_v15 = vmul.f32 %v5930_v3, %v2312_v38 }
 0xebe   :  { %v2335_v8 = vmul.f32 %v2333_v1, %v2329_v4 }
 0xebf   :  { %v2334_v53 = vmul.f32 %v2333_v1, %v2328_v15 }
 0xec0   :  { %v6683_v16 = vadd.f32 %v2339_v5, %v2335_v8 }
 0xec1   :  { %v6685_v17 = vadd.f32 %v2339_v5, %v2334_v53 }
 0xec3   :  { %5180 = vmatprep.mubr.msk.f32.mxu0 %vm129_vm0, %v6685_v17  ;;  %v6691_v19 = vpack.c.bf16 %v6683_v16, %v6685_v17 }
 0xec4   :  { %5181 = vmatmul.mubr.msk.f32.vlgmr.msra.gmra.mrb[12].mxu0 %vm129_vm0, %v6683_v16 }
 0xec5   :  { %5568 = vmatpush3.bf16.msra.mxu0 %v5565_v12  ;;  %5191 = vmatprep.mubr.msk.f32.mxu0 %vm129_vm0, %v6685_v17 }
 0xec6   :  { %5575 = vmatprep.subr.msk.bf16.mxu1 %vm6344_vm1, %v6691_v19  ;;  %5570 = vmatprep.subr.bf16.mxu0 %v5569_v18 }
 0xec7   :  { %5578 = vmatpush3.bf16.xpose.msk.msra.mxu1 %vm6344_vm1, %v6691_v19 }
 0xec9   :  { %5572 = vmatpush3.bf16.msra.mxu0 %v5569_v18 }
 0xeca   :  { %5581 = vmatprep.subr.msk.bf16.mxu0 %vm6344_vm1, %v6691_v19 }
 0xecc   :  { %5192 = vmatmul.mubr.msk.f32.vlgmr.msra.gmra.mrb[14].mxu0 %vm129_vm0, %v6683_v16 }
 0xed2   :  { %5584 = vmatpush3.bf16.xpose.msk.msra.mxu0 %vm6344_vm1, %v6691_v19 }
 0xed3   :  { %5595 = vmatprep.subr.msk.bf16.mxu0 %vm6344_vm1, %v6691_v19 }
 0xf97   :  { %v6714_v42 = vpop.f32.mrb[12].mxu0 }
 0xf98   :  { %2615 = vrot.lane.b32.xlu1 %v6714_v42, %s6188_s0  ;;  %v6718_v20 = vpop.f32.mrb[13].mxu0 }
 0xf99   :  { %2613 = vrot.lane.b32.xlu0 %v6718_v20, %s6188_s0  ;;  %5198 = vmatprep.mubr.msk.f32.mxu1 %vm129_vm0, %v6718_v20 }
 0xf9a   :  { %5199 = vmatmul.mubr.msk.f32.vlgmr.msra.gmra.mrb[22].mxu1 %vm129_vm0, %v6714_v42 }
 0xf9c   :  { %2888 = vrot.lane.b32.xlu1 %v6718_v20, %s6187_s5 }
 0xf9d   :  { %2890 = vrot.lane.b32.xlu0 %v6714_v42, %s6187_s5 }
 0xf9f   :  { %v5193_v21 = vpop.f32.mrb[14].mxu0 }
 0xfa0   :  { %v2501_v7 = vpop.f32.mrb[15].mxu0 }
 0xfa1   :  { %v6730_v6 = vpack.i.bf16 %v5193_v21, %v2501_v7  ;;  %v6732_v23 = vpack.c.bf16 %v5193_v21, %v2501_v7 }
0x100a   :  { %v2616_v24 = vpop.permute.xlu1 %2615 }
0x100b   :  { %v2614_v25 = vpop.permute.xlu0 %2613 }
0x100c   :  { %5205 = vmatprep.mubr.msk.f32.mxu0 %vm129_vm0, %v2614_v25 }
0x100d   :  { %5206 = vmatmul.mubr.msk.f32.vlgmr.msra.gmra.mrb[16].mxu0 %vm129_vm0, %v2616_v24 }
0x100e   :  { %5598 = vmatpush3.bf16.xpose.msk.msra.mxu0 %vm6344_vm1, %v6691_v19  ;;  %v2889_v28 = vpop.permute.xlu1 %2888 }
0x100f   :  { %5226 = vmatprep.mubr.msk.f32.mxu0 %vm129_vm0, %v2889_v28  ;;  %v2891_v29 = vpop.permute.xlu0 %2890 }
0x1015   :  { %5227 = vmatmul.mubr.msk.f32.vlgmr.msra.gmra.mrb[18].mxu0 %vm129_vm0, %v2891_v29 }
0x106d   :  { %v5200_v30 = vpop.f32.mrb[22].mxu1 }
0x106e   :  { %v2582_v33 = vpop.f32.mrb[23].mxu1  ;;  %v2588_v50 = vadd.f32 %v6741_v31, %v5200_v30 }
0x106f   :  { %v2583_v40 = vadd.f32 %v6744_v37, %v2582_v33 }
0x1070   :  { %v2594_v46 = vsel %vm367_vm2, %v2588_v50, -inf }
0x1071   :  { %v2591_v45 = vsel %vm367_vm2, %v2583_v40, -inf }
0x10e0   :  { %v5207_v35 = vpop.f32.mrb[16].mxu0 }
0x10e1   :  { %v2693_v36 = vadd.f32 %v6741_v31, %v5207_v35  ;;  %v2687_v34 = vpop.f32.mrb[17].mxu0 }
0x10e2   :  { %v2688_v38 = vadd.f32 %v6744_v37, %v2687_v34 }
0x10e3   :  { %v2699_v54 = vsel %vm367_vm2, %v2693_v36, -inf }
0x10e4   :  { %2700 = vmax.xlane.f32.xlu0 %v2699_v54  ;;  %v2696_v44 = vsel %vm367_vm2, %v2688_v38, -inf }
0x10e5   :  { %2697 = vmax.xlane.f32.xlu1 %v2696_v44 }
0x10e8   :  { %v5228_v26 = vpop.f32.mrb[18].mxu0  ;;  %2592 = vmax.xlane.f32.xlu0 %v2591_v45 }
0x10e9   :  { %v2968_v47 = vadd.f32 %v6741_v31, %v5228_v26  ;;  %v2962_v48 = vpop.f32.mrb[19].mxu0  ;;  %2595 = vmax.xlane.f32.xlu1 %v2594_v46 }
0x10ea   :  { %v2963_v49 = vadd.f32 %v6744_v37, %v2962_v48 }
0x10eb   :  { %v2974_v52 = vsel %vm367_vm2, %v2968_v47, -inf }
0x10ec   :  { %v2971_v51 = vsel %vm367_vm2, %v2963_v49, -inf }
0x10ed   :  { %2972 = vmax.xlane.f32.xlu0 %v2971_v51  ;;  %2975 = vmax.xlane.f32.xlu1 %v2974_v52 }
0x1171   :  { %v2701_v12 = vpop.xlane.xlu0 %2700 }
0x1172   :  { %v2698_v14 = vpop.xlane.xlu1 %2697  ;;  %v2703_v59 = vsub.f32 %v2693_v36, %v2701_v12 }
0x1173   :  { %v2702_v58 = vsub.f32 %v2688_v38, %v2698_v14 }
0x1174   :  { %v2706_v4 = vmul.f32 1.442695, %v2703_v59 }
0x1175   :  { %v2593_v60 = vpop.xlane.xlu0 %2592  ;;  %v2704_v2 = vmul.f32 1.442695, %v2702_v58 }
0x1176   :  { %v2597_v27 = vsub.f32 %v2583_v40, %v2593_v60  ;;  %v2596_v61 = vpop.xlane.xlu1 %2595 }
0x1177   :  { %v2598_v1 = vsub.f32 %v2588_v50, %v2596_v61 }
0x1178   :  { %v2599_v3 = vmul.f32 1.442695, %v2597_v27 }
0x1179   :  { %v2601_v5 = vmul.f32 1.442695, %v2598_v1 }
0x117a   :  { %5931 = vpow2.f32 %v2599_v3  ;;  %v2973_v15 = vpop.xlane.xlu0 %2972  ;;  %v2976_v8 = vpop.xlane.xlu1 %2975 }
0x117b   :  { %5933 = vpow2.f32 %v2601_v5  ;;  %v2977_v53 = vsub.f32 %v2963_v49, %v2973_v15  ;;  %v2978_v9 = vsub.f32 %v2968_v47, %v2976_v8 }
0x117c   :  { %5935 = vpow2.f32 %v2704_v2 }
0x117d   :  { %5937 = vpow2.f32 %v2706_v4  ;;  %v2979_v11 = vmul.f32 1.442695, %v2977_v53  ;;  %v2981_v18 = vmul.f32 1.442695, %v2978_v9 }
0x117f   :  { %5939 = vpow2.f32 %v2979_v11 }
0x1180   :  { %5941 = vpow2.f32 %v2981_v18 }
0x1184   :  { %v5932_v21 = vpop.eup %5931 }
0x1185   :  { %v5934_v7 = vpop.eup %5933  ;;  %v2603_v24 = vsel %vm367_vm2, %v5932_v21, 0.0 }
0x1186   :  { %v5936_v25 = vpop.eup %5935  ;;  %2604 = vadd.xlane.f32.xlu0 %v2603_v24  ;;  %v2606_v28 = vsel %vm367_vm2, %v5934_v7, 0.0 }
0x1187   :  { %v5938_v29 = vpop.eup %5937  ;;  %2607 = vadd.xlane.f32.xlu1 %v2606_v28  ;;  %v2708_v30 = vsel %vm367_vm2, %v5936_v25, 0.0 }
0x1188   :  { %v2711_v35 = vsel %vm367_vm2, %v5938_v29, 0.0 }
0x1189   :  { %v5940_v33 = vpop.eup %5939 }
0x118a   :  { %2709 = vadd.xlane.f32.xlu0 %v2708_v30  ;;  %v5942_v36 = vpop.eup %5941  ;;  %v2983_v34 = vsel %vm367_vm2, %v5940_v33, 0.0 }
0x118b   :  { %2712 = vadd.xlane.f32.xlu1 %v2711_v35  ;;  %v2986_v38 = vsel %vm367_vm2, %v5942_v36, 0.0 }
0x118e   :  { %2984 = vadd.xlane.f32.xlu0 %v2983_v34 }
0x118f   :  { %2987 = vadd.xlane.f32.xlu1 %v2986_v38 }
0x11a0   :  { %5816 = vrot.lane.b32.xlu1 %v6730_v6, %s6187_s5 }
0x11a4   :  { %5811 = vrot.lane.b32.xlu0 %v6730_v6, %s6188_s0  ;;  %3082 = vrot.lane.b32.xlu1 %v6718_v20, %s6189_s25 }
0x11a8   :  { %3084 = vrot.lane.b32.xlu0 %v6714_v42, %s6189_s25 }
0x1213   :  { %v2605_v40 = vpop.xlane.xlu0 %2604 }
0x1214   :  { %v2608_v54 = vpop.xlane.xlu1 %2607 }
0x1217   :  { %v2710_v50 = vpop.xlane.xlu0 %2709 }
0x1218   :  { %5943 = vrcp.f32 %v2710_v50  ;;  %v2713_v44 = vpop.xlane.xlu1 %2712 }
0x1219   :  { %5945 = vrcp.f32 %v2713_v44 }
0x121a   :  { %5947 = vrcp.f32 %v2605_v40 }
0x121b   :  { %v2985_v45 = vpop.xlane.xlu0 %2984  ;;  %5949 = vrcp.f32 %v2608_v54 }
0x121c   :  { %v2988_v26 = vpop.xlane.xlu1 %2987  ;;  %5951 = vrcp.f32 %v2985_v45 }
0x121d   :  { %5953 = vrcp.f32 %v2988_v26 }
0x121f   :  { %v5812_v46 = vpop.permute.xlu0 %5811 }
0x1220   :  { %v5814_v47 = vunpack.i.h.bf16 %v5812_v46  ;;  %v5813_v48 = vunpack.i.l.bf16 %v5812_v46  ;;  %v5817_v49 = vpop.permute.xlu1 %5816 }
0x1221   :  { %v5819_v14 = vunpack.i.h.bf16 %v5817_v49  ;;  %v5818_v58 = vunpack.i.l.bf16 %v5817_v49 }
0x1222   :  { %v5944_v51 = vpop.eup %5943  ;;  %v5585_v20 = vpack.c.bf16 %v5814_v47, %v5813_v48 }
0x1223   :  { %v5946_v52 = vpop.eup %5945  ;;  %v2716_v12 = vmul.f32 %v5944_v51, %v5936_v25  ;;  %v5599_v27 = vpack.c.bf16 %v5819_v14, %v5818_v58 }
0x1224   :  { %v5948_v42 = vpop.eup %5947  ;;  %5586 = vmatprep.subr.bf16.mxu1 %v5585_v20  ;;  %v2717_v59 = vmul.f32 %v5946_v52, %v5938_v29  ;;  %v3083_v15 = vpop.permute.xlu1 %3082 }
0x1225   :  { %5588 = vmatpush3.bf16.msra.mxu1 %v5585_v20  ;;  %5212 = vmatprep.mubr.msk.f32.mxu1 %vm367_vm2, %v2716_v12  ;;  %v2611_v60 = vmul.f32 %v5948_v42, %v5932_v21  ;;  %v5950_v61 = vpop.eup %5949 }
0x1226   :  { %5590 = vmatprep.subr.bf16.mxu1 %v6732_v23  ;;  %v5952_v1 = vpop.eup %5951  ;;  %v2612_v2 = vmul.f32 %v5950_v61, %v5934_v7  ;;  %v3318_v61 = vld [vmem:[#allocation8 + $0x68] sm:$0xff] }
0x1227   :  { %v2991_v3 = vmul.f32 %v5952_v1, %v5940_v33  ;;  %v5954_v4 = vpop.eup %5953 }
0x1228   :  { %5213 = vmatmul.mubr.msk.f32.vlgmr.msra.gmra.mrb[24].mxu1 %vm367_vm2, %v2717_v59  ;;  %v2992_v5 = vmul.f32 %v5954_v4, %v5942_v36 }
0x1229   :  { %5592 = vmatpush3.bf16.msra.mxu1 %v6732_v23  ;;  %5219 = vmatprep.mubr.msk.f32.mxu1 %vm367_vm2, %v2611_v60  ;;  %v3085_v23 = vpop.permute.xlu0 %3084 }
0x122a   :  { %5600 = vmatprep.subr.bf16.mxu1 %v5599_v27 }
0x1230   :  { %5220 = vmatmul.mubr.msk.f32.vlgmr.msra.gmra.mrb[24].mxu1 %vm367_vm2, %v2612_v2  ;;  %v3319_v2 = vld [vmem:[#allocation8 + $0x70] sm:$0xff] }
0x1231   :  { %5602 = vmatpush3.bf16.msra.mxu1 %v5599_v27  ;;  %5233 = vmatprep.mubr.msk.f32.mxu1 %vm367_vm2, %v2991_v3  ;;  %v3320_v3 = vld [vmem:[#allocation8 + $0x78] sm:$0xff] }
0x1232   :  { %5605 = vmatprep.subr.msk.bf16.mxu1 %vm6344_vm1, %v6691_v19  ;;  %v5617_v4 = vpack.c.bf16 %v3320_v3, %v3319_v2 }
0x1238   :  { %5234 = vmatmul.mubr.msk.f32.vlgmr.msra.gmra.mrb[24].mxu1 %vm367_vm2, %v2992_v5 }
0x1239   :  { %5240 = vmatprep.mubr.msk.f32.mxu1 %vm129_vm0, %v3083_v15 }
0x123a   :  { %5608 = vmatpush3.bf16.xpose.msk.msra.mxu1 %vm6344_vm1, %v6691_v19 }
0x1241   :  { %5241 = vmatmul.mubr.msk.f32.vlgmr.msra.gmra.mrb[26].mxu1 %vm129_vm0, %v3085_v23 }
0x1314   :  { %v5242_v8 = vpop.f32.mrb[26].mxu1 }
0x1315   :  { %v3162_v53 = vadd.f32 %v6741_v31, %v5242_v8  ;;  %v3156_v9 = vpop.f32.mrb[27].mxu1 }
0x1316   :  { %v3157_v11 = vadd.f32 %v6744_v37, %v3156_v9 }
0x1317   :  { %v3168_v18 = vsel %vm367_vm2, %v3162_v53, -inf }
0x1318   :  { %3169 = vmax.xlane.f32.xlu0 %v3168_v18  ;;  %v3165_v21 = vsel %vm367_vm2, %v3157_v11, -inf }
0x1319   :  { %3166 = vmax.xlane.f32.xlu1 %v3165_v21 }
0x13a5   :  { %v3170_v7 = vpop.xlane.xlu0 %3169 }
0x13a6   :  { %v3172_v24 = vsub.f32 %v3162_v53, %v3170_v7  ;;  %v3167_v25 = vpop.xlane.xlu1 %3166 }
0x13a7   :  { %v3171_v28 = vsub.f32 %v3157_v11, %v3167_v25  ;;  %v6818_v11 = vld [vmem:[%s7027_s6 + $0x8] sm:$0xff]  ;;  %s6190_s6 = smov [#allocation13]  }
0x13a8   :  { %v3175_v19 = vmul.f32 1.442695, %v3172_v24  ;;  %v3307_v18 = vrot.slane %v6818_v11, %v1084_v41  ;;  %v3313_v24 = vrot.slane %v6818_v11, %v1090_v43  ;;  %v6009_v41 = vld [vmem:[#allocation5] sm:$0xff]  ;;  %v3324_v43 = vld [vmem:[#allocation10 + $0x70] sm:$0xff]  ;;  %s4559_s9 = sshll.u32 %s6190_s6, 4  ;;  %s4560_s9 = int_to_ptr.vmem [resolvable:$true] %s4559_s9 }
0x13a9   :  { %v3173_v29 = vmul.f32 1.442695, %v3171_v28  ;;  %s6147_s10 = scalar_lea.vmem %s4560_s9, 256  ;;  %p6152_p7 = scmp.lt.s32.totalorder %s4560_s9, %s4560_s9 }
0x13aa   :  { %5955 = vpow2.f32 %v3175_v19  ;;  %p6148_p6 = scmp.ne.s32.totalorder %s4560_s9, %s6147_s10  ;;  %p6153_p8 = scmp.lt.s32.totalorder %s6147_s10, %s6147_s10 }
0x13ab   :  { %5957 = vpow2.f32 %v3173_v29 }
0x13ac   :  { %p6154_p9 = por %p6153_p8, %p6152_p7 }
0x13ae   :  { %p6155_p10 = pnand %p6154_p9, %p6148_p6 }
0x13b4   :  { %v5956_v30 = vpop.eup %5955 }
0x13b5   :  { %v5958_v33 = vpop.eup %5957  ;;  %v3180_v31 = vsel %vm367_vm2, %v5956_v30, 0.0 }
0x13b6   :  { %3181 = vadd.xlane.f32.xlu1 %v3180_v31  ;;  %v3177_v37 = vsel %vm367_vm2, %v5958_v33, 0.0  ;;  %v3322_v31 = vld [vmem:[#allocation10 + $0x60] sm:$0xff] }
0x13b7   :  { %3178 = vadd.xlane.f32.xlu0 %v3177_v37  ;;  %v3323_v37 = vld [vmem:[#allocation10 + $0x68] sm:$0xff] }
0x13cd   :  { %5821 = vrot.lane.b32.xlu0 %v6730_v6, %s6189_s25 }
0x1443   :  { %v3182_v35 = vpop.xlane.xlu1 %3181 }
0x1444   :  { %5959 = vrcp.f32 %v3182_v35  ;;  %v3179_v36 = vpop.xlane.xlu0 %3178  ;;  %v5621_v35 = vpack.c.bf16 %v3323_v37, %v3322_v31 }
0x1445   :  { %5961 = vrcp.f32 %v3179_v36  ;;  %v3325_v36 = vld [vmem:[#allocation10 + $0x78] sm:$0xff] }
0x1448   :  { %v5822_v34 = vpop.permute.xlu0 %5821 }
0x1449   :  { %v5824_v38 = vunpack.i.h.bf16 %v5822_v34  ;;  %v5823_v40 = vunpack.i.l.bf16 %v5822_v34  ;;  %v5625_v34 = vpack.c.bf16 %v3325_v36, %v3324_v43 }
0x144b   :  { %v5609_v54 = vpack.c.bf16 %v5824_v38, %v5823_v40  ;;  %v6010_v38 = vld [vmem:[#allocation5 + $0x8] sm:$0xff]  ;;  %v6011_v40 = vld [vmem:[#allocation5 + $0x10] sm:$0xff] }
0x144d   :  { %5610 = vmatprep.subr.bf16.mxu1 %v5609_v54 }
0x144e   :  { %v5960_v50 = vpop.eup %5959  ;;  %5612 = vmatpush3.bf16.msra.mxu1 %v5609_v54  ;;  %v6012_v54 = vld [vmem:[#allocation5 + $0x18] sm:$0xff] }
0x144f   :  { %v5962_v44 = vpop.eup %5961  ;;  %5631 = vmatprep.subr.msk.bf16.mxu1 %vm6344_vm1, %v6450_v32  ;;  %v3186_v26 = vmul.f32 %v5960_v50, %v5956_v30 }
0x1450   :  { %v3185_v45 = vmul.f32 %v5962_v44, %v5958_v33 }
0x1452   :  { %5247 = vmatprep.mubr.msk.f32.mxu1 %vm367_vm2, %v3185_v45 }
0x1453   :  { %5248 = vmatmul.mubr.msk.f32.vlgmr.msra.gmra.mrb[24].mxu1 %vm367_vm2, %v3186_v26 }
0x1457   :  { %5634 = vmatpush3.bf16.xpose.msk.msra.mxu1 %vm6344_vm1, %v6450_v32 }
0x1458   :  { %5637 = vmatprep.subr.msk.bf16.mxu1 %vm6344_vm1, %v6477_v55 }
0x145f   :  { %5640 = vmatpush3.bf16.xpose.msk.msra.mxu1 %vm6344_vm1, %v6477_v55 }
0x1526   :  { %v5249_v6 = vpop.f32.mrb[24].mxu1 }
0x1527   :  { %v3265_v46 = vpop.f32.mrb[25].mxu1  ;;  %v3277_v48 = vadd.f32 %v5249_v6, %v6683_v16  ;;  %v3317_v16 = vld [vmem:[#allocation8 + $0x60] sm:$0xff] }
0x1528   :  { %v3276_v47 = vadd.f32 %v3265_v46, %v6685_v17  ;;  %v5613_v1 = vpack.c.bf16 %v3318_v61, %v3317_v16  ;;  %v6014_v61 = vld [vmem:[#allocation7 + $0x10] sm:$0xff] }
0x1529   :  { %v3281_v51 = vsel %vm129_vm0, %v3277_v48, 0.0 }
0x152a   :  { %v3278_v49 = vsel %vm129_vm0, %v3276_v47, 0.0  ;;  %5614 = vmatprep.subr.bf16.mxu0 %v5613_v1 }
0x152b   :  { %3279 = vadd.xlane.f32.xlu1 %v3278_v49  ;;  %5616 = vmatpush3.bf16.msra.mxu0 %v5613_v1 }
0x152c   :  { %5618 = vmatprep.subr.bf16.mxu0 %v5617_v4 }
0x152f   :  { %3282 = vadd.xlane.f32.xlu1 %v3281_v51  ;;  %5620 = vmatpush3.bf16.msra.mxu0 %v5617_v4 }
0x1530   :  { %5622 = vmatprep.subr.bf16.mxu0 %v5621_v35 }
0x15b8   :  { %v3280_v20 = vpop.xlane.xlu1 %3279 }
0x15b9   :  { %v3284_v52 = vmul.f32 0.03125, %v3280_v20 }
0x15bb   :  { %v3286_v12 = vsub.f32 %v3276_v47, %v3284_v52 }
0x15bc   :  { %v3283_v42 = vpop.xlane.xlu1 %3282 }
0x15bd   :  { %v3285_v14 = vmul.f32 0.03125, %v3283_v42  ;;  %v3288_v58 = vmul.f32 %v3286_v12, %v3286_v12 }
0x15bf   :  { %v3287_v59 = vsub.f32 %v3277_v48, %v3285_v14  ;;  %v3290_v60 = vsel %vm129_vm0, %v3288_v58, 0.0 }
0x15c0   :  { %3291 = vadd.xlane.f32.xlu1 %v3290_v60 }
0x15c1   :  { %v3289_v27 = vmul.f32 %v3287_v59, %v3287_v59 }
0x15c3   :  { %v3293_v17 = vsel %vm129_vm0, %v3289_v27, 0.0  ;;  %v6013_v27 = vld [vmem:[#allocation7 + $0x18] sm:$0xff] }
0x15c4   :  { %3294 = vadd.xlane.f32.xlu1 %v3293_v17 }
0x164d   :  { %v3292_v5 = vpop.xlane.xlu1 %3291 }
0x164e   :  { %v3296_v15 = vmul.f32 0.03125, %v3292_v5 }
0x1650   :  { %v3298_v23 = vadd.f32 1e-05, %v3296_v15 }
0x1651   :  { %v3295_v8 = vpop.xlane.xlu1 %3294 }
0x1652   :  { %5963 = vrsqrt.f32 %v3298_v23  ;;  %v3297_v53 = vmul.f32 0.03125, %v3295_v8 }
0x1654   :  { %v3299_v9 = vadd.f32 1e-05, %v3297_v53 }
0x1656   :  { %5965 = vrsqrt.f32 %v3299_v9 }
0x165c   :  { %v5964_v21 = vpop.eup %5963 }
0x165d   :  { %v3302_v7 = vmul.f32 %v5964_v21, %v3286_v12 }
0x165f   :  { %v3308_v25 = vmul.f32 %v3307_v18, %v3302_v7 }
0x1660   :  { %v5966_v28 = vpop.eup %5965 }
0x1661   :  { %v3303_v19 = vmul.f32 %v5966_v28, %v3287_v59  ;;  %v6826_v29 = vadd.f32 %v3313_v24, %v3308_v25 }
0x1663   :  { %v3309_v30 = vmul.f32 %v3307_v18, %v3303_v19  ;;  %5258 = vmatprep.mubr.msk.f32.mxu0 %vm129_vm0, %v6826_v29 }
0x1665   :  { %v6830_v33 = vadd.f32 %v3313_v24, %v3309_v30 }
0x1667   :  { %5259 = vmatmul.mubr.msk.f32.vlgmr.msra.gmra.mrb[20].mxu0 %vm129_vm0, %v6830_v33 }
0x1668   :  { %5269 = vmatprep.mubr.msk.f32.mxu0 %vm129_vm0, %v6009_v41  ;;  %5624 = vmatpush3.bf16.msra.mxu0 %v5621_v35 }
0x1669   :  { %5626 = vmatprep.subr.bf16.mxu0 %v5625_v34 }
0x166c   :  { %5628 = vmatpush3.bf16.msra.mxu0 %v5625_v34 }
0x166d   :  { %5643 = vmatprep.subr.msk.bf16.mxu0 %vm6344_vm1, %v6450_v32 }
0x166f   :  { %5270 = vmatmul.mubr.msk.f32.vlgmr.msra.gmra.mrb[22].mxu0 %vm129_vm0, %v6010_v38 }
0x1670   :  { %5272 = vmatprep.mubr.msk.f32.mxu0 %vm129_vm0, %v6011_v40 }
0x1673   :  { %5273 = vmatmul.mubr.msk.f32.gmra.mrb[24].mxu0 %vm129_vm0, %v6012_v54 }
0x1675   :  { %5646 = vmatpush3.bf16.xpose.msk.msra.mxu0 %vm6344_vm1, %v6450_v32 }
0x1676   :  { %5649 = vmatprep.subr.msk.bf16.mxu0 %vm6344_vm1, %v6477_v55 }
0x167d   :  { %5652 = vmatpush3.bf16.xpose.msk.msra.mxu0 %vm6344_vm1, %v6477_v55 }
0x167e   :  { %5671 = vmatprep.subr.msk.bf16.mxu0 %vm6344_vm1, %v6450_v32 }
0x173a   :  { %v5260_v50 = vpop.f32.mrb[20].mxu0 }
0x173b   :  { %3597 = vrot.lane.b32.xlu0 %v5260_v50, %s6188_s0  ;;  %v3398_v44 = vpop.f32.mrb[21].mxu0 }
0x173c   :  { %3595 = vrot.lane.b32.xlu1 %v3398_v44, %s6188_s0  ;;  %5283 = vmatprep.mubr.msk.f32.mxu1 %vm129_vm0, %v3398_v44 }
0x173d   :  { %5284 = vmatmul.mubr.msk.f32.vlgmr.msra.gmra.mrb[28].mxu1 %vm129_vm0, %v5260_v50 }
0x173f   :  { %3878 = vrot.lane.b32.xlu0 %v3398_v44, %s6187_s5 }
0x1740   :  { %4080 = vrot.lane.b32.xlu1 %v5260_v50, %s6189_s25 }
0x1742   :  { %v5271_v45 = vpop.f32.mrb[22].mxu0 }
0x1743   :  { %3880 = vrot.lane.b32.xlu0 %v5260_v50, %s6187_s5  ;;  %v3473_v26 = vpop.f32.mrb[23].mxu0 }
0x1744   :  { %v6861_v6 = vpack.i.bf16 %v5271_v45, %v3473_v26  ;;  %v6892_v14 = vpack.c.bf16 %v5271_v45, %v3473_v26 }
0x1746   :  { %v5274_v46 = vpop.f32.mrb[24].mxu0 }
0x1747   :  { %4078 = vrot.lane.b32.xlu0 %v3398_v44, %s6189_s25  ;;  %v3483_v47 = vpop.f32.mrb[25].mxu0 }
0x1748   :  { %v6863_v48 = vpack.i.bf16 %v5274_v46, %v3483_v47  ;;  %v6894_v58 = vpack.c.bf16 %v5274_v46, %v3483_v47 }
0x17ad   :  { %v3598_v49 = vpop.permute.xlu0 %3597 }
0x17ae   :  { %v3596_v51 = vpop.permute.xlu1 %3595 }
0x17af   :  { %5294 = vmatprep.mubr.msk.f32.mxu0 %vm129_vm0, %v3596_v51 }
0x17b0   :  { %5295 = vmatmul.mubr.msk.f32.vlgmr.msra.gmra.mrb[26].mxu0 %vm129_vm0, %v3598_v49 }
0x17b1   :  { %5674 = vmatpush3.bf16.xpose.msk.msra.mxu0 %vm6344_vm1, %v6450_v32  ;;  %v3879_v20 = vpop.permute.xlu0 %3878 }
0x17b2   :  { %5327 = vmatprep.mubr.msk.f32.mxu0 %vm129_vm0, %v3879_v20  ;;  %5677 = vmatprep.subr.msk.bf16.mxu0 %vm6344_vm1, %v6477_v55  ;;  %v4081_v42 = vpop.permute.xlu1 %4080 }
0x17b5   :  { %v3881_v52 = vpop.permute.xlu0 %3880 }
0x17b9   :  { %5680 = vmatpush3.bf16.xpose.msk.msra.mxu0 %vm6344_vm1, %v6477_v55  ;;  %v4079_v12 = vpop.permute.xlu0 %4078 }
0x17ba   :  { %5691 = vmatprep.subr.msk.bf16.mxu0 %vm6344_vm1, %v6450_v32 }
0x17c0   :  { %5328 = vmatmul.mubr.msk.f32.vlgmr.msra.gmra.mrb[28].mxu0 %vm129_vm0, %v3881_v52 }
0x17c1   :  { %5694 = vmatpush3.bf16.xpose.msk.msra.mxu0 %vm6344_vm1, %v6450_v32  ;;  %5349 = vmatprep.mubr.msk.f32.mxu0 %vm129_vm0, %v4079_v12 }
0x17c2   :  { %5697 = vmatprep.subr.msk.bf16.mxu0 %vm6344_vm1, %v6477_v55 }
0x17c9   :  { %5700 = vmatpush3.bf16.xpose.msk.msra.mxu0 %vm6344_vm1, %v6477_v55 }
0x17d0   :  { %5350 = vmatmul.mubr.msk.f32.vlgmr.msra.gmra.mrb[30].mxu0 %vm129_vm0, %v4081_v42 }
0x1810   :  { %v5285_v59 = vpop.f32.mrb[28].mxu1 }
0x1811   :  { %v3564_v60 = vpop.f32.mrb[29].mxu1  ;;  %v3570_v55 = vadd.f32 %v6013_v27, %v5285_v59 }
0x1812   :  { %v3565_v3 = vadd.f32 %v6014_v61, %v3564_v60 }
0x1813   :  { %v3576_v5 = vsel %vm129_vm0, %v3570_v55, -inf }
0x1814   :  { %v3573_v4 = vsel %vm129_vm0, %v3565_v3, -inf }
0x1883   :  { %v5296_v32 = vpop.f32.mrb[26].mxu0 }
0x1884   :  { %v3675_v17 = vadd.f32 %v6013_v27, %v5296_v32  ;;  %v3669_v16 = vpop.f32.mrb[27].mxu0 }
0x1885   :  { %v3670_v1 = vadd.f32 %v6014_v61, %v3669_v16 }
0x1886   :  { %v3681_v2 = vsel %vm129_vm0, %v3675_v17, -inf }
0x1887   :  { %3682 = vmax.xlane.f32.xlu1 %v3681_v2  ;;  %v3678_v0 = vsel %vm129_vm0, %v3670_v1, -inf }
0x1888   :  { %3679 = vmax.xlane.f32.xlu0 %v3678_v0 }
0x188c   :  { %3574 = vmax.xlane.f32.xlu0 %v3573_v4 }
0x1890   :  { %3577 = vmax.xlane.f32.xlu0 %v3576_v5 }
0x1893   :  { %v5329_v15 = vpop.f32.mrb[28].mxu0 }
0x1894   :  { %v3958_v23 = vadd.f32 %v6013_v27, %v5329_v15  ;;  %v3952_v8 = vpop.f32.mrb[29].mxu0 }
0x1895   :  { %v3953_v53 = vadd.f32 %v6014_v61, %v3952_v8 }
0x1896   :  { %v3964_v9 = vsel %vm129_vm0, %v3958_v23, -inf }
0x1897   :  { %3965 = vmax.xlane.f32.xlu0 %v3964_v9  ;;  %v3961_v18 = vsel %vm129_vm0, %v3953_v53, -inf }
0x1898   :  { %3962 = vmax.xlane.f32.xlu1 %v3961_v18 }
0x18a3   :  { %v5351_v21 = vpop.f32.mrb[30].mxu0 }
0x18a4   :  { %v4158_v7 = vadd.f32 %v6013_v27, %v5351_v21  ;;  %v4152_v24 = vpop.f32.mrb[31].mxu0 }
0x18a5   :  { %v6907_v28 = vadd.f32 %v6014_v61, %v4152_v24 }
0x18a6   :  { %v4164_v25 = vsel %vm129_vm0, %v4158_v7, -inf }
0x18a7   :  { %4165 = vmax.xlane.f32.xlu0 %v4164_v25  ;;  %v4161_v19 = vsel %vm129_vm0, %v6907_v28, -inf }
0x18a9   :  { %5826 = vrot.lane.b32.xlu1 %v6861_v6, %s6188_s0 }
0x18bd   :  { %5831 = vrot.lane.b32.xlu0 %v6863_v48, %s6188_s0 }
0x18cd   :  { %4162 = vmax.xlane.f32.xlu1 %v4161_v19 }
0x18de   :  { %5836 = vrot.lane.b32.xlu1 %v6861_v6, %s6187_s5 }
0x1914   :  { %v3683_v37 = vpop.xlane.xlu1 %3682 }
0x1915   :  { %v3680_v30 = vpop.xlane.xlu0 %3679  ;;  %v3685_v34 = vsub.f32 %v3675_v17, %v3683_v37 }
0x1916   :  { %v3684_v41 = vsub.f32 %v3670_v1, %v3680_v30 }
0x1917   :  { %v3688_v50 = vmul.f32 1.442695, %v3685_v34 }
0x1918   :  { %v3686_v35 = vmul.f32 1.442695, %v3684_v41 }
0x1919   :  { %v3575_v31 = vpop.xlane.xlu0 %3574 }
0x191a   :  { %v3579_v43 = vsub.f32 %v3565_v3, %v3575_v31 }
0x191c   :  { %v3581_v36 = vmul.f32 1.442695, %v3579_v43 }
0x191d   :  { %v3578_v38 = vpop.xlane.xlu0 %3577 }
0x191e   :  { %5967 = vpow2.f32 %v3581_v36  ;;  %v3580_v40 = vsub.f32 %v3570_v55, %v3578_v38 }
0x191f   :  { %5969 = vpow2.f32 %v3686_v35 }
0x1920   :  { %v3583_v54 = vmul.f32 1.442695, %v3580_v40 }
0x1922   :  { %5971 = vpow2.f32 %v3583_v54 }
0x1923   :  { %5973 = vpow2.f32 %v3688_v50 }
0x1924   :  { %v3966_v44 = vpop.xlane.xlu0 %3965 }
0x1925   :  { %v3968_v45 = vsub.f32 %v3958_v23, %v3966_v44  ;;  %v3963_v26 = vpop.xlane.xlu1 %3962 }
0x1926   :  { %v3967_v46 = vsub.f32 %v3953_v53, %v3963_v26 }
0x1927   :  { %v3971_v47 = vmul.f32 1.442695, %v3968_v45 }
0x1928   :  { %v6913_v49 = vpop.eup %5967  ;;  %v3969_v51 = vmul.f32 1.442695, %v3967_v46 }
0x1929   :  { %5975 = vpow2.f32 %v3971_v47  ;;  %v5827_v20 = vpop.permute.xlu1 %5826  ;;  %v3585_v52 = vsel %vm129_vm0, %v6913_v49, 0.0  ;;  %v5970_v12 = vpop.eup %5969 }
0x192a   :  { %5977 = vpow2.f32 %v3969_v51  ;;  %v5829_v42 = vunpack.i.h.bf16 %v5827_v20  ;;  %v5828_v59 = vunpack.i.l.bf16 %v5827_v20  ;;  %3586 = vadd.xlane.f32.xlu1 %v3585_v52  ;;  %v3690_v27 = vsel %vm129_vm0, %v5970_v12, 0.0 }
0x192c   :  { %v6917_v60 = vpop.eup %5971  ;;  %v5653_v32 = vpack.c.bf16 %v5829_v42, %v5828_v59 }
0x192d   :  { %v3588_v17 = vsel %vm129_vm0, %v6917_v60, 0.0  ;;  %v5974_v16 = vpop.eup %5973 }
0x192e   :  { %5654 = vmatprep.subr.bf16.mxu1 %v5653_v32  ;;  %3691 = vadd.xlane.f32.xlu1 %v3690_v27  ;;  %v3693_v61 = vsel %vm129_vm0, %v5974_v16, 0.0 }
0x192f   :  { %5656 = vmatpush3.bf16.msra.mxu1 %v5653_v32  ;;  %3589 = vadd.xlane.f32.xlu0 %v3588_v17 }
0x1933   :  { %v6923_v1 = vpop.eup %5975  ;;  %3694 = vadd.xlane.f32.xlu0 %v3693_v61 }
0x1934   :  { %v6925_v2 = vpop.eup %5977  ;;  %v4166_v3 = vpop.xlane.xlu0 %4165  ;;  %v3976_v4 = vsel %vm129_vm0, %v6923_v1, 0.0 }
0x1935   :  { %v4168_v0 = vsub.f32 %v4158_v7, %v4166_v3  ;;  %v3973_v55 = vsel %vm129_vm0, %v6925_v2, 0.0 }
0x1936   :  { %3974 = vadd.xlane.f32.xlu1 %v3973_v55 }
0x1937   :  { %v4171_v5 = vmul.f32 1.442695, %v4168_v0  ;;  %3977 = vadd.xlane.f32.xlu0 %v3976_v4 }
0x1938   :  { %v5832_v15 = vpop.permute.xlu0 %5831 }
0x1939   :  { %5979 = vpow2.f32 %v4171_v5  ;;  %v5834_v23 = vunpack.i.h.bf16 %v5832_v15  ;;  %v5833_v8 = vunpack.i.l.bf16 %v5832_v15 }
0x193b   :  { %v5657_v53 = vpack.c.bf16 %v5834_v23, %v5833_v8 }
0x193d   :  { %5658 = vmatprep.subr.bf16.mxu1 %v5657_v53 }
0x193e   :  { %5660 = vmatpush3.bf16.msra.mxu1 %v5657_v53 }
0x193f   :  { %5662 = vmatprep.subr.bf16.mxu1 %v6892_v14 }
0x1943   :  { %v6932_v9 = vpop.eup %5979 }
0x1944   :  { %v4176_v18 = vsel %vm129_vm0, %v6932_v9, 0.0 }
0x1945   :  { %4177 = vadd.xlane.f32.xlu0 %v4176_v18 }
0x1947   :  { %5846 = vrot.lane.b32.xlu1 %v6861_v6, %s6189_s25 }
0x195a   :  { %v4163_v21 = vpop.xlane.xlu1 %4162 }
0x195b   :  { %v4167_v7 = vsub.f32 %v6907_v28, %v4163_v21  ;;  %5841 = vrot.lane.b32.xlu0 %v6863_v48, %s6187_s5 }
0x195d   :  { %v4169_v24 = vmul.f32 1.442695, %v4167_v7 }
0x195e   :  { %v5837_v30 = vpop.permute.xlu1 %5836 }
0x195f   :  { %5981 = vpow2.f32 %v4169_v24  ;;  %v5839_v54 = vunpack.i.h.bf16 %v5837_v30  ;;  %v5838_v50 = vunpack.i.l.bf16 %v5837_v30 }
0x1961   :  { %v5681_v26 = vpack.c.bf16 %v5839_v54, %v5838_v50 }
0x1969   :  { %v6941_v25 = vpop.eup %5981 }
0x196a   :  { %v4173_v19 = vsel %vm129_vm0, %v6941_v25, 0.0 }
0x196b   :  { %4174 = vadd.xlane.f32.xlu1 %v4173_v19 }
0x197c   :  { %5851 = vrot.lane.b32.xlu1 %v6863_v48, %s6189_s25 }
0x19b7   :  { %v3587_v41 = vpop.xlane.xlu1 %3586 }
0x19bb   :  { %v3692_v6 = vpop.xlane.xlu1 %3691 }
0x19bc   :  { %5983 = vrcp.f32 %v3692_v6  ;;  %v3590_v31 = vpop.xlane.xlu0 %3589  ;;  %v4320_v6 = vld [vmem:[#allocation11 + $0x48] sm:$0xff] }
0x19bd   :  { %5985 = vrcp.f32 %v3587_v41 }
0x19c0   :  { %v3695_v28 = vpop.xlane.xlu0 %3694 }
0x19c1   :  { %5987 = vrcp.f32 %v3695_v28  ;;  %v4321_v28 = vld [vmem:[#allocation11 + $0x50] sm:$0xff] }
0x19c2   :  { %5989 = vrcp.f32 %v3590_v31 }
0x19c3   :  { %v3975_v37 = vpop.xlane.xlu1 %3974 }
0x19c4   :  { %5991 = vrcp.f32 %v3975_v37  ;;  %v3978_v40 = vpop.xlane.xlu0 %3977  ;;  %v4322_v37 = vld [vmem:[#allocation11 + $0x58] sm:$0xff] }
0x19c5   :  { %5993 = vrcp.f32 %v3978_v40  ;;  %v4414_v40 = vld [vmem:[#allocation11 + $0x78] sm:$0xff] }
0x19c6   :  { %v5984_v43 = vpop.eup %5983 }
0x19c7   :  { %v3698_v35 = vmul.f32 %v5984_v43, %v5970_v12  ;;  %v5986_v36 = vpop.eup %5985  ;;  %v5713_v43 = vpack.c.bf16 %v4322_v37, %v4321_v28  ;;  %v4549_v37 = vrot.slane %v6818_v11, %v2338_v13 }
0x19c8   :  { %v3593_v48 = vmul.f32 %v5986_v36, %v6913_v49  ;;  %v5847_v49 = vpop.permute.xlu1 %5846  ;;  %v4412_v36 = vld [vmem:[#allocation11 + $0x68] sm:$0xff] }
0x19c9   :  { %5305 = vmatprep.mubr.msk.f32.mxu1 %vm129_vm0, %v3698_v35  ;;  %v5848_v52 = vunpack.i.l.bf16 %v5847_v49  ;;  %v4411_v35 = vld [vmem:[#allocation11 + $0x60] sm:$0xff] }
0x19cb   :  { %v5988_v34 = vpop.eup %5987 }
0x19cc   :  { %v3699_v38 = vmul.f32 %v5988_v34, %v5974_v16  ;;  %v5990_v44 = vpop.eup %5989  ;;  %v4413_v34 = vld [vmem:[#allocation11 + $0x70] sm:$0xff] }
0x19cd   :  { %v3594_v47 = vmul.f32 %v5990_v44, %v6917_v60 }
0x19ce   :  { %5306 = vmatmul.mubr.msk.f32.vlgmr.msra.gmra.mrb[30].mxu1 %vm129_vm0, %v3699_v38  ;;  %v5992_v45 = vpop.eup %5991  ;;  %v5717_v38 = vpack.c.bf16 %v4412_v36, %v4411_v35 }
0x19cf   :  { %5664 = vmatpush3.bf16.msra.mxu1 %v6892_v14  ;;  %5316 = vmatprep.mubr.msk.f32.mxu1 %vm129_vm0, %v3593_v48  ;;  %v3981_v51 = vmul.f32 %v5992_v45, %v6925_v2  ;;  %v5849_v14 = vunpack.i.h.bf16 %v5847_v49  ;;  %v5994_v32 = vpop.eup %5993  ;;  %v5723_v48 = vpack.c.bf16 %v4414_v40, %v4413_v34 }
0x19d0   :  { %5666 = vmatprep.subr.bf16.mxu1 %v6894_v58  ;;  %5719 = vmatprep.subr.msk.bf16.mxu0 %vm6639_vm4, %v5717_v38 }
0x19d1   :  { %v5701_v27 = vpack.c.bf16 %v5849_v14, %v5848_v52  ;;  %5722 = vmatpush3.bf16.xpose.msk.msra.mxu0 %vm6639_vm4, %v5717_v38 }
0x19d2   :  { %v4178_v46 = vpop.xlane.xlu0 %4177  ;;  %5725 = vmatprep.subr.msk.bf16.mxu0 %vm6639_vm4, %v5723_v48 }
0x19d3   :  { %5668 = vmatpush3.bf16.msra.mxu1 %v6894_v58  ;;  %v3982_v58 = vmul.f32 %v5994_v32, %v6923_v1  ;;  %5995 = vrcp.f32 %v4178_v46 }
0x19d4   :  { %5682 = vmatprep.subr.bf16.mxu1 %v5681_v26 }
0x19d6   :  { %v5842_v20 = vpop.permute.xlu0 %5841  ;;  %5317 = vmatmul.mubr.msk.f32.vlgmr.msra.gmra.mrb[30].mxu1 %vm129_vm0, %v3594_v47  ;;  %v4309_v47 = vrot.slane %v6818_v11, %v2098_v63  ;;  %v4326_v63 = vrot.slane %v6818_v11, %v2114_v10 }
0x19d7   :  { %v5844_v12 = vunpack.i.h.bf16 %v5842_v20  ;;  %v5843_v42 = vunpack.i.l.bf16 %v5842_v20  ;;  %5684 = vmatpush3.bf16.msra.mxu1 %v5681_v26  ;;  %5338 = vmatprep.mubr.msk.f32.mxu1 %vm129_vm0, %v3981_v51  ;;  %v4315_v20 = vrot.slane %v6818_v11, %v2104_v56 }
0x19d9   :  { %v5685_v59 = vpack.c.bf16 %v5844_v12, %v5843_v42  ;;  %5728 = vmatpush3.bf16.xpose.msk.msra.mxu0 %vm6639_vm4, %v5723_v48 }
0x19db   :  { %5686 = vmatprep.subr.bf16.mxu1 %v5685_v59 }
0x19dc   :  { %5688 = vmatpush3.bf16.msra.mxu1 %v5685_v59 }
0x19dd   :  { %5702 = vmatprep.subr.bf16.mxu1 %v5701_v27  ;;  %v5996_v3 = vpop.eup %5995 }
0x19de   :  { %v4182_v4 = vmul.f32 %v5996_v3, %v6932_v9 }
0x19df   :  { %5339 = vmatmul.mubr.msk.f32.vlgmr.msra.gmra.mrb[30].mxu1 %vm129_vm0, %v3982_v58 }
0x19e0   :  { %5704 = vmatpush3.bf16.msra.mxu1 %v5701_v27 }
0x19f8   :  { %v4175_v60 = vpop.xlane.xlu1 %4174 }
0x19f9   :  { %5997 = vrcp.f32 %v4175_v60 }
0x19fc   :  { %v5852_v17 = vpop.permute.xlu1 %5851 }
0x19fd   :  { %v5854_v16 = vunpack.i.h.bf16 %v5852_v17  ;;  %v5853_v61 = vunpack.i.l.bf16 %v5852_v17 }
0x19ff   :  { %v5705_v2 = vpack.c.bf16 %v5854_v16, %v5853_v61  ;;  %v4418_v16 = vrot.slane %v6818_v11, %v2206_v22 }
0x1a01   :  { %5706 = vmatprep.subr.bf16.mxu1 %v5705_v2 }
0x1a02   :  { %5708 = vmatpush3.bf16.msra.mxu1 %v5705_v2 }
0x1a03   :  { %v5998_v0 = vpop.eup %5997 }
0x1a04   :  { %v4181_v55 = vmul.f32 %v5998_v0, %v6941_v25 }
0x1a06   :  { %5360 = vmatprep.mubr.msk.f32.mxu1 %vm129_vm0, %v4181_v55 }
0x1a07   :  { %5361 = vmatmul.mubr.msk.f32.vlgmr.msra.gmra.mrb[30].mxu1 %vm129_vm0, %v4182_v4 }
0x1ada   :  { %v5362_v1 = vpop.f32.mrb[30].mxu1 }
0x1adb   :  { %v4279_v5 = vadd.f32 %v5362_v1, %v6830_v33  ;;  %v4267_v15 = vpop.f32.mrb[31].mxu1 }
0x1adc   :  { %v4278_v23 = vadd.f32 %v4267_v15, %v6826_v29  ;;  %v4319_v29 = vld [vmem:[#allocation11 + $0x40] sm:$0xff] }
0x1add   :  { %v4283_v8 = vsel %vm129_vm0, %v4279_v5, 0.0  ;;  %v5709_v31 = vpack.c.bf16 %v4320_v6, %v4319_v29  ;;  %v4543_v29 = vrot.slane %v6818_v11, %v2332_v62 }
0x1ade   :  { %4284 = vadd.xlane.f32.xlu1 %v4283_v8  ;;  %v4280_v53 = vsel %vm129_vm0, %v4278_v23, 0.0 }
0x1adf   :  { %4281 = vadd.xlane.f32.xlu0 %v4280_v53  ;;  %5710 = vmatprep.subr.bf16.mxu1 %v5709_v31 }
0x1ae0   :  { %5712 = vmatpush3.bf16.msra.mxu1 %v5709_v31 }
0x1ae1   :  { %5714 = vmatprep.subr.bf16.mxu1 %v5713_v43 }
0x1ae4   :  { %5716 = vmatpush3.bf16.msra.mxu1 %v5713_v43 }
0x1b6b   :  { %v4285_v18 = vpop.xlane.xlu1 %4284 }
0x1b6c   :  { %v4287_v21 = vmul.f32 0.03125, %v4285_v18  ;;  %v4282_v7 = vpop.xlane.xlu0 %4281 }
0x1b6d   :  { %v4286_v9 = vmul.f32 0.03125, %v4282_v7 }
0x1b6e   :  { %v4289_v24 = vsub.f32 %v4279_v5, %v4287_v21 }
0x1b6f   :  { %v4288_v25 = vsub.f32 %v4278_v23, %v4286_v9 }
0x1b70   :  { %v4291_v41 = vmul.f32 %v4289_v24, %v4289_v24 }
0x1b71   :  { %v4290_v19 = vmul.f32 %v4288_v25, %v4288_v25 }
0x1b72   :  { %v4295_v33 = vsel %vm129_vm0, %v4291_v41, 0.0 }
0x1b73   :  { %v4292_v30 = vsel %vm129_vm0, %v4290_v19, 0.0 }
0x1b74   :  { %4293 = vadd.xlane.f32.xlu0 %v4292_v30 }
0x1b78   :  { %4296 = vadd.xlane.f32.xlu0 %v4295_v33 }
0x1c01   :  { %v4294_v54 = vpop.xlane.xlu0 %4293 }
0x1c02   :  { %v4298_v50 = vmul.f32 0.03125, %v4294_v54 }
0x1c04   :  { %v4300_v44 = vadd.f32 1e-05, %v4298_v50 }
0x1c05   :  { %v4297_v45 = vpop.xlane.xlu0 %4296 }
0x1c06   :  { %5999 = vrsqrt.f32 %v4300_v44  ;;  %v4299_v26 = vmul.f32 0.03125, %v4297_v45 }
0x1c08   :  { %v4301_v46 = vadd.f32 1e-05, %v4299_v26 }
0x1c0a   :  { %6001 = vrsqrt.f32 %v4301_v46 }
0x1c10   :  { %v6000_v49 = vpop.eup %5999 }
0x1c11   :  { %v4304_v51 = vmul.f32 %v6000_v49, %v4288_v25 }
0x1c13   :  { %v4310_v57 = vmul.f32 %v4309_v47, %v4304_v51 }
0x1c14   :  { %v6002_v14 = vpop.eup %6001 }
0x1c15   :  { %v4305_v52 = vmul.f32 %v6002_v14, %v4289_v24  ;;  %v4316_v12 = vadd.f32 %v4315_v20, %v4310_v57 }
0x1c17   :  { %v4311_v42 = vmul.f32 %v4309_v47, %v4305_v52  ;;  %5371 = vmatprep.mubr.msk.f32.mxu1 %vm129_vm0, %v4316_v12 }
0x1c19   :  { %v4317_v59 = vadd.f32 %v4315_v20, %v4311_v42 }
0x1c1b   :  { %5372 = vmatmul.mubr.msk.f32.vlgmr.msra.gmra.mrb[32].mxu1 %vm129_vm0, %v4317_v59 }
0x1cee   :  { %v5373_v32 = vpop.f32.mrb[32].mxu1 }
0x1cef   :  { %v4405_v27 = vadd.f32 %v5373_v32, %v4326_v63  ;;  %v4399_v58 = vpop.f32.mrb[33].mxu1 }
0x1cf0   :  { %v4400_v60 = vadd.f32 %v4399_v58, %v4326_v63 }
0x1cf1   :  { %v4409_v56 = vmax.f32 %v4405_v27, 0.0 }
0x1cf2   :  { %v4408_v17 = vmax.f32 %v4400_v60, 0.0 }
0x1cf4   :  { %5382 = vmatprep.mubr.msk.f32.mxu0 %vm2208_vm3, %v4408_v17 }
0x1cf5   :  { %5383 = vmatmul.mubr.msk.f32.vlgmr.msra.gmra.mrb[32].mxu0 %vm2208_vm3, %v4409_v56 }
0x1dc8   :  { %v5384_v61 = vpop.f32.mrb[32].mxu0 }
0x1dc9   :  { %v4509_v2 = vadd.f32 %v5384_v61, %v4418_v16  ;;  %v4503_v3 = vpop.f32.mrb[33].mxu0 }
0x1dca   :  { %v4504_v0 = vadd.f32 %v4503_v3, %v4418_v16 }
0x1dcb   :  { %v4513_v55 = vadd.f32 %v4509_v2, %v4317_v59 }
0x1dcc   :  { %v4512_v10 = vadd.f32 %v4504_v0, %v4316_v12 }
0x1dcd   :  { %v4517_v4 = vsel %vm129_vm0, %v4513_v55, 0.0 }
0x1dce   :  { %4518 = vadd.xlane.f32.xlu0 %v4517_v4  ;;  %v4514_v1 = vsel %vm129_vm0, %v4512_v10, 0.0 }
0x1dcf   :  { %4515 = vadd.xlane.f32.xlu1 %v4514_v1 }
0x1e5b   :  { %v4519_v5 = vpop.xlane.xlu0 %4518 }
0x1e5c   :  { %v4521_v15 = vmul.f32 0.03125, %v4519_v5  ;;  %v4516_v23 = vpop.xlane.xlu1 %4515 }
0x1e5d   :  { %v4520_v8 = vmul.f32 0.03125, %v4516_v23 }
0x1e5e   :  { %v4523_v53 = vsub.f32 %v4513_v55, %v4521_v15 }
0x1e5f   :  { %v4522_v18 = vsub.f32 %v4512_v10, %v4520_v8 }
0x1e60   :  { %v4525_v21 = vmul.f32 %v4523_v53, %v4523_v53 }
0x1e61   :  { %v4524_v22 = vmul.f32 %v4522_v18, %v4522_v18 }
0x1e62   :  { %v4529_v7 = vsel %vm129_vm0, %v4525_v21, 0.0 }
0x1e63   :  { %4530 = vadd.xlane.f32.xlu0 %v4529_v7  ;;  %v4526_v9 = vsel %vm129_vm0, %v4524_v22, 0.0 }
0x1e64   :  { %4527 = vadd.xlane.f32.xlu1 %v4526_v9 }
0x1ef0   :  { %v4531_v24 = vpop.xlane.xlu0 %4530 }
0x1ef1   :  { %v4533_v25 = vmul.f32 0.03125, %v4531_v24  ;;  %v4528_v19 = vpop.xlane.xlu1 %4527 }
0x1ef2   :  { %v4532_v30 = vmul.f32 0.03125, %v4528_v19 }
0x1ef3   :  { %v4535_v41 = vadd.f32 1e-05, %v4533_v25 }
0x1ef4   :  { %v4534_v33 = vadd.f32 1e-05, %v4532_v30 }
0x1ef5   :  { %6003 = vrsqrt.f32 %v4535_v41 }
0x1ef6   :  { %6005 = vrsqrt.f32 %v4534_v33 }
0x1eff   :  { %v6004_v6 = vpop.eup %6003 }
0x1f00   :  { %v6006_v31 = vpop.eup %6005  ;;  %v4539_v28 = vmul.f32 %v6004_v6, %v4523_v53 }
0x1f01   :  { %v4538_v43 = vmul.f32 %v6006_v31, %v4522_v18 }
0x1f02   :  { %v4545_v35 = vmul.f32 %v4543_v29, %v4539_v28 }
0x1f03   :  { %v4544_v36 = vmul.f32 %v4543_v29, %v4538_v43 }
0x1f04   :  { %v4551_v34 = vadd.f32 %v4549_v37, %v4545_v35 }
0x1f05   :  { %v4550_v38 = vadd.f32 %v4549_v37, %v4544_v36 }
0x1f06   :  { %4553 = vst.msk [vmem:[#allocation13 + $0x8] sm:$0xff] %vm129_vm0, %v4551_v34 }
0x1f07   :  { %4552 = vst.msk [vmem:[#allocation13] sm:$0xff] %vm129_vm0, %v4550_v38 }
0x1f08   :  { %6158 = shalt.err (!%p6155_p10)
}
0x1f09   :  { %s6159_s15 = scalar_lea.hbm %s7028_s7, 256 }
0x1f0a   :  { %p6160_p11 = scmp.ne.s32.totalorder %s7028_s7, %s6159_s15  ;;  %p6163_p12 = scmp.lt.u32.totalorder %s6159_s15, %s7028_s7 }
0x1f0c   :  { %p6165_p13 = pnand %p6163_p12, %p6160_p11 }
0x1f0e   :  { %6168 = shalt.err (!%p6165_p13)
}
0x1f0f   :  { %4565 = dma.vmem_to_hbm [thread:$0]  %s4560_s9, 256, %s7028_s7, [#allocation4], %s6181_s13, %s6181_s13, %s6182_s14  }
0x1f10   :  { %6177 = dma.done.wait [#allocation4], 256  }
0x1f11   :  { %6178 = vsyncadd [#allocation4], 4294967040 }
0x1f12   :  { %4569 = vsyncpa [#allocation3], 1 }
0x1f13   :  { %4570 = vsyncpa [#allocation6], 1 }
0x1f14   :  { %4571 = vsyncpa [#allocation9], 1 }
0x1f15   :  { %4572 = vsyncpa [#allocation12], 1 }
0x1f16   :  { %4573 = vsyncpa [#allocation4], 1 }

</bundles_post_ra>
